<compile_context>
chip_gen: v5e
topology: v5e:2x2
jax: 0.10.0
libtpu: 0.0.40
codegen_flags: <defaults>
</compile_context>

<pallas_src>
import functools

import jax
import jax.numpy as jnp
from jax.experimental import pallas as pl
from jax.experimental.pallas import tpu as pltpu

# ----------------------------- config -----------------------------
VOCAB_SIZE = 100
VOCAB_PAD = 128          # embedding row-block size in the slab (ids are clamped to it)
EMB_DIM = 32
FF_DIM = 64
N_HEADS = 4
N_LAYERS = 2
D_K = EMB_DIM            # module passes d_k=emb_dim
D_V = EMB_DIM            # module passes d_v=emb_dim
NUM_CLASSES = 2
LN_EPS = 1e-6

BATCH = 2
SEQ = 8

assert D_K == EMB_DIM and D_V == EMB_DIM, "slab layout assumes d_k == d_v == d_model"

# ----------------------- packed-slab layout ------------------------
# One f32 slab of shape [TOTAL_ROWS, 128].  All offsets are static Python ints,
# shared by the host-side packer and the kernel.
LANES = 128
OUT_ROWS = 8                                  # lane/sublane-dense logits tile

EMB_OFF = 0                                   # 128 rows : embed[tok, 0:32]
ATTN_ROWS = N_HEADS * EMB_DIM                 # 128 rows : per head h (32 rows each):
                                              #   lanes   0: 32 = Wq_h  (d_model x d_k)
                                              #   lanes  32: 64 = Wk_h
                                              #   lanes  64: 96 = Wv_h
                                              #   lanes  96:128 = Wo_h  (d_v x d_model)
LAYER_ROWS = ATTN_ROWS + EMB_DIM + FF_DIM + 8 # attn + W1(32r) + W2(64r) + vec rows(8r)
LAYER_OFF = VOCAB_PAD                         # 128
CLS_OFF = LAYER_OFF + N_LAYERS * LAYER_ROWS   # 592 : 32 rows, cls_w padded to 128 lanes
CLSB_OFF = CLS_OFF + EMB_DIM                  # 624 : row 0 = cls_b padded to 128 lanes
POOL_OFF = CLSB_OFF + 8                       # 632 : [OUT_ROWS, B*S] mean-pool matrix
TOTAL_ROWS = POOL_OFF + 8                     # 640


# --------------------------- kernel helpers ------------------------
def _layer_norm(x, gamma, beta, eps):
    mean = jnp.mean(x, axis=-1, keepdims=True)
    var = jnp.mean((x - mean) ** 2, axis=-1, keepdims=True)
    return (x - mean) * jax.lax.rsqrt(var + eps) * gamma + beta


def _softmax_lastdim(s):
    s = s - jnp.max(s, axis=-1, keepdims=True)
    p = jnp.exp(s)
    # approx reciprocal -> EUP slot, effectively free next to VPU/MXU work.
    return p * pl.reciprocal(jnp.sum(p, axis=-1, keepdims=True), approx=True)


# --------------------------- fused kernel --------------------------
def fused_transformer_kernel(ids_ref, slab_ref, out_ref, x_scratch, *, batch, seq):
    """Entire forward pass in one kernel invocation (no grid).

    ids_ref  : [B*S] int32 token ids in SMEM.
    slab_ref : [TOTAL_ROWS, 128] f32 packed parameters in VMEM (single DMA).
    out_ref  : [OUT_ROWS, 128] f32 lane-dense logits tile.
    x_scratch: [B*S, EMB_DIM] f32 VMEM scratch for the embedding gather.
    """
    bs = batch * seq
    inv_temperature = 1.0 / (float(D_K) ** 0.5)

    # ---- embedding lookup: per-row dynamic gather from the slab (ids in SMEM) ----
    for i in range(bs):
        tok = jnp.clip(ids_ref[i], 0, VOCAB_PAD - 1)   # ids >= VOCAB_SIZE read zero rows
        x_scratch[i:i + 1, :] = slab_ref[pl.ds(EMB_OFF + tok, 1), 0:EMB_DIM]
    x = x_scratch[...]                                                 # [BS, D]

    # ---- encoder layers (statically unrolled, post-LN) ----
    for layer in range(N_LAYERS):
        base = LAYER_OFF + layer * LAYER_ROWS
        attn_off = base
        w1_off = base + ATTN_ROWS
        w2_off = w1_off + EMB_DIM
        vec_off = w2_off + FF_DIM

        # --- multi-head self-attention ---
        residual = x
        attn_out = None
        for h in range(N_HEADS):                       # static unroll; weight windows
            r = attn_off + h * EMB_DIM                 # are free static ref slices.
            wq_h = slab_ref[r:r + EMB_DIM, 0:D_K]
            wk_h = slab_ref[r:r + EMB_DIM, D_K:2 * D_K]
            wv_h = slab_ref[r:r + EMB_DIM, 2 * D_K:2 * D_K + D_V]
            wo_h = slab_ref[r:r + D_V, 2 * D_K + D_V:2 * D_K + D_V + EMB_DIM]

            q = jnp.dot(x, wq_h, preferred_element_type=jnp.float32)  # [BS, Dk]
            k = jnp.dot(x, wk_h, preferred_element_type=jnp.float32)
            v = jnp.dot(x, wv_h, preferred_element_type=jnp.float32)
            q3 = q.reshape(batch, seq, D_K)            # leading-dim split: free
            k3 = k.reshape(batch, seq, D_K)
            v3 = v.reshape(batch, seq, D_V)

            scores = jnp.einsum('bsd,btd->bst', q3, k3,
                                preferred_element_type=jnp.float32) * inv_temperature
            p = _softmax_lastdim(scores)                               # [B, S, S]
            o3 = jnp.einsum('bst,btd->bsd', p, v3,
                            preferred_element_type=jnp.float32)        # [B, S, Dv]

            # sum over heads of (o_h @ Wo_h) == concat_h(o_h) @ Wo  (no concat needed)
            contrib = jnp.dot(o3.reshape(bs, D_V), wo_h,
                              preferred_element_type=jnp.float32)      # [BS, D]
            attn_out = contrib if attn_out is None else attn_out + contrib

        ln1_g = slab_ref[vec_off:vec_off + 1, 0:EMB_DIM]
        ln1_b = slab_ref[vec_off:vec_off + 1, EMB_DIM:2 * EMB_DIM]
        ln2_g = slab_ref[vec_off:vec_off + 1, 2 * EMB_DIM:3 * EMB_DIM]
        ln2_b = slab_ref[vec_off:vec_off + 1, 3 * EMB_DIM:4 * EMB_DIM]
        b1 = slab_ref[vec_off + 1:vec_off + 2, 0:FF_DIM]
        b2 = slab_ref[vec_off + 1:vec_off + 2, FF_DIM:FF_DIM + EMB_DIM]

        x = _layer_norm(attn_out + residual, ln1_g, ln1_b, LN_EPS)

        # --- position-wise feed-forward (ReLU) ---
        residual = x
        w1 = slab_ref[w1_off:w1_off + EMB_DIM, 0:FF_DIM]
        w2 = slab_ref[w2_off:w2_off + FF_DIM, 0:EMB_DIM]
        h1 = jnp.maximum(jnp.dot(x, w1, preferred_element_type=jnp.float32) + b1, 0.0)
        h2 = jnp.dot(h1, w2, preferred_element_type=jnp.float32) + b2
        x = _layer_norm(h2 + residual, ln2_g, ln2_b, LN_EPS)

    # ---- mean-pool via preloaded pooling matrix, classifier, lane-dense store ----
    # Dropout is identity at inference time.
    pool = slab_ref[POOL_OFF:POOL_OFF + OUT_ROWS, 0:bs]                # [8, BS]
    pooled = jnp.dot(pool, x, preferred_element_type=jnp.float32)      # [8, D]
    cls_w = slab_ref[CLS_OFF:CLS_OFF + EMB_DIM, :]                     # [D, 128] (padded)
    cls_b = slab_ref[CLSB_OFF:CLSB_OFF + 1, :]                         # [1, 128] (padded)
    logits = jnp.dot(pooled, cls_w, preferred_element_type=jnp.float32) + cls_b
    out_ref[...] = logits.astype(out_ref.dtype)                        # unmasked [8,128] vst


# ----------------------------- wrapper ------------------------------
def transformer_classifier(texts, param_slab):
    """Forward pass. texts: [B, S] int32 token ids -> logits [B, NUM_CLASSES]."""
    B, S = texts.shape
    bs = B * S
    assert B <= OUT_ROWS and bs <= LANES
    ids = texts.reshape(-1).astype(jnp.int32)          # [B*S] -> SMEM

    kernel = functools.partial(fused_transformer_kernel, batch=B, seq=S)

    # Advisory cost estimate so XLA can schedule around the custom call.
    mm = lambda m, k, n: 2 * m * k * n
    flops_layer = (3 * N_HEADS * mm(bs, EMB_DIM, D_K)       # q/k/v projections
                   + N_HEADS * B * mm(S, D_K, S)            # scores
                   + N_HEADS * B * mm(S, S, D_V)            # p @ v
                   + N_HEADS * mm(bs, D_V, EMB_DIM)         # output projection
                   + mm(bs, EMB_DIM, FF_DIM) + mm(bs, FF_DIM, EMB_DIM))
    flops = N_LAYERS * flops_layer + mm(OUT_ROWS, bs, EMB_DIM) + mm(OUT_ROWS, EMB_DIM, LANES)
    transcendentals = N_LAYERS * (N_HEADS * B * S * S + 2 * bs)
    bytes_accessed = (TOTAL_ROWS * LANES + OUT_ROWS * LANES + bs) * 4
    cost = pl.CostEstimate(flops=flops, transcendentals=transcendentals,
                           bytes_accessed=bytes_accessed)

    out = pl.pallas_call(
        kernel,
        out_shape=jax.ShapeDtypeStruct((OUT_ROWS, LANES), jnp.float32),
        in_specs=[
            pl.BlockSpec(memory_space=pltpu.MemorySpace.SMEM),   # token ids (scalars)
            pl.BlockSpec(memory_space=pltpu.MemorySpace.VMEM),   # packed parameter slab
        ],
        out_specs=pl.BlockSpec(memory_space=pltpu.MemorySpace.VMEM),
        scratch_shapes=[pltpu.VMEM((bs, EMB_DIM), jnp.float32)],  # embedding gather buffer
        compiler_params=pltpu.CompilerParams(vmem_limit_bytes=32 * 1024 * 1024),
        cost_estimate=cost,
    )(ids, param_slab)
    return out[:B, :NUM_CLASSES]


# ------------------------------ params ------------------------------
def init_params(key):
    keys = jax.random.split(key, 2 + N_LAYERS)
    # Embedding: uniform(-0.1, 0.1) as in init_weights().
    embed = jax.random.uniform(keys[0], (VOCAB_SIZE, EMB_DIM),
                               minval=-0.1, maxval=0.1, dtype=jnp.float32)
    layers = []
    for n in range(N_LAYERS):
        lk = jax.random.split(keys[2 + n], 6)
        scale_qk = (2.0 / (EMB_DIM + D_K)) ** 0.5
        wq = jax.random.normal(lk[0], (EMB_DIM, N_HEADS * D_K), jnp.float32) * scale_qk
        wk = jax.random.normal(lk[1], (EMB_DIM, N_HEADS * D_K), jnp.float32) * scale_qk
        wv = jax.random.normal(lk[2], (EMB_DIM, N_HEADS * D_V), jnp.float32) * scale_qk
        wo = jax.random.normal(lk[3], (N_HEADS * D_V, EMB_DIM), jnp.float32) * 0.05
        ln1_g = jnp.ones((EMB_DIM,), jnp.float32)
        ln1_b = jnp.zeros((EMB_DIM,), jnp.float32)
        w1 = jax.random.normal(lk[4], (EMB_DIM, FF_DIM), jnp.float32) * 0.05
        b1 = jnp.zeros((FF_DIM,), jnp.float32)
        w2 = jax.random.normal(lk[5], (FF_DIM, EMB_DIM), jnp.float32) * 0.05
        b2 = jnp.zeros((EMB_DIM,), jnp.float32)
        ln2_g = jnp.ones((EMB_DIM,), jnp.float32)
        ln2_b = jnp.zeros((EMB_DIM,), jnp.float32)
        layers.append((wq, wk, wv, wo, ln1_g, ln1_b, w1, b1, w2, b2, ln2_g, ln2_b))
    cls_w = jax.random.normal(keys[1], (EMB_DIM, NUM_CLASSES), jnp.float32) * 0.05
    cls_b = jnp.zeros((NUM_CLASSES,), jnp.float32)
    return embed, layers, cls_w, cls_b


def pack_param_slab(embed, layers, cls_w, cls_b, batch, seq):
    """Pack every parameter + the mean-pool matrix into one [TOTAL_ROWS, 128] slab."""
    bs = batch * seq
    slab = jnp.zeros((TOTAL_ROWS, LANES), jnp.float32)
    slab = slab.at[EMB_OFF:EMB_OFF + VOCAB_SIZE, 0:EMB_DIM].set(embed)

    for l, lp in enumerate(layers):
        (wq, wk, wv, wo, ln1_g, ln1_b, w1, b1, w2, b2, ln2_g, ln2_b) = lp
        base = LAYER_OFF + l * LAYER_ROWS
        for h in range(N_HEADS):
            r = base + h * EMB_DIM
            slab = slab.at[r:r + EMB_DIM, 0:D_K].set(wq[:, h * D_K:(h + 1) * D_K])
            slab = slab.at[r:r + EMB_DIM, D_K:2 * D_K].set(wk[:, h * D_K:(h + 1) * D_K])
            slab = slab.at[r:r + EMB_DIM, 2 * D_K:2 * D_K + D_V].set(wv[:, h * D_V:(h + 1) * D_V])
            slab = slab.at[r:r + D_V, 2 * D_K + D_V:2 * D_K + D_V + EMB_DIM].set(
                wo[h * D_V:(h + 1) * D_V, :])
        w1_off = base + ATTN_ROWS
        w2_off = w1_off + EMB_DIM
        vec_off = w2_off + FF_DIM
        slab = slab.at[w1_off:w1_off + EMB_DIM, 0:FF_DIM].set(w1)
        slab = slab.at[w2_off:w2_off + FF_DIM, 0:EMB_DIM].set(w2)
        slab = slab.at[vec_off, 0:EMB_DIM].set(ln1_g)
        slab = slab.at[vec_off, EMB_DIM:2 * EMB_DIM].set(ln1_b)
        slab = slab.at[vec_off, 2 * EMB_DIM:3 * EMB_DIM].set(ln2_g)
        slab = slab.at[vec_off, 3 * EMB_DIM:4 * EMB_DIM].set(ln2_b)
        slab = slab.at[vec_off + 1, 0:FF_DIM].set(b1)
        slab = slab.at[vec_off + 1, FF_DIM:FF_DIM + EMB_DIM].set(b2)

    slab = slab.at[CLS_OFF:CLS_OFF + EMB_DIM, 0:NUM_CLASSES].set(cls_w)   # padded to 128 lanes
    slab = slab.at[CLSB_OFF, 0:NUM_CLASSES].set(cls_b)
    # Mean-pool matrix: row b has 1/seq over columns [b*seq, (b+1)*seq); rows >= batch are 0.
    pool = jnp.zeros((OUT_ROWS, bs), jnp.float32)
    for b in range(batch):
        pool = pool.at[b, b * seq:(b + 1) * seq].set(1.0 / seq)
    slab = slab.at[POOL_OFF:POOL_OFF + OUT_ROWS, 0:bs].set(pool)
    return slab


# ------------------------------- main -------------------------------
if __name__ == "__main__":
    key = jax.random.PRNGKey(0)
    pkey, dkey = jax.random.split(key)
    embed, layers, cls_w, cls_b = init_params(pkey)
    param_slab = pack_param_slab(embed, layers, cls_w, cls_b, BATCH, SEQ)

    texts = jax.random.randint(dkey, (BATCH, SEQ), 0, VOCAB_SIZE, dtype=jnp.int32)
    assert int(texts.min()) >= 0 and int(texts.max()) < VOCAB_SIZE

    logits = transformer_classifier(texts, param_slab)
    jax.block_until_ready(logits)

    assert logits.shape == (BATCH, NUM_CLASSES)
    assert bool(jnp.all(jnp.isfinite(logits)))
    print("KERNEL_OK")
</pallas_src>

<mosaic_0001>
module attributes {stable_mosaic.version = 11 : i64} {
  func.func @fused_transformer_kernel(%arg0: memref<16xi32, #tpu.memory_space<smem>>, %arg1: memref<640x128xf32, #tpu.memory_space<vmem>>, %arg2: memref<8x128xf32, #tpu.memory_space<vmem>>, %arg3: memref<16x32xf32, #tpu.memory_space<vmem>>) attributes {dimension_semantics = [], scalar_prefetch = 0 : i64, scratch_operands = 1 : i64, tpu.core_type = #tpu.core_type<tc>} {
    %c0 = arith.constant 0 : index
    %0 = memref.load %arg0[%c0] : memref<16xi32, #tpu.memory_space<smem>>
    %c0_i32 = arith.constant 0 : i32
    %c127_i32 = arith.constant 127 : i32
    %1 = arith.maxsi %c0_i32, %0 : i32
    %2 = arith.minsi %c127_i32, %1 : i32
    %c0_i32_0 = arith.constant 0 : i32
    %3 = arith.addi %c0_i32_0, %2 : i32
    %4 = arith.index_cast %3 : i32 to index
    %c0_1 = arith.constant 0 : index
    %5 = vector.load %arg1[%4, %c0_1] : memref<640x128xf32, #tpu.memory_space<vmem>>, vector<1x32xf32>
    %c0_2 = arith.constant 0 : index
    %c0_3 = arith.constant 0 : index
    %6 = vector.load %arg3[%c0_2, %c0_3] : memref<16x32xf32, #tpu.memory_space<vmem>>, vector<1x32xf32>
    tpu.vector_store %arg3[%c0_2, %c0_3], %5 {strides = array<i32>} : memref<16x32xf32, #tpu.memory_space<vmem>>, vector<1x32xf32>,
    %c1 = arith.constant 1 : index
    %7 = memref.load %arg0[%c1] : memref<16xi32, #tpu.memory_space<smem>>
    %c0_i32_4 = arith.constant 0 : i32
    %c127_i32_5 = arith.constant 127 : i32
    %8 = arith.maxsi %c0_i32_4, %7 : i32
    %9 = arith.minsi %c127_i32_5, %8 : i32
    %c0_i32_6 = arith.constant 0 : i32
    %10 = arith.addi %c0_i32_6, %9 : i32
    %11 = arith.index_cast %10 : i32 to index
    %c0_7 = arith.constant 0 : index
    %12 = vector.load %arg1[%11, %c0_7] : memref<640x128xf32, #tpu.memory_space<vmem>>, vector<1x32xf32>
    %c1_8 = arith.constant 1 : index
    %c0_9 = arith.constant 0 : index
    %13 = vector.load %arg3[%c1_8, %c0_9] : memref<16x32xf32, #tpu.memory_space<vmem>>, vector<1x32xf32>
    tpu.vector_store %arg3[%c1_8, %c0_9], %12 {strides = array<i32>} : memref<16x32xf32, #tpu.memory_space<vmem>>, vector<1x32xf32>,
    %c2 = arith.constant 2 : index
    %14 = memref.load %arg0[%c2] : memref<16xi32, #tpu.memory_space<smem>>
    %c0_i32_10 = arith.constant 0 : i32
    %c127_i32_11 = arith.constant 127 : i32
    %15 = arith.maxsi %c0_i32_10, %14 : i32
    %16 = arith.minsi %c127_i32_11, %15 : i32
    %c0_i32_12 = arith.constant 0 : i32
    %17 = arith.addi %c0_i32_12, %16 : i32
    %18 = arith.index_cast %17 : i32 to index
    %c0_13 = arith.constant 0 : index
    %19 = vector.load %arg1[%18, %c0_13] : memref<640x128xf32, #tpu.memory_space<vmem>>, vector<1x32xf32>
    %c2_14 = arith.constant 2 : index
    %c0_15 = arith.constant 0 : index
    %20 = vector.load %arg3[%c2_14, %c0_15] : memref<16x32xf32, #tpu.memory_space<vmem>>, vector<1x32xf32>
    tpu.vector_store %arg3[%c2_14, %c0_15], %19 {strides = array<i32>} : memref<16x32xf32, #tpu.memory_space<vmem>>, vector<1x32xf32>,
    %c3 = arith.constant 3 : index
    %21 = memref.load %arg0[%c3] : memref<16xi32, #tpu.memory_space<smem>>
    %c0_i32_16 = arith.constant 0 : i32
    %c127_i32_17 = arith.constant 127 : i32
    %22 = arith.maxsi %c0_i32_16, %21 : i32
    %23 = arith.minsi %c127_i32_17, %22 : i32
    %c0_i32_18 = arith.constant 0 : i32
    %24 = arith.addi %c0_i32_18, %23 : i32
    %25 = arith.index_cast %24 : i32 to index
    %c0_19 = arith.constant 0 : index
    %26 = vector.load %arg1[%25, %c0_19] : memref<640x128xf32, #tpu.memory_space<vmem>>, vector<1x32xf32>
    %c3_20 = arith.constant 3 : index
    %c0_21 = arith.constant 0 : index
    %27 = vector.load %arg3[%c3_20, %c0_21] : memref<16x32xf32, #tpu.memory_space<vmem>>, vector<1x32xf32>
    tpu.vector_store %arg3[%c3_20, %c0_21], %26 {strides = array<i32>} : memref<16x32xf32, #tpu.memory_space<vmem>>, vector<1x32xf32>,
    %c4 = arith.constant 4 : index
    %28 = memref.load %arg0[%c4] : memref<16xi32, #tpu.memory_space<smem>>
    %c0_i32_22 = arith.constant 0 : i32
    %c127_i32_23 = arith.constant 127 : i32
    %29 = arith.maxsi %c0_i32_22, %28 : i32
    %30 = arith.minsi %c127_i32_23, %29 : i32
    %c0_i32_24 = arith.constant 0 : i32
    %31 = arith.addi %c0_i32_24, %30 : i32
    %32 = arith.index_cast %31 : i32 to index
    %c0_25 = arith.constant 0 : index
    %33 = vector.load %arg1[%32, %c0_25] : memref<640x128xf32, #tpu.memory_space<vmem>>, vector<1x32xf32>
    %c4_26 = arith.constant 4 : index
    %c0_27 = arith.constant 0 : index
    %34 = vector.load %arg3[%c4_26, %c0_27] : memref<16x32xf32, #tpu.memory_space<vmem>>, vector<1x32xf32>
    tpu.vector_store %arg3[%c4_26, %c0_27], %33 {strides = array<i32>} : memref<16x32xf32, #tpu.memory_space<vmem>>, vector<1x32xf32>,
    %c5 = arith.constant 5 : index
    %35 = memref.load %arg0[%c5] : memref<16xi32, #tpu.memory_space<smem>>
    %c0_i32_28 = arith.constant 0 : i32
    %c127_i32_29 = arith.constant 127 : i32
    %36 = arith.maxsi %c0_i32_28, %35 : i32
    %37 = arith.minsi %c127_i32_29, %36 : i32
    %c0_i32_30 = arith.constant 0 : i32
    %38 = arith.addi %c0_i32_30, %37 : i32
    %39 = arith.index_cast %38 : i32 to index
    %c0_31 = arith.constant 0 : index
    %40 = vector.load %arg1[%39, %c0_31] : memref<640x128xf32, #tpu.memory_space<vmem>>, vector<1x32xf32>
    %c5_32 = arith.constant 5 : index
    %c0_33 = arith.constant 0 : index
    %41 = vector.load %arg3[%c5_32, %c0_33] : memref<16x32xf32, #tpu.memory_space<vmem>>, vector<1x32xf32>
    tpu.vector_store %arg3[%c5_32, %c0_33], %40 {strides = array<i32>} : memref<16x32xf32, #tpu.memory_space<vmem>>, vector<1x32xf32>,
    %c6 = arith.constant 6 : index
    %42 = memref.load %arg0[%c6] : memref<16xi32, #tpu.memory_space<smem>>
    %c0_i32_34 = arith.constant 0 : i32
    %c127_i32_35 = arith.constant 127 : i32
    %43 = arith.maxsi %c0_i32_34, %42 : i32
    %44 = arith.minsi %c127_i32_35, %43 : i32
    %c0_i32_36 = arith.constant 0 : i32
    %45 = arith.addi %c0_i32_36, %44 : i32
    %46 = arith.index_cast %45 : i32 to index
    %c0_37 = arith.constant 0 : index
    %47 = vector.load %arg1[%46, %c0_37] : memref<640x128xf32, #tpu.memory_space<vmem>>, vector<1x32xf32>
    %c6_38 = arith.constant 6 : index
    %c0_39 = arith.constant 0 : index
    %48 = vector.load %arg3[%c6_38, %c0_39] : memref<16x32xf32, #tpu.memory_space<vmem>>, vector<1x32xf32>
    tpu.vector_store %arg3[%c6_38, %c0_39], %47 {strides = array<i32>} : memref<16x32xf32, #tpu.memory_space<vmem>>, vector<1x32xf32>,
    %c7 = arith.constant 7 : index
    %49 = memref.load %arg0[%c7] : memref<16xi32, #tpu.memory_space<smem>>
    %c0_i32_40 = arith.constant 0 : i32
    %c127_i32_41 = arith.constant 127 : i32
    %50 = arith.maxsi %c0_i32_40, %49 : i32
    %51 = arith.minsi %c127_i32_41, %50 : i32
    %c0_i32_42 = arith.constant 0 : i32
    %52 = arith.addi %c0_i32_42, %51 : i32
    %53 = arith.index_cast %52 : i32 to index
    %c0_43 = arith.constant 0 : index
    %54 = vector.load %arg1[%53, %c0_43] : memref<640x128xf32, #tpu.memory_space<vmem>>, vector<1x32xf32>
    %c7_44 = arith.constant 7 : index
    %c0_45 = arith.constant 0 : index
    %55 = vector.load %arg3[%c7_44, %c0_45] : memref<16x32xf32, #tpu.memory_space<vmem>>, vector<1x32xf32>
    tpu.vector_store %arg3[%c7_44, %c0_45], %54 {strides = array<i32>} : memref<16x32xf32, #tpu.memory_space<vmem>>, vector<1x32xf32>,
    %c8 = arith.constant 8 : index
    %56 = memref.load %arg0[%c8] : memref<16xi32, #tpu.memory_space<smem>>
    %c0_i32_46 = arith.constant 0 : i32
    %c127_i32_47 = arith.constant 127 : i32
    %57 = arith.maxsi %c0_i32_46, %56 : i32
    %58 = arith.minsi %c127_i32_47, %57 : i32
    %c0_i32_48 = arith.constant 0 : i32
    %59 = arith.addi %c0_i32_48, %58 : i32
    %60 = arith.index_cast %59 : i32 to index
    %c0_49 = arith.constant 0 : index
    %61 = vector.load %arg1[%60, %c0_49] : memref<640x128xf32, #tpu.memory_space<vmem>>, vector<1x32xf32>
    %c8_50 = arith.constant 8 : index
    %c0_51 = arith.constant 0 : index
    %62 = vector.load %arg3[%c8_50, %c0_51] : memref<16x32xf32, #tpu.memory_space<vmem>>, vector<1x32xf32>
    tpu.vector_store %arg3[%c8_50, %c0_51], %61 {strides = array<i32>} : memref<16x32xf32, #tpu.memory_space<vmem>>, vector<1x32xf32>,
    %c9 = arith.constant 9 : index
    %63 = memref.load %arg0[%c9] : memref<16xi32, #tpu.memory_space<smem>>
    %c0_i32_52 = arith.constant 0 : i32
    %c127_i32_53 = arith.constant 127 : i32
    %64 = arith.maxsi %c0_i32_52, %63 : i32
    %65 = arith.minsi %c127_i32_53, %64 : i32
    %c0_i32_54 = arith.constant 0 : i32
    %66 = arith.addi %c0_i32_54, %65 : i32
    %67 = arith.index_cast %66 : i32 to index
    %c0_55 = arith.constant 0 : index
    %68 = vector.load %arg1[%67, %c0_55] : memref<640x128xf32, #tpu.memory_space<vmem>>, vector<1x32xf32>
    %c9_56 = arith.constant 9 : index
    %c0_57 = arith.constant 0 : index
    %69 = vector.load %arg3[%c9_56, %c0_57] : memref<16x32xf32, #tpu.memory_space<vmem>>, vector<1x32xf32>
    tpu.vector_store %arg3[%c9_56, %c0_57], %68 {strides = array<i32>} : memref<16x32xf32, #tpu.memory_space<vmem>>, vector<1x32xf32>,
    %c10 = arith.constant 10 : index
    %70 = memref.load %arg0[%c10] : memref<16xi32, #tpu.memory_space<smem>>
    %c0_i32_58 = arith.constant 0 : i32
    %c127_i32_59 = arith.constant 127 : i32
    %71 = arith.maxsi %c0_i32_58, %70 : i32
    %72 = arith.minsi %c127_i32_59, %71 : i32
    %c0_i32_60 = arith.constant 0 : i32
    %73 = arith.addi %c0_i32_60, %72 : i32
    %74 = arith.index_cast %73 : i32 to index
    %c0_61 = arith.constant 0 : index
    %75 = vector.load %arg1[%74, %c0_61] : memref<640x128xf32, #tpu.memory_space<vmem>>, vector<1x32xf32>
    %c10_62 = arith.constant 10 : index
    %c0_63 = arith.constant 0 : index
    %76 = vector.load %arg3[%c10_62, %c0_63] : memref<16x32xf32, #tpu.memory_space<vmem>>, vector<1x32xf32>
    tpu.vector_store %arg3[%c10_62, %c0_63], %75 {strides = array<i32>} : memref<16x32xf32, #tpu.memory_space<vmem>>, vector<1x32xf32>,
    %c11 = arith.constant 11 : index
    %77 = memref.load %arg0[%c11] : memref<16xi32, #tpu.memory_space<smem>>
    %c0_i32_64 = arith.constant 0 : i32
    %c127_i32_65 = arith.constant 127 : i32
    %78 = arith.maxsi %c0_i32_64, %77 : i32
    %79 = arith.minsi %c127_i32_65, %78 : i32
    %c0_i32_66 = arith.constant 0 : i32
    %80 = arith.addi %c0_i32_66, %79 : i32
    %81 = arith.index_cast %80 : i32 to index
    %c0_67 = arith.constant 0 : index
    %82 = vector.load %arg1[%81, %c0_67] : memref<640x128xf32, #tpu.memory_space<vmem>>, vector<1x32xf32>
    %c11_68 = arith.constant 11 : index
    %c0_69 = arith.constant 0 : index
    %83 = vector.load %arg3[%c11_68, %c0_69] : memref<16x32xf32, #tpu.memory_space<vmem>>, vector<1x32xf32>
    tpu.vector_store %arg3[%c11_68, %c0_69], %82 {strides = array<i32>} : memref<16x32xf32, #tpu.memory_space<vmem>>, vector<1x32xf32>,
    %c12 = arith.constant 12 : index
    %84 = memref.load %arg0[%c12] : memref<16xi32, #tpu.memory_space<smem>>
    %c0_i32_70 = arith.constant 0 : i32
    %c127_i32_71 = arith.constant 127 : i32
    %85 = arith.maxsi %c0_i32_70, %84 : i32
    %86 = arith.minsi %c127_i32_71, %85 : i32
    %c0_i32_72 = arith.constant 0 : i32
    %87 = arith.addi %c0_i32_72, %86 : i32
    %88 = arith.index_cast %87 : i32 to index
    %c0_73 = arith.constant 0 : index
    %89 = vector.load %arg1[%88, %c0_73] : memref<640x128xf32, #tpu.memory_space<vmem>>, vector<1x32xf32>
    %c12_74 = arith.constant 12 : index
    %c0_75 = arith.constant 0 : index
    %90 = vector.load %arg3[%c12_74, %c0_75] : memref<16x32xf32, #tpu.memory_space<vmem>>, vector<1x32xf32>
    tpu.vector_store %arg3[%c12_74, %c0_75], %89 {strides = array<i32>} : memref<16x32xf32, #tpu.memory_space<vmem>>, vector<1x32xf32>,
    %c13 = arith.constant 13 : index
    %91 = memref.load %arg0[%c13] : memref<16xi32, #tpu.memory_space<smem>>
    %c0_i32_76 = arith.constant 0 : i32
    %c127_i32_77 = arith.constant 127 : i32
    %92 = arith.maxsi %c0_i32_76, %91 : i32
    %93 = arith.minsi %c127_i32_77, %92 : i32
    %c0_i32_78 = arith.constant 0 : i32
    %94 = arith.addi %c0_i32_78, %93 : i32
    %95 = arith.index_cast %94 : i32 to index
    %c0_79 = arith.constant 0 : index
    %96 = vector.load %arg1[%95, %c0_79] : memref<640x128xf32, #tpu.memory_space<vmem>>, vector<1x32xf32>
    %c13_80 = arith.constant 13 : index
    %c0_81 = arith.constant 0 : index
    %97 = vector.load %arg3[%c13_80, %c0_81] : memref<16x32xf32, #tpu.memory_space<vmem>>, vector<1x32xf32>
    tpu.vector_store %arg3[%c13_80, %c0_81], %96 {strides = array<i32>} : memref<16x32xf32, #tpu.memory_space<vmem>>, vector<1x32xf32>,
    %c14 = arith.constant 14 : index
    %98 = memref.load %arg0[%c14] : memref<16xi32, #tpu.memory_space<smem>>
    %c0_i32_82 = arith.constant 0 : i32
    %c127_i32_83 = arith.constant 127 : i32
    %99 = arith.maxsi %c0_i32_82, %98 : i32
    %100 = arith.minsi %c127_i32_83, %99 : i32
    %c0_i32_84 = arith.constant 0 : i32
    %101 = arith.addi %c0_i32_84, %100 : i32
    %102 = arith.index_cast %101 : i32 to index
    %c0_85 = arith.constant 0 : index
    %103 = vector.load %arg1[%102, %c0_85] : memref<640x128xf32, #tpu.memory_space<vmem>>, vector<1x32xf32>
    %c14_86 = arith.constant 14 : index
    %c0_87 = arith.constant 0 : index
    %104 = vector.load %arg3[%c14_86, %c0_87] : memref<16x32xf32, #tpu.memory_space<vmem>>, vector<1x32xf32>
    tpu.vector_store %arg3[%c14_86, %c0_87], %103 {strides = array<i32>} : memref<16x32xf32, #tpu.memory_space<vmem>>, vector<1x32xf32>,
    %c15 = arith.constant 15 : index
    %105 = memref.load %arg0[%c15] : memref<16xi32, #tpu.memory_space<smem>>
    %c0_i32_88 = arith.constant 0 : i32
    %c127_i32_89 = arith.constant 127 : i32
    %106 = arith.maxsi %c0_i32_88, %105 : i32
    %107 = arith.minsi %c127_i32_89, %106 : i32
    %c0_i32_90 = arith.constant 0 : i32
    %108 = arith.addi %c0_i32_90, %107 : i32
    %109 = arith.index_cast %108 : i32 to index
    %c0_91 = arith.constant 0 : index
    %110 = vector.load %arg1[%109, %c0_91] : memref<640x128xf32, #tpu.memory_space<vmem>>, vector<1x32xf32>
    %c15_92 = arith.constant 15 : index
    %c0_93 = arith.constant 0 : index
    %111 = vector.load %arg3[%c15_92, %c0_93] : memref<16x32xf32, #tpu.memory_space<vmem>>, vector<1x32xf32>
    tpu.vector_store %arg3[%c15_92, %c0_93], %110 {strides = array<i32>} : memref<16x32xf32, #tpu.memory_space<vmem>>, vector<1x32xf32>,
    %c0_94 = arith.constant 0 : index
    %c0_95 = arith.constant 0 : index
    %112 = vector.load %arg3[%c0_94, %c0_95] : memref<16x32xf32, #tpu.memory_space<vmem>>, vector<16x32xf32>
    %c128 = arith.constant 128 : index
    %c0_96 = arith.constant 0 : index
    %113 = vector.load %arg1[%c128, %c0_96] : memref<640x128xf32, #tpu.memory_space<vmem>>, vector<32x32xf32>
    %c128_97 = arith.constant 128 : index
    %c32 = arith.constant 32 : index
    %114 = vector.load %arg1[%c128_97, %c32] : memref<640x128xf32, #tpu.memory_space<vmem>>, vector<32x32xf32>
    %c128_98 = arith.constant 128 : index
    %c64 = arith.constant 64 : index
    %115 = vector.load %arg1[%c128_98, %c64] : memref<640x128xf32, #tpu.memory_space<vmem>>, vector<32x32xf32>
    %c128_99 = arith.constant 128 : index
    %c96 = arith.constant 96 : index
    %116 = vector.load %arg1[%c128_99, %c96] : memref<640x128xf32, #tpu.memory_space<vmem>>, vector<32x32xf32>
    %cst = arith.constant dense<0.000000e+00> : vector<16x32xf32>
    %117 = tpu.matmul %112, %113, %cst {dimension_numbers = #tpu.dot_dimension_numbers<[1], [0], [0], [1], [0, 0, 1, 1], [], []>} : vector<16x32xf32>, vector<32x32xf32>, vector<16x32xf32> -> vector<16x32xf32>
    %cst_100 = arith.constant dense<0.000000e+00> : vector<16x32xf32>
    %118 = tpu.matmul %112, %114, %cst_100 {dimension_numbers = #tpu.dot_dimension_numbers<[1], [0], [0], [1], [0, 0, 1, 1], [], []>} : vector<16x32xf32>, vector<32x32xf32>, vector<16x32xf32> -> vector<16x32xf32>
    %cst_101 = arith.constant dense<0.000000e+00> : vector<16x32xf32>
    %119 = tpu.matmul %112, %115, %cst_101 {dimension_numbers = #tpu.dot_dimension_numbers<[1], [0], [0], [1], [0, 0, 1, 1], [], []>} : vector<16x32xf32>, vector<32x32xf32>, vector<16x32xf32> -> vector<16x32xf32>
    %120 = vector.shape_cast %117 : vector<16x32xf32> to vector<2x8x32xf32>
    %121 = vector.shape_cast %118 : vector<16x32xf32> to vector<2x8x32xf32>
    %122 = vector.shape_cast %119 : vector<16x32xf32> to vector<2x8x32xf32>
    "tpu.trace_start"() <{level = 10 : i32, message = "bsd,btd->bst"}> : () -> ()
    %cst_102 = arith.constant dense<0.000000e+00> : vector<2x8x8xf32>
    %123 = tpu.matmul %120, %121, %cst_102 {dimension_numbers = #tpu.dot_dimension_numbers<[2], [2], [1], [1], [0, 0, 0, 1, 1, 1], [0], [0]>} : vector<2x8x32xf32>, vector<2x8x32xf32>, vector<2x8x8xf32> -> vector<2x8x8xf32>
    "tpu.trace_stop"() : () -> ()
    %cst_103 = arith.constant 0.176776692 : f32
    %124 = vector.broadcast %cst_103 : f32 to vector<2x8x8xf32>
    %125 = arith.mulf %123, %124 : vector<2x8x8xf32>
    %cst_104 = arith.constant dense<0xFF800000> : vector<2x8xf32>
    %126 = vector.multi_reduction <maximumf>, %125, %cst_104 [2] : vector<2x8x8xf32> to vector<2x8xf32>
    %127 = vector.shape_cast %126 : vector<2x8xf32> to vector<2x8x1xf32>
    %128 = vector.broadcast %127 : vector<2x8x1xf32> to vector<2x8x8xf32>
    %129 = arith.subf %125, %128 : vector<2x8x8xf32>
    %130 = math.exp %129 : vector<2x8x8xf32>
    %cst_105 = arith.constant dense<0.000000e+00> : vector<2x8xf32>
    %131 = vector.multi_reduction <add>, %130, %cst_105 [2] : vector<2x8x8xf32> to vector<2x8xf32>
    %132 = vector.shape_cast %131 : vector<2x8xf32> to vector<2x8x1xf32>
    %133 = tpu.reciprocal %132 {approx = true} : vector<2x8x1xf32> -> vector<2x8x1xf32>
    %134 = vector.broadcast %133 : vector<2x8x1xf32> to vector<2x8x8xf32>
    %135 = arith.mulf %130, %134 : vector<2x8x8xf32>
    "tpu.trace_start"() <{level = 10 : i32, message = "bst,btd->bsd"}> : () -> ()
    %cst_106 = arith.constant dense<0.000000e+00> : vector<2x8x32xf32>
    %136 = tpu.matmul %135, %122, %cst_106 {dimension_numbers = #tpu.dot_dimension_numbers<[2], [1], [1], [2], [0, 0, 0, 1, 1, 2], [0], [0]>} : vector<2x8x8xf32>, vector<2x8x32xf32>, vector<2x8x32xf32> -> vector<2x8x32xf32>
    "tpu.trace_stop"() : () -> ()
    %137 = vector.shape_cast %136 : vector<2x8x32xf32> to vector<16x32xf32>
    %cst_107 = arith.constant dense<0.000000e+00> : vector<16x32xf32>
    %138 = tpu.matmul %137, %116, %cst_107 {dimension_numbers = #tpu.dot_dimension_numbers<[1], [0], [0], [1], [0, 0, 1, 1], [], []>} : vector<16x32xf32>, vector<32x32xf32>, vector<16x32xf32> -> vector<16x32xf32>
    %c160 = arith.constant 160 : index
    %c0_108 = arith.constant 0 : index
    %139 = vector.load %arg1[%c160, %c0_108] : memref<640x128xf32, #tpu.memory_space<vmem>>, vector<32x32xf32>
    %c160_109 = arith.constant 160 : index
    %c32_110 = arith.constant 32 : index
    %140 = vector.load %arg1[%c160_109, %c32_110] : memref<640x128xf32, #tpu.memory_space<vmem>>, vector<32x32xf32>
    %c160_111 = arith.constant 160 : index
    %c64_112 = arith.constant 64 : index
    %141 = vector.load %arg1[%c160_111, %c64_112] : memref<640x128xf32, #tpu.memory_space<vmem>>, vector<32x32xf32>
    %c160_113 = arith.constant 160 : index
    %c96_114 = arith.constant 96 : index
    %142 = vector.load %arg1[%c160_113, %c96_114] : memref<640x128xf32, #tpu.memory_space<vmem>>, vector<32x32xf32>
    %cst_115 = arith.constant dense<0.000000e+00> : vector<16x32xf32>
    %143 = tpu.matmul %112, %139, %cst_115 {dimension_numbers = #tpu.dot_dimension_numbers<[1], [0], [0], [1], [0, 0, 1, 1], [], []>} : vector<16x32xf32>, vector<32x32xf32>, vector<16x32xf32> -> vector<16x32xf32>
    %cst_116 = arith.constant dense<0.000000e+00> : vector<16x32xf32>
    %144 = tpu.matmul %112, %140, %cst_116 {dimension_numbers = #tpu.dot_dimension_numbers<[1], [0], [0], [1], [0, 0, 1, 1], [], []>} : vector<16x32xf32>, vector<32x32xf32>, vector<16x32xf32> -> vector<16x32xf32>
    %cst_117 = arith.constant dense<0.000000e+00> : vector<16x32xf32>
    %145 = tpu.matmul %112, %141, %cst_117 {dimension_numbers = #tpu.dot_dimension_numbers<[1], [0], [0], [1], [0, 0, 1, 1], [], []>} : vector<16x32xf32>, vector<32x32xf32>, vector<16x32xf32> -> vector<16x32xf32>
    %146 = vector.shape_cast %143 : vector<16x32xf32> to vector<2x8x32xf32>
    %147 = vector.shape_cast %144 : vector<16x32xf32> to vector<2x8x32xf32>
    %148 = vector.shape_cast %145 : vector<16x32xf32> to vector<2x8x32xf32>
    "tpu.trace_start"() <{level = 10 : i32, message = "bsd,btd->bst"}> : () -> ()
    %cst_118 = arith.constant dense<0.000000e+00> : vector<2x8x8xf32>
    %149 = tpu.matmul %146, %147, %cst_118 {dimension_numbers = #tpu.dot_dimension_numbers<[2], [2], [1], [1], [0, 0, 0, 1, 1, 1], [0], [0]>} : vector<2x8x32xf32>, vector<2x8x32xf32>, vector<2x8x8xf32> -> vector<2x8x8xf32>
    "tpu.trace_stop"() : () -> ()
    %cst_119 = arith.constant 0.176776692 : f32
    %150 = vector.broadcast %cst_119 : f32 to vector<2x8x8xf32>
    %151 = arith.mulf %149, %150 : vector<2x8x8xf32>
    %cst_120 = arith.constant dense<0xFF800000> : vector<2x8xf32>
    %152 = vector.multi_reduction <maximumf>, %151, %cst_120 [2] : vector<2x8x8xf32> to vector<2x8xf32>
    %153 = vector.shape_cast %152 : vector<2x8xf32> to vector<2x8x1xf32>
    %154 = vector.broadcast %153 : vector<2x8x1xf32> to vector<2x8x8xf32>
    %155 = arith.subf %151, %154 : vector<2x8x8xf32>
    %156 = math.exp %155 : vector<2x8x8xf32>
    %cst_121 = arith.constant dense<0.000000e+00> : vector<2x8xf32>
    %157 = vector.multi_reduction <add>, %156, %cst_121 [2] : vector<2x8x8xf32> to vector<2x8xf32>
    %158 = vector.shape_cast %157 : vector<2x8xf32> to vector<2x8x1xf32>
    %159 = tpu.reciprocal %158 {approx = true} : vector<2x8x1xf32> -> vector<2x8x1xf32>
    %160 = vector.broadcast %159 : vector<2x8x1xf32> to vector<2x8x8xf32>
    %161 = arith.mulf %156, %160 : vector<2x8x8xf32>
    "tpu.trace_start"() <{level = 10 : i32, message = "bst,btd->bsd"}> : () -> ()
    %cst_122 = arith.constant dense<0.000000e+00> : vector<2x8x32xf32>
    %162 = tpu.matmul %161, %148, %cst_122 {dimension_numbers = #tpu.dot_dimension_numbers<[2], [1], [1], [2], [0, 0, 0, 1, 1, 2], [0], [0]>} : vector<2x8x8xf32>, vector<2x8x32xf32>, vector<2x8x32xf32> -> vector<2x8x32xf32>
    "tpu.trace_stop"() : () -> ()
    %163 = vector.shape_cast %162 : vector<2x8x32xf32> to vector<16x32xf32>
    %cst_123 = arith.constant dense<0.000000e+00> : vector<16x32xf32>
    %164 = tpu.matmul %163, %142, %cst_123 {dimension_numbers = #tpu.dot_dimension_numbers<[1], [0], [0], [1], [0, 0, 1, 1], [], []>} : vector<16x32xf32>, vector<32x32xf32>, vector<16x32xf32> -> vector<16x32xf32>
    %165 = arith.addf %138, %164 : vector<16x32xf32>
    %c192 = arith.constant 192 : index
    %c0_124 = arith.constant 0 : index
    %166 = vector.load %arg1[%c192, %c0_124] : memref<640x128xf32, #tpu.memory_space<vmem>>, vector<32x32xf32>
    %c192_125 = arith.constant 192 : index
    %c32_126 = arith.constant 32 : index
    %167 = vector.load %arg1[%c192_125, %c32_126] : memref<640x128xf32, #tpu.memory_space<vmem>>, vector<32x32xf32>
    %c192_127 = arith.constant 192 : index
    %c64_128 = arith.constant 64 : index
    %168 = vector.load %arg1[%c192_127, %c64_128] : memref<640x128xf32, #tpu.memory_space<vmem>>, vector<32x32xf32>
    %c192_129 = arith.constant 192 : index
    %c96_130 = arith.constant 96 : index
    %169 = vector.load %arg1[%c192_129, %c96_130] : memref<640x128xf32, #tpu.memory_space<vmem>>, vector<32x32xf32>
    %cst_131 = arith.constant dense<0.000000e+00> : vector<16x32xf32>
    %170 = tpu.matmul %112, %166, %cst_131 {dimension_numbers = #tpu.dot_dimension_numbers<[1], [0], [0], [1], [0, 0, 1, 1], [], []>} : vector<16x32xf32>, vector<32x32xf32>, vector<16x32xf32> -> vector<16x32xf32>
    %cst_132 = arith.constant dense<0.000000e+00> : vector<16x32xf32>
    %171 = tpu.matmul %112, %167, %cst_132 {dimension_numbers = #tpu.dot_dimension_numbers<[1], [0], [0], [1], [0, 0, 1, 1], [], []>} : vector<16x32xf32>, vector<32x32xf32>, vector<16x32xf32> -> vector<16x32xf32>
    %cst_133 = arith.constant dense<0.000000e+00> : vector<16x32xf32>
    %172 = tpu.matmul %112, %168, %cst_133 {dimension_numbers = #tpu.dot_dimension_numbers<[1], [0], [0], [1], [0, 0, 1, 1], [], []>} : vector<16x32xf32>, vector<32x32xf32>, vector<16x32xf32> -> vector<16x32xf32>
    %173 = vector.shape_cast %170 : vector<16x32xf32> to vector<2x8x32xf32>
    %174 = vector.shape_cast %171 : vector<16x32xf32> to vector<2x8x32xf32>
    %175 = vector.shape_cast %172 : vector<16x32xf32> to vector<2x8x32xf32>
    "tpu.trace_start"() <{level = 10 : i32, message = "bsd,btd->bst"}> : () -> ()
    %cst_134 = arith.constant dense<0.000000e+00> : vector<2x8x8xf32>
    %176 = tpu.matmul %173, %174, %cst_134 {dimension_numbers = #tpu.dot_dimension_numbers<[2], [2], [1], [1], [0, 0, 0, 1, 1, 1], [0], [0]>} : vector<2x8x32xf32>, vector<2x8x32xf32>, vector<2x8x8xf32> -> vector<2x8x8xf32>
    "tpu.trace_stop"() : () -> ()
    %cst_135 = arith.constant 0.176776692 : f32
    %177 = vector.broadcast %cst_135 : f32 to vector<2x8x8xf32>
    %178 = arith.mulf %176, %177 : vector<2x8x8xf32>
    %cst_136 = arith.constant dense<0xFF800000> : vector<2x8xf32>
    %179 = vector.multi_reduction <maximumf>, %178, %cst_136 [2] : vector<2x8x8xf32> to vector<2x8xf32>
    %180 = vector.shape_cast %179 : vector<2x8xf32> to vector<2x8x1xf32>
    %181 = vector.broadcast %180 : vector<2x8x1xf32> to vector<2x8x8xf32>
    %182 = arith.subf %178, %181 : vector<2x8x8xf32>
    %183 = math.exp %182 : vector<2x8x8xf32>
    %cst_137 = arith.constant dense<0.000000e+00> : vector<2x8xf32>
    %184 = vector.multi_reduction <add>, %183, %cst_137 [2] : vector<2x8x8xf32> to vector<2x8xf32>
    %185 = vector.shape_cast %184 : vector<2x8xf32> to vector<2x8x1xf32>
    %186 = tpu.reciprocal %185 {approx = true} : vector<2x8x1xf32> -> vector<2x8x1xf32>
    %187 = vector.broadcast %186 : vector<2x8x1xf32> to vector<2x8x8xf32>
    %188 = arith.mulf %183, %187 : vector<2x8x8xf32>
    "tpu.trace_start"() <{level = 10 : i32, message = "bst,btd->bsd"}> : () -> ()
    %cst_138 = arith.constant dense<0.000000e+00> : vector<2x8x32xf32>
    %189 = tpu.matmul %188, %175, %cst_138 {dimension_numbers = #tpu.dot_dimension_numbers<[2], [1], [1], [2], [0, 0, 0, 1, 1, 2], [0], [0]>} : vector<2x8x8xf32>, vector<2x8x32xf32>, vector<2x8x32xf32> -> vector<2x8x32xf32>
    "tpu.trace_stop"() : () -> ()
    %190 = vector.shape_cast %189 : vector<2x8x32xf32> to vector<16x32xf32>
    %cst_139 = arith.constant dense<0.000000e+00> : vector<16x32xf32>
    %191 = tpu.matmul %190, %169, %cst_139 {dimension_numbers = #tpu.dot_dimension_numbers<[1], [0], [0], [1], [0, 0, 1, 1], [], []>} : vector<16x32xf32>, vector<32x32xf32>, vector<16x32xf32> -> vector<16x32xf32>
    %192 = arith.addf %165, %191 : vector<16x32xf32>
    %c224 = arith.constant 224 : index
    %c0_140 = arith.constant 0 : index
    %193 = vector.load %arg1[%c224, %c0_140] : memref<640x128xf32, #tpu.memory_space<vmem>>, vector<32x32xf32>
    %c224_141 = arith.constant 224 : index
    %c32_142 = arith.constant 32 : index
    %194 = vector.load %arg1[%c224_141, %c32_142] : memref<640x128xf32, #tpu.memory_space<vmem>>, vector<32x32xf32>
    %c224_143 = arith.constant 224 : index
    %c64_144 = arith.constant 64 : index
    %195 = vector.load %arg1[%c224_143, %c64_144] : memref<640x128xf32, #tpu.memory_space<vmem>>, vector<32x32xf32>
    %c224_145 = arith.constant 224 : index
    %c96_146 = arith.constant 96 : index
    %196 = vector.load %arg1[%c224_145, %c96_146] : memref<640x128xf32, #tpu.memory_space<vmem>>, vector<32x32xf32>
    %cst_147 = arith.constant dense<0.000000e+00> : vector<16x32xf32>
    %197 = tpu.matmul %112, %193, %cst_147 {dimension_numbers = #tpu.dot_dimension_numbers<[1], [0], [0], [1], [0, 0, 1, 1], [], []>} : vector<16x32xf32>, vector<32x32xf32>, vector<16x32xf32> -> vector<16x32xf32>
    %cst_148 = arith.constant dense<0.000000e+00> : vector<16x32xf32>
    %198 = tpu.matmul %112, %194, %cst_148 {dimension_numbers = #tpu.dot_dimension_numbers<[1], [0], [0], [1], [0, 0, 1, 1], [], []>} : vector<16x32xf32>, vector<32x32xf32>, vector<16x32xf32> -> vector<16x32xf32>
    %cst_149 = arith.constant dense<0.000000e+00> : vector<16x32xf32>
    %199 = tpu.matmul %112, %195, %cst_149 {dimension_numbers = #tpu.dot_dimension_numbers<[1], [0], [0], [1], [0, 0, 1, 1], [], []>} : vector<16x32xf32>, vector<32x32xf32>, vector<16x32xf32> -> vector<16x32xf32>
    %200 = vector.shape_cast %197 : vector<16x32xf32> to vector<2x8x32xf32>
    %201 = vector.shape_cast %198 : vector<16x32xf32> to vector<2x8x32xf32>
    %202 = vector.shape_cast %199 : vector<16x32xf32> to vector<2x8x32xf32>
    "tpu.trace_start"() <{level = 10 : i32, message = "bsd,btd->bst"}> : () -> ()
    %cst_150 = arith.constant dense<0.000000e+00> : vector<2x8x8xf32>
    %203 = tpu.matmul %200, %201, %cst_150 {dimension_numbers = #tpu.dot_dimension_numbers<[2], [2], [1], [1], [0, 0, 0, 1, 1, 1], [0], [0]>} : vector<2x8x32xf32>, vector<2x8x32xf32>, vector<2x8x8xf32> -> vector<2x8x8xf32>
    "tpu.trace_stop"() : () -> ()
    %cst_151 = arith.constant 0.176776692 : f32
    %204 = vector.broadcast %cst_151 : f32 to vector<2x8x8xf32>
    %205 = arith.mulf %203, %204 : vector<2x8x8xf32>
    %cst_152 = arith.constant dense<0xFF800000> : vector<2x8xf32>
    %206 = vector.multi_reduction <maximumf>, %205, %cst_152 [2] : vector<2x8x8xf32> to vector<2x8xf32>
    %207 = vector.shape_cast %206 : vector<2x8xf32> to vector<2x8x1xf32>
    %208 = vector.broadcast %207 : vector<2x8x1xf32> to vector<2x8x8xf32>
    %209 = arith.subf %205, %208 : vector<2x8x8xf32>
    %210 = math.exp %209 : vector<2x8x8xf32>
    %cst_153 = arith.constant dense<0.000000e+00> : vector<2x8xf32>
    %211 = vector.multi_reduction <add>, %210, %cst_153 [2] : vector<2x8x8xf32> to vector<2x8xf32>
    %212 = vector.shape_cast %211 : vector<2x8xf32> to vector<2x8x1xf32>
    %213 = tpu.reciprocal %212 {approx = true} : vector<2x8x1xf32> -> vector<2x8x1xf32>
    %214 = vector.broadcast %213 : vector<2x8x1xf32> to vector<2x8x8xf32>
    %215 = arith.mulf %210, %214 : vector<2x8x8xf32>
    "tpu.trace_start"() <{level = 10 : i32, message = "bst,btd->bsd"}> : () -> ()
    %cst_154 = arith.constant dense<0.000000e+00> : vector<2x8x32xf32>
    %216 = tpu.matmul %215, %202, %cst_154 {dimension_numbers = #tpu.dot_dimension_numbers<[2], [1], [1], [2], [0, 0, 0, 1, 1, 2], [0], [0]>} : vector<2x8x8xf32>, vector<2x8x32xf32>, vector<2x8x32xf32> -> vector<2x8x32xf32>
    "tpu.trace_stop"() : () -> ()
    %217 = vector.shape_cast %216 : vector<2x8x32xf32> to vector<16x32xf32>
    %cst_155 = arith.constant dense<0.000000e+00> : vector<16x32xf32>
    %218 = tpu.matmul %217, %196, %cst_155 {dimension_numbers = #tpu.dot_dimension_numbers<[1], [0], [0], [1], [0, 0, 1, 1], [], []>} : vector<16x32xf32>, vector<32x32xf32>, vector<16x32xf32> -> vector<16x32xf32>
    %219 = arith.addf %192, %218 : vector<16x32xf32>
    %c352 = arith.constant 352 : index
    %c0_156 = arith.constant 0 : index
    %220 = vector.load %arg1[%c352, %c0_156] : memref<640x128xf32, #tpu.memory_space<vmem>>, vector<1x32xf32>
    %c352_157 = arith.constant 352 : index
    %c32_158 = arith.constant 32 : index
    %221 = vector.load %arg1[%c352_157, %c32_158] : memref<640x128xf32, #tpu.memory_space<vmem>>, vector<1x32xf32>
    %c352_159 = arith.constant 352 : index
    %c64_160 = arith.constant 64 : index
    %222 = vector.load %arg1[%c352_159, %c64_160] : memref<640x128xf32, #tpu.memory_space<vmem>>, vector<1x32xf32>
    %c352_161 = arith.constant 352 : index
    %c96_162 = arith.constant 96 : index
    %223 = vector.load %arg1[%c352_161, %c96_162] : memref<640x128xf32, #tpu.memory_space<vmem>>, vector<1x32xf32>
    %c353 = arith.constant 353 : index
    %c0_163 = arith.constant 0 : index
    %224 = vector.load %arg1[%c353, %c0_163] : memref<640x128xf32, #tpu.memory_space<vmem>>, vector<1x64xf32>
    %c353_164 = arith.constant 353 : index
    %c64_165 = arith.constant 64 : index
    %225 = vector.load %arg1[%c353_164, %c64_165] : memref<640x128xf32, #tpu.memory_space<vmem>>, vector<1x32xf32>
    %226 = arith.addf %219, %112 : vector<16x32xf32>
    %cst_166 = arith.constant dense<0.000000e+00> : vector<16xf32>
    %227 = vector.multi_reduction <add>, %226, %cst_166 [1] : vector<16x32xf32> to vector<16xf32>
    %228 = vector.shape_cast %227 : vector<16xf32> to vector<16x1xf32>
    %cst_167 = arith.constant 3.200000e+01 : f32
    %229 = vector.broadcast %cst_167 : f32 to vector<16x1xf32>
    %230 = arith.divf %228, %229 : vector<16x1xf32>
    %231 = vector.broadcast %230 : vector<16x1xf32> to vector<16x32xf32>
    %232 = arith.subf %226, %231 : vector<16x32xf32>
    %233 = arith.mulf %232, %232 : vector<16x32xf32>
    %cst_168 = arith.constant dense<0.000000e+00> : vector<16xf32>
    %234 = vector.multi_reduction <add>, %233, %cst_168 [1] : vector<16x32xf32> to vector<16xf32>
    %235 = vector.shape_cast %234 : vector<16xf32> to vector<16x1xf32>
    %cst_169 = arith.constant 3.200000e+01 : f32
    %236 = vector.broadcast %cst_169 : f32 to vector<16x1xf32>
    %237 = arith.divf %235, %236 : vector<16x1xf32>
    %238 = vector.broadcast %230 : vector<16x1xf32> to vector<16x32xf32>
    %239 = arith.subf %226, %238 : vector<16x32xf32>
    %cst_170 = arith.constant 9.99999997E-7 : f32
    %240 = vector.broadcast %cst_170 : f32 to vector<16x1xf32>
    %241 = arith.addf %237, %240 : vector<16x1xf32>
    %242 = math.rsqrt %241 : vector<16x1xf32>
    %243 = vector.broadcast %242 : vector<16x1xf32> to vector<16x32xf32>
    %244 = arith.mulf %239, %243 : vector<16x32xf32>
    %245 = vector.broadcast %220 : vector<1x32xf32> to vector<16x32xf32>
    %246 = arith.mulf %244, %245 : vector<16x32xf32>
    %247 = vector.broadcast %221 : vector<1x32xf32> to vector<16x32xf32>
    %248 = arith.addf %246, %247 : vector<16x32xf32>
    %c256 = arith.constant 256 : index
    %c0_171 = arith.constant 0 : index
    %249 = vector.load %arg1[%c256, %c0_171] : memref<640x128xf32, #tpu.memory_space<vmem>>, vector<32x64xf32>
    %c288 = arith.constant 288 : index
    %c0_172 = arith.constant 0 : index
    %250 = vector.load %arg1[%c288, %c0_172] : memref<640x128xf32, #tpu.memory_space<vmem>>, vector<64x32xf32>
    %cst_173 = arith.constant dense<0.000000e+00> : vector<16x64xf32>
    %251 = tpu.matmul %248, %249, %cst_173 {dimension_numbers = #tpu.dot_dimension_numbers<[1], [0], [0], [1], [0, 0, 1, 1], [], []>} : vector<16x32xf32>, vector<32x64xf32>, vector<16x64xf32> -> vector<16x64xf32>
    %252 = vector.broadcast %224 : vector<1x64xf32> to vector<16x64xf32>
    %253 = arith.addf %251, %252 : vector<16x64xf32>
    %cst_174 = arith.constant 0.000000e+00 : f32
    %254 = vector.broadcast %cst_174 : f32 to vector<16x64xf32>
    %255 = arith.maximumf %253, %254 : vector<16x64xf32>
    %cst_175 = arith.constant dense<0.000000e+00> : vector<16x32xf32>
    %256 = tpu.matmul %255, %250, %cst_175 {dimension_numbers = #tpu.dot_dimension_numbers<[1], [0], [0], [1], [0, 0, 1, 1], [], []>} : vector<16x64xf32>, vector<64x32xf32>, vector<16x32xf32> -> vector<16x32xf32>
    %257 = vector.broadcast %225 : vector<1x32xf32> to vector<16x32xf32>
    %258 = arith.addf %256, %257 : vector<16x32xf32>
    %259 = arith.addf %258, %248 : vector<16x32xf32>
    %cst_176 = arith.constant dense<0.000000e+00> : vector<16xf32>
    %260 = vector.multi_reduction <add>, %259, %cst_176 [1] : vector<16x32xf32> to vector<16xf32>
    %261 = vector.shape_cast %260 : vector<16xf32> to vector<16x1xf32>
    %cst_177 = arith.constant 3.200000e+01 : f32
    %262 = vector.broadcast %cst_177 : f32 to vector<16x1xf32>
    %263 = arith.divf %261, %262 : vector<16x1xf32>
    %264 = vector.broadcast %263 : vector<16x1xf32> to vector<16x32xf32>
    %265 = arith.subf %259, %264 : vector<16x32xf32>
    %266 = arith.mulf %265, %265 : vector<16x32xf32>
    %cst_178 = arith.constant dense<0.000000e+00> : vector<16xf32>
    %267 = vector.multi_reduction <add>, %266, %cst_178 [1] : vector<16x32xf32> to vector<16xf32>
    %268 = vector.shape_cast %267 : vector<16xf32> to vector<16x1xf32>
    %cst_179 = arith.constant 3.200000e+01 : f32
    %269 = vector.broadcast %cst_179 : f32 to vector<16x1xf32>
    %270 = arith.divf %268, %269 : vector<16x1xf32>
    %271 = vector.broadcast %263 : vector<16x1xf32> to vector<16x32xf32>
    %272 = arith.subf %259, %271 : vector<16x32xf32>
    %cst_180 = arith.constant 9.99999997E-7 : f32
    %273 = vector.broadcast %cst_180 : f32 to vector<16x1xf32>
    %274 = arith.addf %270, %273 : vector<16x1xf32>
    %275 = math.rsqrt %274 : vector<16x1xf32>
    %276 = vector.broadcast %275 : vector<16x1xf32> to vector<16x32xf32>
    %277 = arith.mulf %272, %276 : vector<16x32xf32>
    %278 = vector.broadcast %222 : vector<1x32xf32> to vector<16x32xf32>
    %279 = arith.mulf %277, %278 : vector<16x32xf32>
    %280 = vector.broadcast %223 : vector<1x32xf32> to vector<16x32xf32>
    %281 = arith.addf %279, %280 : vector<16x32xf32>
    %c360 = arith.constant 360 : index
    %c0_181 = arith.constant 0 : index
    %282 = vector.load %arg1[%c360, %c0_181] : memref<640x128xf32, #tpu.memory_space<vmem>>, vector<32x32xf32>
    %c360_182 = arith.constant 360 : index
    %c32_183 = arith.constant 32 : index
    %283 = vector.load %arg1[%c360_182, %c32_183] : memref<640x128xf32, #tpu.memory_space<vmem>>, vector<32x32xf32>
    %c360_184 = arith.constant 360 : index
    %c64_185 = arith.constant 64 : index
    %284 = vector.load %arg1[%c360_184, %c64_185] : memref<640x128xf32, #tpu.memory_space<vmem>>, vector<32x32xf32>
    %c360_186 = arith.constant 360 : index
    %c96_187 = arith.constant 96 : index
    %285 = vector.load %arg1[%c360_186, %c96_187] : memref<640x128xf32, #tpu.memory_space<vmem>>, vector<32x32xf32>
    %cst_188 = arith.constant dense<0.000000e+00> : vector<16x32xf32>
    %286 = tpu.matmul %281, %282, %cst_188 {dimension_numbers = #tpu.dot_dimension_numbers<[1], [0], [0], [1], [0, 0, 1, 1], [], []>} : vector<16x32xf32>, vector<32x32xf32>, vector<16x32xf32> -> vector<16x32xf32>
    %cst_189 = arith.constant dense<0.000000e+00> : vector<16x32xf32>
    %287 = tpu.matmul %281, %283, %cst_189 {dimension_numbers = #tpu.dot_dimension_numbers<[1], [0], [0], [1], [0, 0, 1, 1], [], []>} : vector<16x32xf32>, vector<32x32xf32>, vector<16x32xf32> -> vector<16x32xf32>
    %cst_190 = arith.constant dense<0.000000e+00> : vector<16x32xf32>
    %288 = tpu.matmul %281, %284, %cst_190 {dimension_numbers = #tpu.dot_dimension_numbers<[1], [0], [0], [1], [0, 0, 1, 1], [], []>} : vector<16x32xf32>, vector<32x32xf32>, vector<16x32xf32> -> vector<16x32xf32>
    %289 = vector.shape_cast %286 : vector<16x32xf32> to vector<2x8x32xf32>
    %290 = vector.shape_cast %287 : vector<16x32xf32> to vector<2x8x32xf32>
    %291 = vector.shape_cast %288 : vector<16x32xf32> to vector<2x8x32xf32>
    "tpu.trace_start"() <{level = 10 : i32, message = "bsd,btd->bst"}> : () -> ()
    %cst_191 = arith.constant dense<0.000000e+00> : vector<2x8x8xf32>
    %292 = tpu.matmul %289, %290, %cst_191 {dimension_numbers = #tpu.dot_dimension_numbers<[2], [2], [1], [1], [0, 0, 0, 1, 1, 1], [0], [0]>} : vector<2x8x32xf32>, vector<2x8x32xf32>, vector<2x8x8xf32> -> vector<2x8x8xf32>
    "tpu.trace_stop"() : () -> ()
    %cst_192 = arith.constant 0.176776692 : f32
    %293 = vector.broadcast %cst_192 : f32 to vector<2x8x8xf32>
    %294 = arith.mulf %292, %293 : vector<2x8x8xf32>
    %cst_193 = arith.constant dense<0xFF800000> : vector<2x8xf32>
    %295 = vector.multi_reduction <maximumf>, %294, %cst_193 [2] : vector<2x8x8xf32> to vector<2x8xf32>
    %296 = vector.shape_cast %295 : vector<2x8xf32> to vector<2x8x1xf32>
    %297 = vector.broadcast %296 : vector<2x8x1xf32> to vector<2x8x8xf32>
    %298 = arith.subf %294, %297 : vector<2x8x8xf32>
    %299 = math.exp %298 : vector<2x8x8xf32>
    %cst_194 = arith.constant dense<0.000000e+00> : vector<2x8xf32>
    %300 = vector.multi_reduction <add>, %299, %cst_194 [2] : vector<2x8x8xf32> to vector<2x8xf32>
    %301 = vector.shape_cast %300 : vector<2x8xf32> to vector<2x8x1xf32>
    %302 = tpu.reciprocal %301 {approx = true} : vector<2x8x1xf32> -> vector<2x8x1xf32>
    %303 = vector.broadcast %302 : vector<2x8x1xf32> to vector<2x8x8xf32>
    %304 = arith.mulf %299, %303 : vector<2x8x8xf32>
    "tpu.trace_start"() <{level = 10 : i32, message = "bst,btd->bsd"}> : () -> ()
    %cst_195 = arith.constant dense<0.000000e+00> : vector<2x8x32xf32>
    %305 = tpu.matmul %304, %291, %cst_195 {dimension_numbers = #tpu.dot_dimension_numbers<[2], [1], [1], [2], [0, 0, 0, 1, 1, 2], [0], [0]>} : vector<2x8x8xf32>, vector<2x8x32xf32>, vector<2x8x32xf32> -> vector<2x8x32xf32>
    "tpu.trace_stop"() : () -> ()
    %306 = vector.shape_cast %305 : vector<2x8x32xf32> to vector<16x32xf32>
    %cst_196 = arith.constant dense<0.000000e+00> : vector<16x32xf32>
    %307 = tpu.matmul %306, %285, %cst_196 {dimension_numbers = #tpu.dot_dimension_numbers<[1], [0], [0], [1], [0, 0, 1, 1], [], []>} : vector<16x32xf32>, vector<32x32xf32>, vector<16x32xf32> -> vector<16x32xf32>
    %c392 = arith.constant 392 : index
    %c0_197 = arith.constant 0 : index
    %308 = vector.load %arg1[%c392, %c0_197] : memref<640x128xf32, #tpu.memory_space<vmem>>, vector<32x32xf32>
    %c392_198 = arith.constant 392 : index
    %c32_199 = arith.constant 32 : index
    %309 = vector.load %arg1[%c392_198, %c32_199] : memref<640x128xf32, #tpu.memory_space<vmem>>, vector<32x32xf32>
    %c392_200 = arith.constant 392 : index
    %c64_201 = arith.constant 64 : index
    %310 = vector.load %arg1[%c392_200, %c64_201] : memref<640x128xf32, #tpu.memory_space<vmem>>, vector<32x32xf32>
    %c392_202 = arith.constant 392 : index
    %c96_203 = arith.constant 96 : index
    %311 = vector.load %arg1[%c392_202, %c96_203] : memref<640x128xf32, #tpu.memory_space<vmem>>, vector<32x32xf32>
    %cst_204 = arith.constant dense<0.000000e+00> : vector<16x32xf32>
    %312 = tpu.matmul %281, %308, %cst_204 {dimension_numbers = #tpu.dot_dimension_numbers<[1], [0], [0], [1], [0, 0, 1, 1], [], []>} : vector<16x32xf32>, vector<32x32xf32>, vector<16x32xf32> -> vector<16x32xf32>
    %cst_205 = arith.constant dense<0.000000e+00> : vector<16x32xf32>
    %313 = tpu.matmul %281, %309, %cst_205 {dimension_numbers = #tpu.dot_dimension_numbers<[1], [0], [0], [1], [0, 0, 1, 1], [], []>} : vector<16x32xf32>, vector<32x32xf32>, vector<16x32xf32> -> vector<16x32xf32>
    %cst_206 = arith.constant dense<0.000000e+00> : vector<16x32xf32>
    %314 = tpu.matmul %281, %310, %cst_206 {dimension_numbers = #tpu.dot_dimension_numbers<[1], [0], [0], [1], [0, 0, 1, 1], [], []>} : vector<16x32xf32>, vector<32x32xf32>, vector<16x32xf32> -> vector<16x32xf32>
    %315 = vector.shape_cast %312 : vector<16x32xf32> to vector<2x8x32xf32>
    %316 = vector.shape_cast %313 : vector<16x32xf32> to vector<2x8x32xf32>
    %317 = vector.shape_cast %314 : vector<16x32xf32> to vector<2x8x32xf32>
    "tpu.trace_start"() <{level = 10 : i32, message = "bsd,btd->bst"}> : () -> ()
    %cst_207 = arith.constant dense<0.000000e+00> : vector<2x8x8xf32>
    %318 = tpu.matmul %315, %316, %cst_207 {dimension_numbers = #tpu.dot_dimension_numbers<[2], [2], [1], [1], [0, 0, 0, 1, 1, 1], [0], [0]>} : vector<2x8x32xf32>, vector<2x8x32xf32>, vector<2x8x8xf32> -> vector<2x8x8xf32>
    "tpu.trace_stop"() : () -> ()
    %cst_208 = arith.constant 0.176776692 : f32
    %319 = vector.broadcast %cst_208 : f32 to vector<2x8x8xf32>
    %320 = arith.mulf %318, %319 : vector<2x8x8xf32>
    %cst_209 = arith.constant dense<0xFF800000> : vector<2x8xf32>
    %321 = vector.multi_reduction <maximumf>, %320, %cst_209 [2] : vector<2x8x8xf32> to vector<2x8xf32>
    %322 = vector.shape_cast %321 : vector<2x8xf32> to vector<2x8x1xf32>
    %323 = vector.broadcast %322 : vector<2x8x1xf32> to vector<2x8x8xf32>
    %324 = arith.subf %320, %323 : vector<2x8x8xf32>
    %325 = math.exp %324 : vector<2x8x8xf32>
    %cst_210 = arith.constant dense<0.000000e+00> : vector<2x8xf32>
    %326 = vector.multi_reduction <add>, %325, %cst_210 [2] : vector<2x8x8xf32> to vector<2x8xf32>
    %327 = vector.shape_cast %326 : vector<2x8xf32> to vector<2x8x1xf32>
    %328 = tpu.reciprocal %327 {approx = true} : vector<2x8x1xf32> -> vector<2x8x1xf32>
    %329 = vector.broadcast %328 : vector<2x8x1xf32> to vector<2x8x8xf32>
    %330 = arith.mulf %325, %329 : vector<2x8x8xf32>
    "tpu.trace_start"() <{level = 10 : i32, message = "bst,btd->bsd"}> : () -> ()
    %cst_211 = arith.constant dense<0.000000e+00> : vector<2x8x32xf32>
    %331 = tpu.matmul %330, %317, %cst_211 {dimension_numbers = #tpu.dot_dimension_numbers<[2], [1], [1], [2], [0, 0, 0, 1, 1, 2], [0], [0]>} : vector<2x8x8xf32>, vector<2x8x32xf32>, vector<2x8x32xf32> -> vector<2x8x32xf32>
    "tpu.trace_stop"() : () -> ()
    %332 = vector.shape_cast %331 : vector<2x8x32xf32> to vector<16x32xf32>
    %cst_212 = arith.constant dense<0.000000e+00> : vector<16x32xf32>
    %333 = tpu.matmul %332, %311, %cst_212 {dimension_numbers = #tpu.dot_dimension_numbers<[1], [0], [0], [1], [0, 0, 1, 1], [], []>} : vector<16x32xf32>, vector<32x32xf32>, vector<16x32xf32> -> vector<16x32xf32>
    %334 = arith.addf %307, %333 : vector<16x32xf32>
    %c424 = arith.constant 424 : index
    %c0_213 = arith.constant 0 : index
    %335 = vector.load %arg1[%c424, %c0_213] : memref<640x128xf32, #tpu.memory_space<vmem>>, vector<32x32xf32>
    %c424_214 = arith.constant 424 : index
    %c32_215 = arith.constant 32 : index
    %336 = vector.load %arg1[%c424_214, %c32_215] : memref<640x128xf32, #tpu.memory_space<vmem>>, vector<32x32xf32>
    %c424_216 = arith.constant 424 : index
    %c64_217 = arith.constant 64 : index
    %337 = vector.load %arg1[%c424_216, %c64_217] : memref<640x128xf32, #tpu.memory_space<vmem>>, vector<32x32xf32>
    %c424_218 = arith.constant 424 : index
    %c96_219 = arith.constant 96 : index
    %338 = vector.load %arg1[%c424_218, %c96_219] : memref<640x128xf32, #tpu.memory_space<vmem>>, vector<32x32xf32>
    %cst_220 = arith.constant dense<0.000000e+00> : vector<16x32xf32>
    %339 = tpu.matmul %281, %335, %cst_220 {dimension_numbers = #tpu.dot_dimension_numbers<[1], [0], [0], [1], [0, 0, 1, 1], [], []>} : vector<16x32xf32>, vector<32x32xf32>, vector<16x32xf32> -> vector<16x32xf32>
    %cst_221 = arith.constant dense<0.000000e+00> : vector<16x32xf32>
    %340 = tpu.matmul %281, %336, %cst_221 {dimension_numbers = #tpu.dot_dimension_numbers<[1], [0], [0], [1], [0, 0, 1, 1], [], []>} : vector<16x32xf32>, vector<32x32xf32>, vector<16x32xf32> -> vector<16x32xf32>
    %cst_222 = arith.constant dense<0.000000e+00> : vector<16x32xf32>
    %341 = tpu.matmul %281, %337, %cst_222 {dimension_numbers = #tpu.dot_dimension_numbers<[1], [0], [0], [1], [0, 0, 1, 1], [], []>} : vector<16x32xf32>, vector<32x32xf32>, vector<16x32xf32> -> vector<16x32xf32>
    %342 = vector.shape_cast %339 : vector<16x32xf32> to vector<2x8x32xf32>
    %343 = vector.shape_cast %340 : vector<16x32xf32> to vector<2x8x32xf32>
    %344 = vector.shape_cast %341 : vector<16x32xf32> to vector<2x8x32xf32>
    "tpu.trace_start"() <{level = 10 : i32, message = "bsd,btd->bst"}> : () -> ()
    %cst_223 = arith.constant dense<0.000000e+00> : vector<2x8x8xf32>
    %345 = tpu.matmul %342, %343, %cst_223 {dimension_numbers = #tpu.dot_dimension_numbers<[2], [2], [1], [1], [0, 0, 0, 1, 1, 1], [0], [0]>} : vector<2x8x32xf32>, vector<2x8x32xf32>, vector<2x8x8xf32> -> vector<2x8x8xf32>
    "tpu.trace_stop"() : () -> ()
    %cst_224 = arith.constant 0.176776692 : f32
    %346 = vector.broadcast %cst_224 : f32 to vector<2x8x8xf32>
    %347 = arith.mulf %345, %346 : vector<2x8x8xf32>
    %cst_225 = arith.constant dense<0xFF800000> : vector<2x8xf32>
    %348 = vector.multi_reduction <maximumf>, %347, %cst_225 [2] : vector<2x8x8xf32> to vector<2x8xf32>
    %349 = vector.shape_cast %348 : vector<2x8xf32> to vector<2x8x1xf32>
    %350 = vector.broadcast %349 : vector<2x8x1xf32> to vector<2x8x8xf32>
    %351 = arith.subf %347, %350 : vector<2x8x8xf32>
    %352 = math.exp %351 : vector<2x8x8xf32>
    %cst_226 = arith.constant dense<0.000000e+00> : vector<2x8xf32>
    %353 = vector.multi_reduction <add>, %352, %cst_226 [2] : vector<2x8x8xf32> to vector<2x8xf32>
    %354 = vector.shape_cast %353 : vector<2x8xf32> to vector<2x8x1xf32>
    %355 = tpu.reciprocal %354 {approx = true} : vector<2x8x1xf32> -> vector<2x8x1xf32>
    %356 = vector.broadcast %355 : vector<2x8x1xf32> to vector<2x8x8xf32>
    %357 = arith.mulf %352, %356 : vector<2x8x8xf32>
    "tpu.trace_start"() <{level = 10 : i32, message = "bst,btd->bsd"}> : () -> ()
    %cst_227 = arith.constant dense<0.000000e+00> : vector<2x8x32xf32>
    %358 = tpu.matmul %357, %344, %cst_227 {dimension_numbers = #tpu.dot_dimension_numbers<[2], [1], [1], [2], [0, 0, 0, 1, 1, 2], [0], [0]>} : vector<2x8x8xf32>, vector<2x8x32xf32>, vector<2x8x32xf32> -> vector<2x8x32xf32>
    "tpu.trace_stop"() : () -> ()
    %359 = vector.shape_cast %358 : vector<2x8x32xf32> to vector<16x32xf32>
    %cst_228 = arith.constant dense<0.000000e+00> : vector<16x32xf32>
    %360 = tpu.matmul %359, %338, %cst_228 {dimension_numbers = #tpu.dot_dimension_numbers<[1], [0], [0], [1], [0, 0, 1, 1], [], []>} : vector<16x32xf32>, vector<32x32xf32>, vector<16x32xf32> -> vector<16x32xf32>
    %361 = arith.addf %334, %360 : vector<16x32xf32>
    %c456 = arith.constant 456 : index
    %c0_229 = arith.constant 0 : index
    %362 = vector.load %arg1[%c456, %c0_229] : memref<640x128xf32, #tpu.memory_space<vmem>>, vector<32x32xf32>
    %c456_230 = arith.constant 456 : index
    %c32_231 = arith.constant 32 : index
    %363 = vector.load %arg1[%c456_230, %c32_231] : memref<640x128xf32, #tpu.memory_space<vmem>>, vector<32x32xf32>
    %c456_232 = arith.constant 456 : index
    %c64_233 = arith.constant 64 : index
    %364 = vector.load %arg1[%c456_232, %c64_233] : memref<640x128xf32, #tpu.memory_space<vmem>>, vector<32x32xf32>
    %c456_234 = arith.constant 456 : index
    %c96_235 = arith.constant 96 : index
    %365 = vector.load %arg1[%c456_234, %c96_235] : memref<640x128xf32, #tpu.memory_space<vmem>>, vector<32x32xf32>
    %cst_236 = arith.constant dense<0.000000e+00> : vector<16x32xf32>
    %366 = tpu.matmul %281, %362, %cst_236 {dimension_numbers = #tpu.dot_dimension_numbers<[1], [0], [0], [1], [0, 0, 1, 1], [], []>} : vector<16x32xf32>, vector<32x32xf32>, vector<16x32xf32> -> vector<16x32xf32>
    %cst_237 = arith.constant dense<0.000000e+00> : vector<16x32xf32>
    %367 = tpu.matmul %281, %363, %cst_237 {dimension_numbers = #tpu.dot_dimension_numbers<[1], [0], [0], [1], [0, 0, 1, 1], [], []>} : vector<16x32xf32>, vector<32x32xf32>, vector<16x32xf32> -> vector<16x32xf32>
    %cst_238 = arith.constant dense<0.000000e+00> : vector<16x32xf32>
    %368 = tpu.matmul %281, %364, %cst_238 {dimension_numbers = #tpu.dot_dimension_numbers<[1], [0], [0], [1], [0, 0, 1, 1], [], []>} : vector<16x32xf32>, vector<32x32xf32>, vector<16x32xf32> -> vector<16x32xf32>
    %369 = vector.shape_cast %366 : vector<16x32xf32> to vector<2x8x32xf32>
    %370 = vector.shape_cast %367 : vector<16x32xf32> to vector<2x8x32xf32>
    %371 = vector.shape_cast %368 : vector<16x32xf32> to vector<2x8x32xf32>
    "tpu.trace_start"() <{level = 10 : i32, message = "bsd,btd->bst"}> : () -> ()
    %cst_239 = arith.constant dense<0.000000e+00> : vector<2x8x8xf32>
    %372 = tpu.matmul %369, %370, %cst_239 {dimension_numbers = #tpu.dot_dimension_numbers<[2], [2], [1], [1], [0, 0, 0, 1, 1, 1], [0], [0]>} : vector<2x8x32xf32>, vector<2x8x32xf32>, vector<2x8x8xf32> -> vector<2x8x8xf32>
    "tpu.trace_stop"() : () -> ()
    %cst_240 = arith.constant 0.176776692 : f32
    %373 = vector.broadcast %cst_240 : f32 to vector<2x8x8xf32>
    %374 = arith.mulf %372, %373 : vector<2x8x8xf32>
    %cst_241 = arith.constant dense<0xFF800000> : vector<2x8xf32>
    %375 = vector.multi_reduction <maximumf>, %374, %cst_241 [2] : vector<2x8x8xf32> to vector<2x8xf32>
    %376 = vector.shape_cast %375 : vector<2x8xf32> to vector<2x8x1xf32>
    %377 = vector.broadcast %376 : vector<2x8x1xf32> to vector<2x8x8xf32>
    %378 = arith.subf %374, %377 : vector<2x8x8xf32>
    %379 = math.exp %378 : vector<2x8x8xf32>
    %cst_242 = arith.constant dense<0.000000e+00> : vector<2x8xf32>
    %380 = vector.multi_reduction <add>, %379, %cst_242 [2] : vector<2x8x8xf32> to vector<2x8xf32>
    %381 = vector.shape_cast %380 : vector<2x8xf32> to vector<2x8x1xf32>
    %382 = tpu.reciprocal %381 {approx = true} : vector<2x8x1xf32> -> vector<2x8x1xf32>
    %383 = vector.broadcast %382 : vector<2x8x1xf32> to vector<2x8x8xf32>
    %384 = arith.mulf %379, %383 : vector<2x8x8xf32>
    "tpu.trace_start"() <{level = 10 : i32, message = "bst,btd->bsd"}> : () -> ()
    %cst_243 = arith.constant dense<0.000000e+00> : vector<2x8x32xf32>
    %385 = tpu.matmul %384, %371, %cst_243 {dimension_numbers = #tpu.dot_dimension_numbers<[2], [1], [1], [2], [0, 0, 0, 1, 1, 2], [0], [0]>} : vector<2x8x8xf32>, vector<2x8x32xf32>, vector<2x8x32xf32> -> vector<2x8x32xf32>
    "tpu.trace_stop"() : () -> ()
    %386 = vector.shape_cast %385 : vector<2x8x32xf32> to vector<16x32xf32>
    %cst_244 = arith.constant dense<0.000000e+00> : vector<16x32xf32>
    %387 = tpu.matmul %386, %365, %cst_244 {dimension_numbers = #tpu.dot_dimension_numbers<[1], [0], [0], [1], [0, 0, 1, 1], [], []>} : vector<16x32xf32>, vector<32x32xf32>, vector<16x32xf32> -> vector<16x32xf32>
    %388 = arith.addf %361, %387 : vector<16x32xf32>
    %c584 = arith.constant 584 : index
    %c0_245 = arith.constant 0 : index
    %389 = vector.load %arg1[%c584, %c0_245] : memref<640x128xf32, #tpu.memory_space<vmem>>, vector<1x32xf32>
    %c584_246 = arith.constant 584 : index
    %c32_247 = arith.constant 32 : index
    %390 = vector.load %arg1[%c584_246, %c32_247] : memref<640x128xf32, #tpu.memory_space<vmem>>, vector<1x32xf32>
    %c584_248 = arith.constant 584 : index
    %c64_249 = arith.constant 64 : index
    %391 = vector.load %arg1[%c584_248, %c64_249] : memref<640x128xf32, #tpu.memory_space<vmem>>, vector<1x32xf32>
    %c584_250 = arith.constant 584 : index
    %c96_251 = arith.constant 96 : index
    %392 = vector.load %arg1[%c584_250, %c96_251] : memref<640x128xf32, #tpu.memory_space<vmem>>, vector<1x32xf32>
    %c585 = arith.constant 585 : index
    %c0_252 = arith.constant 0 : index
    %393 = vector.load %arg1[%c585, %c0_252] : memref<640x128xf32, #tpu.memory_space<vmem>>, vector<1x64xf32>
    %c585_253 = arith.constant 585 : index
    %c64_254 = arith.constant 64 : index
    %394 = vector.load %arg1[%c585_253, %c64_254] : memref<640x128xf32, #tpu.memory_space<vmem>>, vector<1x32xf32>
    %395 = arith.addf %388, %281 : vector<16x32xf32>
    %cst_255 = arith.constant dense<0.000000e+00> : vector<16xf32>
    %396 = vector.multi_reduction <add>, %395, %cst_255 [1] : vector<16x32xf32> to vector<16xf32>
    %397 = vector.shape_cast %396 : vector<16xf32> to vector<16x1xf32>
    %cst_256 = arith.constant 3.200000e+01 : f32
    %398 = vector.broadcast %cst_256 : f32 to vector<16x1xf32>
    %399 = arith.divf %397, %398 : vector<16x1xf32>
    %400 = vector.broadcast %399 : vector<16x1xf32> to vector<16x32xf32>
    %401 = arith.subf %395, %400 : vector<16x32xf32>
    %402 = arith.mulf %401, %401 : vector<16x32xf32>
    %cst_257 = arith.constant dense<0.000000e+00> : vector<16xf32>
    %403 = vector.multi_reduction <add>, %402, %cst_257 [1] : vector<16x32xf32> to vector<16xf32>
    %404 = vector.shape_cast %403 : vector<16xf32> to vector<16x1xf32>
    %cst_258 = arith.constant 3.200000e+01 : f32
    %405 = vector.broadcast %cst_258 : f32 to vector<16x1xf32>
    %406 = arith.divf %404, %405 : vector<16x1xf32>
    %407 = vector.broadcast %399 : vector<16x1xf32> to vector<16x32xf32>
    %408 = arith.subf %395, %407 : vector<16x32xf32>
    %cst_259 = arith.constant 9.99999997E-7 : f32
    %409 = vector.broadcast %cst_259 : f32 to vector<16x1xf32>
    %410 = arith.addf %406, %409 : vector<16x1xf32>
    %411 = math.rsqrt %410 : vector<16x1xf32>
    %412 = vector.broadcast %411 : vector<16x1xf32> to vector<16x32xf32>
    %413 = arith.mulf %408, %412 : vector<16x32xf32>
    %414 = vector.broadcast %389 : vector<1x32xf32> to vector<16x32xf32>
    %415 = arith.mulf %413, %414 : vector<16x32xf32>
    %416 = vector.broadcast %390 : vector<1x32xf32> to vector<16x32xf32>
    %417 = arith.addf %415, %416 : vector<16x32xf32>
    %c488 = arith.constant 488 : index
    %c0_260 = arith.constant 0 : index
    %418 = vector.load %arg1[%c488, %c0_260] : memref<640x128xf32, #tpu.memory_space<vmem>>, vector<32x64xf32>
    %c520 = arith.constant 520 : index
    %c0_261 = arith.constant 0 : index
    %419 = vector.load %arg1[%c520, %c0_261] : memref<640x128xf32, #tpu.memory_space<vmem>>, vector<64x32xf32>
    %cst_262 = arith.constant dense<0.000000e+00> : vector<16x64xf32>
    %420 = tpu.matmul %417, %418, %cst_262 {dimension_numbers = #tpu.dot_dimension_numbers<[1], [0], [0], [1], [0, 0, 1, 1], [], []>} : vector<16x32xf32>, vector<32x64xf32>, vector<16x64xf32> -> vector<16x64xf32>
    %421 = vector.broadcast %393 : vector<1x64xf32> to vector<16x64xf32>
    %422 = arith.addf %420, %421 : vector<16x64xf32>
    %cst_263 = arith.constant 0.000000e+00 : f32
    %423 = vector.broadcast %cst_263 : f32 to vector<16x64xf32>
    %424 = arith.maximumf %422, %423 : vector<16x64xf32>
    %cst_264 = arith.constant dense<0.000000e+00> : vector<16x32xf32>
    %425 = tpu.matmul %424, %419, %cst_264 {dimension_numbers = #tpu.dot_dimension_numbers<[1], [0], [0], [1], [0, 0, 1, 1], [], []>} : vector<16x64xf32>, vector<64x32xf32>, vector<16x32xf32> -> vector<16x32xf32>
    %426 = vector.broadcast %394 : vector<1x32xf32> to vector<16x32xf32>
    %427 = arith.addf %425, %426 : vector<16x32xf32>
    %428 = arith.addf %427, %417 : vector<16x32xf32>
    %cst_265 = arith.constant dense<0.000000e+00> : vector<16xf32>
    %429 = vector.multi_reduction <add>, %428, %cst_265 [1] : vector<16x32xf32> to vector<16xf32>
    %430 = vector.shape_cast %429 : vector<16xf32> to vector<16x1xf32>
    %cst_266 = arith.constant 3.200000e+01 : f32
    %431 = vector.broadcast %cst_266 : f32 to vector<16x1xf32>
    %432 = arith.divf %430, %431 : vector<16x1xf32>
    %433 = vector.broadcast %432 : vector<16x1xf32> to vector<16x32xf32>
    %434 = arith.subf %428, %433 : vector<16x32xf32>
    %435 = arith.mulf %434, %434 : vector<16x32xf32>
    %cst_267 = arith.constant dense<0.000000e+00> : vector<16xf32>
    %436 = vector.multi_reduction <add>, %435, %cst_267 [1] : vector<16x32xf32> to vector<16xf32>
    %437 = vector.shape_cast %436 : vector<16xf32> to vector<16x1xf32>
    %cst_268 = arith.constant 3.200000e+01 : f32
    %438 = vector.broadcast %cst_268 : f32 to vector<16x1xf32>
    %439 = arith.divf %437, %438 : vector<16x1xf32>
    %440 = vector.broadcast %432 : vector<16x1xf32> to vector<16x32xf32>
    %441 = arith.subf %428, %440 : vector<16x32xf32>
    %cst_269 = arith.constant 9.99999997E-7 : f32
    %442 = vector.broadcast %cst_269 : f32 to vector<16x1xf32>
    %443 = arith.addf %439, %442 : vector<16x1xf32>
    %444 = math.rsqrt %443 : vector<16x1xf32>
    %445 = vector.broadcast %444 : vector<16x1xf32> to vector<16x32xf32>
    %446 = arith.mulf %441, %445 : vector<16x32xf32>
    %447 = vector.broadcast %391 : vector<1x32xf32> to vector<16x32xf32>
    %448 = arith.mulf %446, %447 : vector<16x32xf32>
    %449 = vector.broadcast %392 : vector<1x32xf32> to vector<16x32xf32>
    %450 = arith.addf %448, %449 : vector<16x32xf32>
    %c632 = arith.constant 632 : index
    %c0_270 = arith.constant 0 : index
    %451 = vector.load %arg1[%c632, %c0_270] : memref<640x128xf32, #tpu.memory_space<vmem>>, vector<8x16xf32>
    %cst_271 = arith.constant dense<0.000000e+00> : vector<8x32xf32>
    %452 = tpu.matmul %451, %450, %cst_271 {dimension_numbers = #tpu.dot_dimension_numbers<[1], [0], [0], [1], [0, 0, 1, 1], [], []>} : vector<8x16xf32>, vector<16x32xf32>, vector<8x32xf32> -> vector<8x32xf32>
    %c592 = arith.constant 592 : index
    %c0_272 = arith.constant 0 : index
    %453 = vector.load %arg1[%c592, %c0_272] : memref<640x128xf32, #tpu.memory_space<vmem>>, vector<32x128xf32>
    %c624 = arith.constant 624 : index
    %c0_273 = arith.constant 0 : index
    %454 = vector.load %arg1[%c624, %c0_273] : memref<640x128xf32, #tpu.memory_space<vmem>>, vector<1x128xf32>
    %cst_274 = arith.constant dense<0.000000e+00> : vector<8x128xf32>
    %455 = tpu.matmul %452, %453, %cst_274 {dimension_numbers = #tpu.dot_dimension_numbers<[1], [0], [0], [1], [0, 0, 1, 1], [], []>} : vector<8x32xf32>, vector<32x128xf32>, vector<8x128xf32> -> vector<8x128xf32>
    %456 = vector.broadcast %454 : vector<1x128xf32> to vector<8x128xf32>
    %457 = arith.addf %455, %456 : vector<8x128xf32>
    %c0_275 = arith.constant 0 : index
    %c0_276 = arith.constant 0 : index
    %458 = vector.load %arg2[%c0_275, %c0_276] : memref<8x128xf32, #tpu.memory_space<vmem>>, vector<8x128xf32>
    tpu.vector_store %arg2[%c0_275, %c0_276], %457 {strides = array<i32>} : memref<8x128xf32, #tpu.memory_space<vmem>>, vector<8x128xf32>,
    return
  }
}

</mosaic_0001>

<bundles_post_ra>
// kernel: tpu_custom_call.1
= control target key start
LH: loop header
LB: loop body
LE: loop exit
PB: predicated region body
PF: predicated region fallthrough
CT: control target
= control target key end

     0   :  { %7 = vsyncpa [#allocation6], 0  ;;  %s4004_s0 = inlined_call_operand.hbm [shape: s32[16], index: 0, kind: input, shape index: {}]   ;;  %s4005_s1 = inlined_call_operand.hbm [shape: f32[640,128], index: 1, kind: input, shape index: {}]   ;;  %s4006_s2 = inlined_call_operand.hbm [shape: f32[8,128], index: 2, kind: output, shape index: {}]  }
   0x1   :  { %8 = vsyncpa [#allocation4], 0 }
   0x2   :  { %9 = vsyncpa [#allocation5], 0  ;;  %s15_s11 = sshll.u32 %s4004_s0, 4  ;;  %s23_s14 = sshll.u32 %s4005_s1, 4  ;;  %s16_s11 = int_to_ptr.hbm [resolvable:$true] %s15_s11  ;;  %s24_s14 = int_to_ptr.hbm [resolvable:$true] %s23_s14 }
   0x3   :  { %s3438_s15 = smov [#allocation3]   ;;  %s3439_s16 = smov [#allocation7]  }
   0x4   :  { %18 = dma.hbm_to_smem %s16_s11, 16, %s3438_s15, [#allocation6]  }
   0x5   :  { %s25_s17 = sshll.u32 %s3439_s16, 4  ;;  %s3440_s18 = smov 128   ;;  %s26_s17 = int_to_ptr.vmem [resolvable:$true] %s25_s17 }
   0x6   :  { %s3441_s19 = smov 8  }
   0x7   :  { %31 = dma.hbm_to_vmem [thread:$0]  %s24_s14, 10240, %s26_s17, [#allocation4], %s3440_s18, %s3440_s18, %s3441_s19  }
   0x8   :  { %3432 = dma.done.wait [#allocation6], 16  }
   0x9   :  { %3433 = vsyncadd [#allocation6], 4294967280 }
   0xa   :  { %3434 = dma.done.wait [#allocation4], 10240  }
   0xb   :  { %3435 = vsyncadd [#allocation4], 4294957056 }
   0xc   :  { %40 = sfence }
   0xd   :  { %v174_v0 = vld [vmem:[#allocation7 + $0x90] sm:$0xff]  ;;  %v175_v1 = vld [vmem:[#allocation7 + $0x98] sm:$0xff]  ;;  %s3442_s0 = smov 96   ;;  %v172_v3 = vld [vmem:[#allocation7 + $0x80] sm:$0xff]  ;;  %s41_s1 = sld [smem:[#allocation3]]  ;;  %vm48_vm0 = vcmask 253952  }
   0xe   :  { %v3468_v2 = vpack.i.bf16 %v174_v0, %v175_v1  ;;  %195 = vmatpush.msra.mxu0 %v175_v1  ;;  %3032 = vmatpush.msra.mxu2 %v175_v1  ;;  %v173_v4 = vld [vmem:[#allocation7 + $0x88] sm:$0xff]  ;;  %s2788_s20 = sld [smem:[#allocation3 + $0x1]]  ;;  %vm176_vm1 = vcmask 261120   ;;  %v405_v30 = vld [vmem:[#allocation7 + $0xb0] sm:$0xff]  ;;  %v406_v31 = vld [vmem:[#allocation7 + $0xb8] sm:$0xff]  ;;  %vm334_vm2 = vcmask 64512  }
   0xf   :  { %v3472_v5 = vpack.i.bf16 %v172_v3, %v173_v4  ;;  %s2794_s21 = sld [smem:[#allocation3 + $0x2]]  ;;  %v3578_v32 = vpack.i.bf16 %v405_v30, %v406_v31  ;;  %v403_v33 = vld [vmem:[#allocation7 + $0xa0] sm:$0xff]  ;;  %v404_v34 = vld [vmem:[#allocation7 + $0xa8] sm:$0xff]  ;;  %vm1352_vm10 = vcmask 523264  }
  0x10   :  { %3046 = vrot.lane.b32.xlu0 %v3468_v2, %s3442_s0  ;;  %196 = vmatpush.msra.mxu0 %v174_v0  ;;  %s2800_s22 = sld [smem:[#allocation3 + $0x3]]  ;;  %v3584_v35 = vpack.i.bf16 %v403_v33, %v404_v34 }
  0x11   :  { %3033 = vmatpush.msra.mxu2 %v174_v0  ;;  %s2806_s23 = sld [smem:[#allocation3 + $0x4]]  ;;  %3066 = vrot.lane.b32.xlu2 %v3578_v32, %s3442_s0 }
  0x12   :  { %197 = vmatpush.msra.mxu0 %v173_v4  ;;  %s2812_s24 = sld [smem:[#allocation3 + $0x5]] }
  0x13   :  { %3034 = vmatpush.msra.mxu2 %v173_v4  ;;  %p42_p0 = scmp.gt.s32.totalorder %s41_s1, 0  ;;  %p2783_p1 = scmp.lt.s32.totalorder %s41_s1, 127 }
  0x14   :  { %198 = vmatpush.msra.mxu0 %v172_v3  ;;  %p51_p2 = scmp.gt.s32.totalorder %s2788_s20, 0  ;;  %p2789_p3 = scmp.lt.s32.totalorder %s2788_s20, 127 }
  0x15   :  { %3035 = vmatpush.msra.mxu2 %v172_v3  ;;  %s4008_s1 = smov (!%p42_p0, %s41_s1), 0  ;;  %p59_p4 = scmp.gt.s32.totalorder %s2794_s21, 0 }
  0x16   :  { %s4010_s20 = smov (!%p51_p2, %s2788_s20), 0  ;;  %s4012_s1 = smov (!%p2783_p1, %s4008_s1), 127 }
  0x17   :  { %p67_p5 = scmp.gt.s32.totalorder %s2800_s22, 0  ;;  %s4014_s20 = smov (!%p2789_p3, %s4010_s20), 127 }
  0x18   :  { %3051 = vrot.lane.b32.xlu0 %v3472_v5, %s3442_s0  ;;  %p2795_p6 = scmp.lt.s32.totalorder %s2794_s21, 127  ;;  %p75_p7 = scmp.gt.s32.totalorder %s2806_s23, 0 }
  0x19   :  { %s4016_s21 = smov (!%p59_p4, %s2794_s21), 0  ;;  %p2801_p8 = scmp.lt.s32.totalorder %s2800_s22, 127  ;;  %3071 = vrot.lane.b32.xlu2 %v3584_v35, %s3442_s0 }
  0x1a   :  { %s68_s25 = scalar_select %p67_p5, %s2800_s22, 0 }
  0x1b   :  { %s2818_s26 = sld [smem:[#allocation3 + $0x6]]  ;;  %p2807_p9 = scmp.lt.s32.totalorder %s2806_s23, 127 }
  0x1c   :  { %s76_s27 = scalar_select %p75_p7, %s2806_s23, 0 }
  0x1d   :  { %s2824_s28 = sld [smem:[#allocation3 + $0x7]]  ;;  %s4018_s21 = smov (!%p2795_p6, %s4016_s21), 127 }
  0x1e   :  { %s4020_s25 = smov (!%p2801_p8, %s68_s25), 127  ;;  %p83_p10 = scmp.gt.s32.totalorder %s2812_s24, 0 }
  0x1f   :  { %s4022_s27 = smov (!%p2807_p9, %s76_s27), 127  ;;  %s3486_s29 = sld [smem:[#allocation3 + $0x8]] }
  0x20   :  { %p2813_p11 = scmp.lt.s32.totalorder %s2812_s24, 127  ;;  %s4024_s24 = smov (!%p83_p10, %s2812_s24), 0 }
  0x21   :  { %p91_p12 = scmp.gt.s32.totalorder %s2818_s26, 0  ;;  %s2836_s30 = sld [smem:[#allocation3 + $0x9]] }
  0x22   :  { %p2819_p0 = scmp.lt.s32.totalorder %s2818_s26, 127  ;;  %s2842_s3 = sld [smem:[#allocation3 + $0xa]] }
  0x23   :  { %p99_p13 = scmp.gt.s32.totalorder %s2824_s28, 0  ;;  %s4026_s26 = smov (!%p91_p12, %s2818_s26), 0 }
  0x24   :  { %p2825_p1 = scmp.lt.s32.totalorder %s2824_s28, 127  ;;  %s2848_s4 = sld [smem:[#allocation3 + $0xb]] }
  0x25   :  { %s4028_s28 = smov (!%p99_p13, %s2824_s28), 0  ;;  %p107_p2 = scmp.gt.s32.totalorder %s3486_s29, 0 }
  0x26   :  { %s4030_s24 = smov (!%p2813_p11, %s4024_s24), 127  ;;  %s4032_s26 = smov (!%p2819_p0, %s4026_s26), 127 }
  0x27   :  { %s4034_s28 = smov (!%p2825_p1, %s4028_s28), 127  ;;  %p115_p3 = scmp.gt.s32.totalorder %s2836_s30, 0 }
  0x28   :  { %s108_s5 = scalar_select %p107_p2, %s3486_s29, 0 }
  0x29   :  { %p123_p4 = scmp.gt.s32.totalorder %s2842_s3, 0  ;;  %p2831_p6 = scmp.lt.s32.totalorder %s3486_s29, 127 }
  0x2a   :  { %p131_p5 = scmp.gt.s32.totalorder %s2848_s4, 0  ;;  %p2837_p7 = scmp.lt.s32.totalorder %s2836_s30, 127 }
  0x2b   :  { %s116_s6 = scalar_select %p115_p3, %s2836_s30, 0 }
  0x2c   :  { %s124_s7 = scalar_select %p123_p4, %s2842_s3, 0 }
  0x2d   :  { %s132_s8 = scalar_select %p131_p5, %s2848_s4, 0 }
  0x2e   :  { %s3497_s9 = sld [smem:[#allocation3 + $0xc]]  ;;  %p2843_p8 = scmp.lt.s32.totalorder %s2842_s3, 127 }
  0x2f   :  { %s3499_s10 = sld [smem:[#allocation3 + $0xd]]  ;;  %p2849_p9 = scmp.lt.s32.totalorder %s2848_s4, 127 }
  0x30   :  { %s3501_s11 = sld [smem:[#allocation3 + $0xe]]  ;;  %s4036_s5 = smov (!%p2831_p6, %s108_s5), 127 }
  0x31   :  { %s4038_s6 = smov (!%p2837_p7, %s116_s6), 127  ;;  %s4040_s7 = smov (!%p2843_p8, %s124_s7), 127 }
  0x32   :  { %s4042_s8 = smov (!%p2849_p9, %s132_s8), 127  ;;  %s3511_s12 = sld [smem:[#allocation3 + $0xf]] }
  0x33   :  { %s46_s16 = scalar_lea.vmem [#allocation7], %s4012_s1  ;;  %s55_s17 = scalar_lea.vmem [#allocation7], %s4014_s20 }
  0x34   :  { %p139_p10 = scmp.gt.s32.totalorder %s3497_s9, 0  ;;  %p2855_p13 = scmp.lt.s32.totalorder %s3497_s9, 127  ;;  %v47_v6 = vld [vmem:[%s46_s16] sm:$0x1] }
  0x35   :  { %p147_p11 = scmp.gt.s32.totalorder %s3499_s10, 0  ;;  %p2861_p1 = scmp.lt.s32.totalorder %s3499_s10, 127  ;;  %v56_v7 = vld [vmem:[%s55_s17] sm:$0x1]  ;;  %49 = vst.msk [vmem:[#allocation2] sm:$0x1] %vm48_vm0, %v47_v6 }
  0x36   :  { %p155_p12 = scmp.gt.s32.totalorder %s3501_s11, 0  ;;  %p2867_p2 = scmp.lt.s32.totalorder %s3501_s11, 127  ;;  %57 = vst.msk [vmem:[#allocation2 + $0x1] sm:$0x1] %vm48_vm0, %v56_v7  ;;  %v3612_v6 = vld [vmem:[#allocation7 + $0xd0] sm:$0xff]  ;;  %v3614_v7 = vld [vmem:[#allocation7 + $0xd8] sm:$0xff] }
  0x37   :  { %s140_s13 = scalar_select %p139_p10, %s3497_s9, 0 }
  0x38   :  { %s148_s14 = scalar_select %p147_p11, %s3499_s10, 0 }
  0x39   :  { %s3519_s15 = scalar_select %p155_p12, %s3501_s11, 0 }
  0x3a   :  { %p163_p0 = scmp.gt.s32.totalorder %s3511_s12, 0  ;;  %p2873_p3 = scmp.lt.s32.totalorder %s3511_s12, 127 }
  0x3b   :  { %s63_s18 = scalar_lea.vmem [#allocation7], %s4018_s21  ;;  %s71_s19 = scalar_lea.vmem [#allocation7], %s4020_s25 }
  0x3c   :  { %v64_v8 = vld [vmem:[%s63_s18] sm:$0x1]  ;;  %s79_s1 = scalar_lea.vmem [#allocation7], %s4022_s27  ;;  %s87_s22 = scalar_lea.vmem [#allocation7], %s4030_s24 }
  0x3d   :  { %v72_v9 = vld [vmem:[%s71_s19] sm:$0x1]  ;;  %s164_s20 = scalar_select %p163_p0, %s3511_s12, 0  ;;  %65 = vst.msk [vmem:[#allocation2 + $0x2] sm:$0x1] %vm48_vm0, %v64_v8  ;;  %v3618_v8 = vpack.i.bf16 %v3612_v6, %v3614_v7 }
  0x3e   :  { %v80_v10 = vld [vmem:[%s79_s1] sm:$0x1]  ;;  %s4044_s13 = smov (!%p2855_p13, %s140_s13), 127  ;;  %73 = vst.msk [vmem:[#allocation2 + $0x3] sm:$0x1] %vm48_vm0, %v72_v9  ;;  %s95_s21 = scalar_lea.vmem [#allocation7], %s4032_s26 }
  0x3f   :  { %v88_v11 = vld [vmem:[%s87_s22] sm:$0x1]  ;;  %s4046_s14 = smov (!%p2861_p1, %s148_s14), 127  ;;  %81 = vst.msk [vmem:[#allocation2 + $0x4] sm:$0x1] %vm48_vm0, %v80_v10  ;;  %s103_s23 = scalar_lea.vmem [#allocation7], %s4034_s28 }
  0x40   :  { %v96_v12 = vld [vmem:[%s95_s21] sm:$0x1]  ;;  %s4048_s15 = smov (!%p2867_p2, %s3519_s15), 127  ;;  %89 = vst.msk [vmem:[#allocation2 + $0x5] sm:$0x1] %vm48_vm0, %v88_v11  ;;  %s111_s24 = scalar_lea.vmem [#allocation7], %s4036_s5 }
  0x41   :  { %v104_v13 = vld [vmem:[%s103_s23] sm:$0x1]  ;;  %s4050_s20 = smov (!%p2873_p3, %s164_s20), 127  ;;  %97 = vst.msk [vmem:[#allocation2 + $0x6] sm:$0x1] %vm48_vm0, %v96_v12  ;;  %s119_s25 = scalar_lea.vmem [#allocation7], %s4038_s6 }
  0x42   :  { %v112_v14 = vld [vmem:[%s111_s24] sm:$0x1]  ;;  %105 = vst.msk [vmem:[#allocation2 + $0x7] sm:$0x1] %vm48_vm0, %v104_v13  ;;  %s127_s26 = scalar_lea.vmem [#allocation7], %s4040_s7  ;;  %s135_s27 = scalar_lea.vmem [#allocation7], %s4042_s8 }
  0x43   :  { %v120_v15 = vld [vmem:[%s119_s25] sm:$0x1]  ;;  %113 = vst.msk [vmem:[#allocation2 + $0x8] sm:$0x1] %vm48_vm0, %v112_v14  ;;  %s143_s28 = scalar_lea.vmem [#allocation7], %s4044_s13  ;;  %s151_s29 = scalar_lea.vmem [#allocation7], %s4046_s14 }
  0x44   :  { %v128_v16 = vld [vmem:[%s127_s26] sm:$0x1]  ;;  %121 = vst.msk [vmem:[#allocation2 + $0x9] sm:$0x1] %vm48_vm0, %v120_v15  ;;  %s159_s30 = scalar_lea.vmem [#allocation7], %s4048_s15  ;;  %s167_s3 = scalar_lea.vmem [#allocation7], %s4050_s20 }
  0x45   :  { %v136_v17 = vld [vmem:[%s135_s27] sm:$0x1]  ;;  %129 = vst.msk [vmem:[#allocation2 + $0xa] sm:$0x1] %vm48_vm0, %v128_v16  ;;  %s3443_s4 = smov 64   ;;  %s3444_s5 = smov 32  }
  0x46   :  { %v144_v18 = vld [vmem:[%s143_s28] sm:$0x1]  ;;  %137 = vst.msk [vmem:[#allocation2 + $0xb] sm:$0x1] %vm48_vm0, %v136_v17  ;;  %3056 = vrot.lane.b32.xlu1 %v3468_v2, %s3443_s4  ;;  %s2756_s9 = sshll.u32 %s4006_s2, 4  ;;  %s2757_s9 = int_to_ptr.hbm [resolvable:$true] %s2756_s9 }
  0x47   :  { %v152_v19 = vld [vmem:[%s151_s29] sm:$0x1]  ;;  %145 = vst.msk [vmem:[#allocation2 + $0xc] sm:$0x1] %vm48_vm0, %v144_v18 }
  0x48   :  { %v160_v20 = vld [vmem:[%s159_s30] sm:$0x1]  ;;  %153 = vst.msk [vmem:[#allocation2 + $0xd] sm:$0x1] %vm48_vm0, %v152_v19 }
  0x49   :  { %v168_v21 = vld [vmem:[%s167_s3] sm:$0x1]  ;;  %161 = vst.msk [vmem:[#allocation2 + $0xe] sm:$0x1] %vm48_vm0, %v160_v20 }
  0x4a   :  { %v3564_v22 = vld [vmem:[#allocation2] sm:$0xff]  ;;  %169 = vst.msk [vmem:[#allocation2 + $0xf] sm:$0x1] %vm48_vm0, %v168_v21 }
  0x4b   :  { %2878 = vmatmul.msk.f32.vlgmr.msra.gmra.mxu0 %vm176_vm1, %v3564_v22 }
  0x4e   :  { %3061 = vrot.lane.b32.xlu1 %v3472_v5, %s3443_s4 }
  0x51   :  { %v3570_v23 = vld [vmem:[#allocation2 + $0x8] sm:$0xff] }
  0x52   :  { %2879 = vmatmul.msk.f32.vlgmr.msra.gmra.mxu2 %vm176_vm1, %v3570_v23 }
  0x6b   :  { %v3067_v43 = vpop.permute.xlu2 %3066 }
  0x6c   :  { %v3068_v47 = vunpack.i.l.bf16 %v3067_v43  ;;  %v3069_v48 = vunpack.i.h.bf16 %v3067_v43 }
  0x73   :  { %v3072_v49 = vpop.permute.xlu2 %3071 }
  0x74   :  { %v3073_v50 = vunpack.i.l.bf16 %v3072_v49  ;;  %v3074_v51 = vunpack.i.h.bf16 %v3072_v49 }
  0x82   :  { %v3047_v24 = vpop.permute.xlu0 %3046 }
  0x83   :  { %v3048_v25 = vunpack.i.l.bf16 %v3047_v24  ;;  %v3049_v26 = vunpack.i.h.bf16 %v3047_v24 }
  0x85   :  { %234 = vmatpush.msra.mxu1 %v3048_v25 }
  0x87   :  { %235 = vmatpush.msra.mxu1 %v3049_v26 }
  0x8a   :  { %v3052_v27 = vpop.permute.xlu0 %3051 }
  0x8b   :  { %v3053_v28 = vunpack.i.l.bf16 %v3052_v27  ;;  %v3054_v29 = vunpack.i.h.bf16 %v3052_v27 }
  0x8d   :  { %236 = vmatpush.msra.mxu1 %v3053_v28 }
  0x8f   :  { %237 = vmatpush.msra.mxu1 %v3054_v29 }
  0x90   :  { %2880 = vmatmul.msk.f32.vlgmr.msra.gmra.mxu1 %vm176_vm1, %v3564_v22 }
  0x91   :  { %419 = vmatpush.msrb.mxu1 %v406_v31 }
  0x93   :  { %420 = vmatpush.msrb.mxu1 %v405_v30 }
  0x95   :  { %421 = vmatpush.msrb.mxu1 %v404_v34 }
  0x97   :  { %422 = vmatpush.msrb.mxu1 %v403_v33 }
  0x98   :  { %2881 = vmatmul.msk.f32.gmra.mxu1 %vm176_vm1, %v3570_v23 }
  0xa0   :  { %2890 = vmatmul.msk.f32.vlgmr.msrb.gmra.mxu1 %vm176_vm1, %v3564_v22 }
  0xa8   :  { %2891 = vmatmul.msk.f32.gmra.mxu1 %vm176_vm1, %v3570_v23 }
  0xb8   :  { %v3057_v40 = vpop.permute.xlu1 %3056 }
  0xb9   :  { %v3058_v41 = vunpack.i.l.bf16 %v3057_v40  ;;  %v3059_v42 = vunpack.i.h.bf16 %v3057_v40 }
  0xbb   :  { %269 = vmatpush.msrb.mxu2 %v3058_v41 }
  0xbd   :  { %270 = vmatpush.msrb.mxu2 %v3059_v42 }
  0xc0   :  { %v3062_v44 = vpop.permute.xlu1 %3061 }
  0xc1   :  { %v3063_v45 = vunpack.i.l.bf16 %v3062_v44  ;;  %v3064_v46 = vunpack.i.h.bf16 %v3062_v44 }
  0xc3   :  { %271 = vmatpush.msrb.mxu2 %v3063_v45 }
  0xc5   :  { %272 = vmatpush.msrb.mxu2 %v3064_v46 }
  0xc6   :  { %2882 = vmatmul.msk.f32.vlgmr.msrb.gmra.mxu2 %vm176_vm1, %v3564_v22 }
  0xc7   :  { %458 = vmatpush.msra.mxu2 %v3068_v47 }
  0xc8   :  { %v200_v37 = vpop.f32.mrf.mxu0 }
  0xc9   :  { %459 = vmatpush.msra.mxu2 %v3069_v48 }
  0xcb   :  { %460 = vmatpush.msra.mxu2 %v3073_v50 }
  0xcd   :  { %461 = vmatpush.msra.mxu2 %v3074_v51 }
  0xce   :  { %2883 = vmatmul.msk.f32.gmra.mxu2 %vm176_vm1, %v3570_v23 }
  0xd5   :  { %v203_v39 = vpop.f32.mrf.mxu2 }
  0xd6   :  { %2892 = vmatmul.msk.f32.vlgmr.msra.gmra.mxu2 %vm176_vm1, %v3564_v22 }
  0xde   :  { %2893 = vmatmul.msk.f32.gmra.mxu2 %vm176_vm1, %v3570_v23 }
 0x10d   :  { %v239_v36 = vpop.f32.mrf.mxu1 }
 0x10e   :  { %2884 = vmatpush.xpose.msk.msra.mxu3 %vm176_vm1, %v239_v36 }
 0x111   :  { %2885 = vmatmul.msk.f32.vlgmr.msra.gmra.mxu3 %vm176_vm1, %v200_v37 }
 0x115   :  { %v242_v38 = vpop.f32.mrf.mxu1 }
 0x116   :  { %2886 = vmatpush.xpose.msk.msrb.mxu3 %vm176_vm1, %v242_v38 }
 0x119   :  { %2887 = vmatmul.msk.f32.vlgmr.msrb.gmra.mxu3 %vm176_vm1, %v203_v39 }
 0x149   :  { %v274_v9 = vpop.f32.mrf.mxu2 }
 0x14a   :  { %375 = vmatpush.msra.mxu3 %v274_v9 }
 0x151   :  { %v277_v10 = vpop.f32.mrf.mxu2 }
 0x152   :  { %398 = vmatpush.msrb.mxu0 %v277_v10 }
 0x159   :  { %v463_v11 = vpop.f32.mrf.mxu2 }
 0x15a   :  { %2896 = vmatpush.xpose.msk.msra.mxu0 %vm176_vm1, %v463_v11 }
 0x161   :  { %v466_v18 = vpop.f32.mrf.mxu2 }
 0x194   :  { %v303_v52 = vpop.f32.mrf.mxu3 }
 0x195   :  { %v332_v53 = vmul.f32 0.17677669, %v303_v52 }
 0x197   :  { %v335_v54 = vsel %vm334_vm2, %v332_v53, -inf }
 0x198   :  { %336 = vmax.xlane.f32.xlu2 %v335_v54  ;;  %v708_v54 = vld [vmem:[#allocation7 + $0xc0] sm:$0xff] }
 0x19c   :  { %v329_v55 = vpop.f32.mrf.mxu3 }
 0x19d   :  { %v333_v56 = vmul.f32 0.17677669, %v329_v55  ;;  %v709_v55 = vld [vmem:[#allocation7 + $0xc8] sm:$0xff] }
 0x19f   :  { %v338_v57 = vsel %vm334_vm2, %v333_v56, -inf }
 0x1a0   :  { %339 = vmax.xlane.f32.xlu0 %v338_v57 }
 0x1b4   :  { %3076 = vrot.lane.b32.xlu0 %v3578_v32, %s3443_s4 }
 0x20b   :  { %v337_v58 = vpop.xlane.xlu2 %336 }
 0x20c   :  { %v341_v59 = vsub.f32 %v332_v53, %v337_v58 }
 0x20e   :  { %v343_v60 = vmul.f32 1.442695, %v341_v59 }
 0x210   :  { %3290 = vpow2.f32 %v343_v60 }
 0x213   :  { %v340_v61 = vpop.xlane.xlu0 %339 }
 0x214   :  { %v342_v62 = vsub.f32 %v333_v56, %v340_v61  ;;  %v3646_v56 = vpack.i.bf16 %v708_v54, %v709_v55 }
 0x216   :  { %v3291_v63 = vpop.eup %3290  ;;  %v345_v0 = vmul.f32 1.442695, %v342_v62 }
 0x217   :  { %v347_v1 = vsel %vm334_vm2, %v3291_v63, 0.0 }
 0x218   :  { %3292 = vpow2.f32 %v345_v0  ;;  %348 = vadd.xlane.f32.xlu2 %v347_v1 }
 0x21e   :  { %v3293_v3 = vpop.eup %3292 }
 0x21f   :  { %v350_v4 = vsel %vm334_vm2, %v3293_v3, 0.0 }
 0x220   :  { %351 = vadd.xlane.f32.xlu1 %v350_v4 }
 0x226   :  { %v3077_v39 = vpop.permute.xlu0 %3076 }
 0x227   :  { %v3079_v40 = vunpack.i.h.bf16 %v3077_v39  ;;  %v3078_v41 = vunpack.i.l.bf16 %v3077_v39 }
 0x229   :  { %493 = vmatpush.msrb.mxu3 %v3078_v41 }
 0x22b   :  { %494 = vmatpush.msrb.mxu3 %v3079_v40 }
 0x239   :  { %3081 = vrot.lane.b32.xlu1 %v3584_v35, %s3443_s4 }
 0x241   :  { %3086 = vrot.lane.b32.xlu1 %v3618_v8, %s3442_s0 }
 0x249   :  { %3096 = vrot.lane.b32.xlu1 %v3468_v2, %s3444_s5  ;;  %v424_v2 = vpop.f32.mrf.mxu1 }
 0x251   :  { %3101 = vrot.lane.b32.xlu1 %v3472_v5, %s3444_s5  ;;  %v427_v5 = vpop.f32.mrf.mxu1 }
 0x259   :  { %3106 = vrot.lane.b32.xlu1 %v3578_v32, %s3444_s5 }
 0x261   :  { %3116 = vrot.lane.b32.xlu1 %v3618_v8, %s3443_s4 }
 0x28b   :  { %v349_v12 = vpop.xlane.xlu2 %348 }
 0x28c   :  { %3294 = vrcp.f32 %v349_v12 }
 0x292   :  { %v3295_v13 = vpop.eup %3294 }
 0x293   :  { %v355_v14 = vmul.f32 %v3295_v13, %v3291_v63  ;;  %v352_v15 = vpop.xlane.xlu1 %351 }
 0x294   :  { %3296 = vrcp.f32 %v352_v15 }
 0x295   :  { %2888 = vmatmul.msk.f32.vlgmr.msra.gmra.mxu3 %vm334_vm2, %v355_v14 }
 0x29a   :  { %v3297_v16 = vpop.eup %3296 }
 0x29b   :  { %v356_v17 = vmul.f32 %v3297_v16, %v3293_v3 }
 0x29d   :  { %2889 = vmatmul.msk.f32.vlgmr.msrb.gmra.mxu0 %vm334_vm2, %v356_v17 }
 0x29e   :  { %2898 = vmatpush.xpose.msk.msrb.mxu0 %vm176_vm1, %v466_v18 }
 0x2a5   :  { %2897 = vmatmul.msk.f32.vlgmr.msra.gmra.mxu0 %vm176_vm1, %v424_v2 }
 0x2ab   :  { %v3082_v19 = vpop.permute.xlu1 %3081 }
 0x2ac   :  { %v3083_v42 = vunpack.i.l.bf16 %v3082_v19  ;;  %v3084_v43 = vunpack.i.h.bf16 %v3082_v19 }
 0x2ad   :  { %2899 = vmatmul.msk.f32.vlgmr.msrb.gmra.mxu0 %vm176_vm1, %v427_v5 }
 0x2ae   :  { %495 = vmatpush.msrb.mxu3 %v3083_v42 }
 0x2b0   :  { %496 = vmatpush.msrb.mxu3 %v3084_v43 }
 0x2b1   :  { %2894 = vmatmul.msk.f32.vlgmr.msrb.gmra.mxu3 %vm176_vm1, %v3564_v22 }
 0x2b3   :  { %v3632_v20 = vpop.permute.xlu1 %3086 }
 0x2b4   :  { %v3088_v58 = vunpack.i.l.bf16 %v3632_v20  ;;  %v3089_v59 = vunpack.i.h.bf16 %v3632_v20 }
 0x2b9   :  { %2895 = vmatmul.msk.f32.gmra.mxu3 %vm176_vm1, %v3570_v23 }
 0x2bb   :  { %v3097_v21 = vpop.permute.xlu1 %3096 }
 0x2bc   :  { %v3099_v24 = vunpack.i.h.bf16 %v3097_v21  ;;  %v3098_v25 = vunpack.i.l.bf16 %v3097_v21 }
 0x2be   :  { %697 = vmatpush.msra.mxu0 %v3098_v25 }
 0x2c0   :  { %698 = vmatpush.msra.mxu0 %v3099_v24 }
 0x2c3   :  { %v3102_v26 = vpop.permute.xlu1 %3101 }
 0x2c4   :  { %v3104_v27 = vunpack.i.h.bf16 %v3102_v26  ;;  %v3103_v28 = vunpack.i.l.bf16 %v3102_v26 }
 0x2c6   :  { %699 = vmatpush.msra.mxu0 %v3103_v28 }
 0x2c8   :  { %700 = vmatpush.msra.mxu0 %v3104_v27 }
 0x2cb   :  { %v3107_v32 = vpop.permute.xlu1 %3106 }
 0x2cc   :  { %v3109_v9 = vunpack.i.h.bf16 %v3107_v32  ;;  %v3108_v10 = vunpack.i.l.bf16 %v3107_v32 }
 0x2ce   :  { %656 = vmatpush.msra.mxu3 %v3108_v10 }
 0x2d0   :  { %657 = vmatpush.msra.mxu3 %v3109_v9 }
 0x2d3   :  { %v3117_v2 = vpop.permute.xlu1 %3116 }
 0x2d4   :  { %v3119_v5 = vunpack.i.h.bf16 %v3117_v2  ;;  %v3118_v19 = vunpack.i.l.bf16 %v3117_v2 }
 0x318   :  { %v377_v29 = vpop.f32.mrf.mxu3 }
 0x319   :  { %2904 = vmatmul.msk.f32.vlgmr.msra.gmra.mxu0 %vm176_vm1, %v377_v29 }
 0x31a   :  { %v400_v30 = vpop.f32.mrf.mxu0 }
 0x321   :  { %2905 = vmatmul.msk.f32.gmra.mxu0 %vm176_vm1, %v400_v30 }
 0x322   :  { %v527_v31 = vpop.f32.mrf.mxu0 }
 0x323   :  { %v556_v37 = vmul.f32 0.17677669, %v527_v31 }
 0x325   :  { %v558_v38 = vsel %vm334_vm2, %v556_v37, -inf }
 0x32a   :  { %v553_v33 = vpop.f32.mrf.mxu0 }
 0x32b   :  { %v557_v34 = vmul.f32 0.17677669, %v553_v33 }
 0x32d   :  { %v561_v36 = vsel %vm334_vm2, %v557_v34, -inf }
 0x32e   :  { %562 = vmax.xlane.f32.xlu2 %v561_v36  ;;  %v977_v36 = vld [vmem:[#allocation7 + $0xf8] sm:$0xff] }
 0x334   :  { %v498_v57 = vpop.f32.mrf.mxu3 }
 0x335   :  { %598 = vmatpush.msra.mxu1 %v498_v57 }
 0x336   :  { %559 = vmax.xlane.f32.xlu2 %v558_v38 }
 0x337   :  { %724 = vmatpush.msrb.mxu1 %v3614_v7 }
 0x339   :  { %725 = vmatpush.msrb.mxu1 %v3612_v6 }
 0x33b   :  { %726 = vmatpush.msrb.mxu1 %v709_v55 }
 0x33c   :  { %v501_v60 = vpop.f32.mrf.mxu3 }
 0x33d   :  { %727 = vmatpush.msrb.mxu1 %v708_v54  ;;  %621 = vmatpush.msrb.mxu2 %v501_v60 }
 0x33f   :  { %763 = vmatpush.msra.mxu2 %v3088_v58 }
 0x341   :  { %764 = vmatpush.msra.mxu2 %v3089_v59 }
 0x396   :  { %v3678_v20 = vpop.f32.mrf.mxu0 }
 0x39e   :  { %v3680_v21 = vpop.f32.mrf.mxu0 }
 0x3a1   :  { %v563_v44 = vpop.xlane.xlu2 %562 }
 0x3a2   :  { %v565_v45 = vsub.f32 %v557_v34, %v563_v44  ;;  %v976_v34 = vld [vmem:[#allocation7 + $0xf0] sm:$0xff] }
 0x3a4   :  { %v568_v46 = vmul.f32 1.442695, %v565_v45 }
 0x3a6   :  { %3298 = vpow2.f32 %v568_v46 }
 0x3a9   :  { %v560_v47 = vpop.xlane.xlu2 %559 }
 0x3aa   :  { %v564_v48 = vsub.f32 %v556_v37, %v560_v47  ;;  %v3688_v37 = vpack.i.bf16 %v976_v34, %v977_v36 }
 0x3ac   :  { %v3299_v49 = vpop.eup %3298  ;;  %v566_v50 = vmul.f32 1.442695, %v564_v48  ;;  %v974_v48 = vld [vmem:[#allocation7 + $0xe0] sm:$0xff] }
 0x3ad   :  { %v573_v51 = vsel %vm334_vm2, %v3299_v49, 0.0 }
 0x3ae   :  { %3300 = vpow2.f32 %v566_v50  ;;  %574 = vadd.xlane.f32.xlu0 %v573_v51 }
 0x3b4   :  { %v3301_v52 = vpop.eup %3300 }
 0x3b5   :  { %v570_v53 = vsel %vm334_vm2, %v3301_v52, 0.0 }
 0x3b6   :  { %571 = vadd.xlane.f32.xlu2 %v570_v53 }
 0x3c2   :  { %3121 = vrot.lane.b32.xlu0 %v3646_v56, %s3443_s4 }
 0x3ce   :  { %3091 = vrot.lane.b32.xlu2 %v3646_v56, %s3442_s0 }
 0x3d6   :  { %3111 = vrot.lane.b32.xlu2 %v3584_v35, %s3444_s5 }
 0x421   :  { %v575_v61 = vpop.xlane.xlu0 %574 }
 0x422   :  { %3302 = vrcp.f32 %v575_v61 }
 0x428   :  { %v3303_v62 = vpop.eup %3302 }
 0x429   :  { %v579_v63 = vmul.f32 %v3303_v62, %v3299_v49  ;;  %v572_v0 = vpop.xlane.xlu2 %571  ;;  %v975_v49 = vld [vmem:[#allocation7 + $0xe8] sm:$0xff] }
 0x42a   :  { %3304 = vrcp.f32 %v572_v0  ;;  %v3694_v50 = vpack.i.bf16 %v974_v48, %v975_v49 }
 0x42b   :  { %2901 = vmatmul.msk.f32.vlgmr.msrb.gmra.mxu2 %vm334_vm2, %v579_v63 }
 0x430   :  { %v3305_v1 = vpop.eup %3304 }
 0x431   :  { %v578_v3 = vmul.f32 %v3305_v1, %v3301_v52  ;;  %v3092_v4 = vpop.permute.xlu2 %3091 }
 0x432   :  { %v3093_v6 = vunpack.i.l.bf16 %v3092_v4  ;;  %v3094_v7 = vunpack.i.h.bf16 %v3092_v4 }
 0x433   :  { %2900 = vmatmul.msk.f32.vlgmr.msra.gmra.mxu1 %vm334_vm2, %v578_v3 }
 0x434   :  { %765 = vmatpush.msra.mxu2 %v3093_v6  ;;  %v3122_v30 = vpop.permute.xlu0 %3121 }
 0x435   :  { %v3124_v31 = vunpack.i.h.bf16 %v3122_v30  ;;  %v3123_v33 = vunpack.i.l.bf16 %v3122_v30 }
 0x436   :  { %766 = vmatpush.msra.mxu2 %v3094_v7 }
 0x437   :  { %2908 = vmatmul.msk.f32.vlgmr.msra.gmra.mxu2 %vm176_vm1, %v3564_v22 }
 0x439   :  { %v3112_v35 = vpop.permute.xlu2 %3111 }
 0x43a   :  { %v3113_v11 = vunpack.i.l.bf16 %v3112_v35  ;;  %v3114_v12 = vunpack.i.h.bf16 %v3112_v35 }
 0x43b   :  { %2906 = vmatmul.msk.f32.vlgmr.msrb.gmra.mxu1 %vm176_vm1, %v3564_v22 }
 0x43c   :  { %658 = vmatpush.msra.mxu3 %v3113_v11 }
 0x43e   :  { %659 = vmatpush.msra.mxu3 %v3114_v12 }
 0x43f   :  { %2909 = vmatmul.msk.f32.gmra.mxu2 %vm176_vm1, %v3570_v23 }
 0x440   :  { %798 = vmatpush.msrb.mxu3 %v3118_v19 }
 0x442   :  { %799 = vmatpush.msrb.mxu3 %v3119_v5 }
 0x443   :  { %2907 = vmatmul.msk.f32.gmra.mxu1 %vm176_vm1, %v3570_v23 }
 0x444   :  { %800 = vmatpush.msrb.mxu3 %v3123_v33 }
 0x446   :  { %801 = vmatpush.msrb.mxu3 %v3124_v31 }
 0x4ae   :  { %v623_v14 = vpop.f32.mrf.mxu2 }
 0x4b0   :  { %v600_v13 = vpop.f32.mrf.mxu1 }
 0x4b1   :  { %2902 = vmatmul.msk.f32.vlgmr.msra.gmra.mxu3 %vm176_vm1, %v600_v13 }
 0x4b8   :  { %v729_v15 = vpop.f32.mrf.mxu1 }
 0x4b9   :  { %2903 = vmatmul.msk.f32.gmra.mxu3 %vm176_vm1, %v623_v14 }
 0x4ba   :  { %v768_v16 = vpop.f32.mrf.mxu2 }
 0x4bb   :  { %2912 = vmatpush.xpose.msk.msrb.mxu0 %vm176_vm1, %v768_v16 }
 0x4be   :  { %2913 = vmatmul.msk.f32.vlgmr.msrb.gmra.mxu0 %vm176_vm1, %v729_v15 }
 0x4c0   :  { %v732_v18 = vpop.f32.mrf.mxu1 }
 0x4c1   :  { %2910 = vmatmul.msk.f32.vlgmr.msrb.gmra.mxu3 %vm176_vm1, %v3564_v22 }
 0x4c2   :  { %v771_v17 = vpop.f32.mrf.mxu2 }
 0x4c3   :  { %2914 = vmatpush.xpose.msk.msra.mxu1 %vm176_vm1, %v771_v17 }
 0x4c6   :  { %2915 = vmatmul.msk.f32.vlgmr.msra.gmra.mxu1 %vm176_vm1, %v732_v18 }
 0x4c9   :  { %2911 = vmatmul.msk.f32.gmra.mxu3 %vm176_vm1, %v3570_v23 }
 0x534   :  { %v661_v51 = vpop.f32.mrf.mxu3 }
 0x535   :  { %v703_v15 = vadd.f32 %v3678_v20, %v661_v51 }
 0x53b   :  { %v832_v24 = vpop.f32.mrf.mxu0 }
 0x53c   :  { %v861_v25 = vmul.f32 0.17677669, %v832_v24  ;;  %v3698_v52 = vpop.f32.mrf.mxu3 }
 0x53d   :  { %v706_v19 = vadd.f32 %v3680_v21, %v3698_v52 }
 0x53e   :  { %v863_v26 = vsel %vm334_vm2, %v861_v25, -inf }
 0x53f   :  { %864 = vmax.xlane.f32.xlu2 %v863_v26 }
 0x543   :  { %v858_v27 = vpop.f32.mrf.mxu1 }
 0x544   :  { %v862_v28 = vmul.f32 0.17677669, %v858_v27  ;;  %v803_v53 = vpop.f32.mrf.mxu3 }
 0x545   :  { %903 = vmatpush.msrb.mxu2 %v803_v53 }
 0x546   :  { %v866_v29 = vsel %vm334_vm2, %v862_v28, -inf }
 0x547   :  { %867 = vmax.xlane.f32.xlu1 %v866_v29  ;;  %990 = vmatpush.msra.mxu2 %v977_v36 }
 0x549   :  { %991 = vmatpush.msra.mxu2 %v976_v34 }
 0x54b   :  { %992 = vmatpush.msra.mxu2 %v975_v49 }
 0x54c   :  { %v806_v58 = vpop.f32.mrf.mxu3 }
 0x54d   :  { %926 = vmatpush.msra.mxu0 %v806_v58  ;;  %993 = vmatpush.msra.mxu2 %v974_v48 }
 0x560   :  { %3126 = vrot.lane.b32.xlu1 %v3688_v37, %s3442_s0 }
 0x568   :  { %3141 = vrot.lane.b32.xlu1 %v3646_v56, %s3444_s5 }
 0x570   :  { %3151 = vrot.lane.b32.xlu1 %v3694_v50, %s3443_s4 }
 0x5b2   :  { %v865_v38 = vpop.xlane.xlu2 %864 }
 0x5b3   :  { %v869_v39 = vsub.f32 %v861_v25, %v865_v38 }
 0x5b5   :  { %v871_v40 = vmul.f32 1.442695, %v869_v39 }
 0x5b7   :  { %3306 = vpow2.f32 %v871_v40 }
 0x5ba   :  { %v868_v41 = vpop.xlane.xlu1 %867 }
 0x5bb   :  { %v870_v42 = vsub.f32 %v862_v28, %v868_v41 }
 0x5bd   :  { %v3307_v43 = vpop.eup %3306  ;;  %v873_v44 = vmul.f32 1.442695, %v870_v42 }
 0x5be   :  { %v875_v45 = vsel %vm334_vm2, %v3307_v43, 0.0 }
 0x5bf   :  { %3308 = vpow2.f32 %v873_v44  ;;  %876 = vadd.xlane.f32.xlu0 %v875_v45 }
 0x5c5   :  { %v3309_v46 = vpop.eup %3308 }
 0x5c6   :  { %v878_v47 = vsel %vm334_vm2, %v3309_v46, 0.0 }
 0x5c7   :  { %879 = vadd.xlane.f32.xlu2 %v878_v47 }
 0x5d2   :  { %v3127_v54 = vpop.permute.xlu1 %3126 }
 0x5d3   :  { %v3128_v55 = vunpack.i.l.bf16 %v3127_v54  ;;  %v3129_v57 = vunpack.i.h.bf16 %v3127_v54  ;;  %3136 = vrot.lane.b32.xlu0 %v3618_v8, %s3444_s5 }
 0x5d5   :  { %1029 = vmatpush.msra.mxu3 %v3128_v55 }
 0x5d7   :  { %1030 = vmatpush.msra.mxu3 %v3129_v57 }
 0x5da   :  { %v3142_v7 = vpop.permute.xlu1 %3141 }
 0x5db   :  { %v3144_v32 = vunpack.i.h.bf16 %v3142_v7  ;;  %v3143_v35 = vunpack.i.l.bf16 %v3142_v7 }
 0x5df   :  { %3131 = vrot.lane.b32.xlu2 %v3694_v50, %s3442_s0 }
 0x5e2   :  { %v3152_v31 = vpop.permute.xlu1 %3151 }
 0x5e3   :  { %v3153_v33 = vunpack.i.l.bf16 %v3152_v31  ;;  %v3154_v34 = vunpack.i.h.bf16 %v3152_v31  ;;  %v3286_v31 = vld [vmem:[#allocation7 + $0x161] ss:$0 sm:$0xff] }
 0x5e7   :  { %3146 = vrot.lane.b32.xlu2 %v3688_v37, %s3443_s4 }
 0x632   :  { %v877_v59 = vpop.xlane.xlu0 %876 }
 0x633   :  { %3310 = vrcp.f32 %v877_v59 }
 0x639   :  { %v3311_v60 = vpop.eup %3310 }
 0x63a   :  { %v883_v61 = vmul.f32 %v3311_v60, %v3307_v43  ;;  %v880_v62 = vpop.xlane.xlu2 %879 }
 0x63b   :  { %3312 = vrcp.f32 %v880_v62 }
 0x63c   :  { %2916 = vmatmul.msk.f32.vlgmr.msrb.gmra.mxu2 %vm334_vm2, %v883_v61 }
 0x641   :  { %v3313_v63 = vpop.eup %3312 }
 0x642   :  { %v884_v0 = vmul.f32 %v3313_v63, %v3309_v46  ;;  %v3132_v1 = vpop.permute.xlu2 %3131 }
 0x643   :  { %v3134_v3 = vunpack.i.h.bf16 %v3132_v1  ;;  %v3133_v8 = vunpack.i.l.bf16 %v3132_v1 }
 0x644   :  { %2917 = vmatmul.msk.f32.vlgmr.msra.gmra.mxu0 %vm334_vm2, %v884_v0  ;;  %2920 = vmatmul.msk.f32.vlgmr.msra.gmra.mxu2 %vm176_vm1, %v3564_v22 }
 0x645   :  { %1031 = vmatpush.msra.mxu3 %v3133_v8  ;;  %v3137_v56 = vpop.permute.xlu0 %3136 }
 0x646   :  { %v3139_v4 = vunpack.i.h.bf16 %v3137_v56  ;;  %v3138_v6 = vunpack.i.l.bf16 %v3137_v56 }
 0x647   :  { %1032 = vmatpush.msra.mxu3 %v3134_v3 }
 0x648   :  { %2922 = vmatmul.msk.f32.vlgmr.msra.gmra.mxu3 %vm176_vm1, %v3564_v22  ;;  %961 = vmatpush.msrb.mxu1 %v3138_v6  ;;  %v3445_v6 = vmov 32.0  }
 0x64a   :  { %962 = vmatpush.msrb.mxu1 %v3139_v4  ;;  %v3147_v18 = vpop.permute.xlu2 %3146 }
 0x64b   :  { %v3149_v2 = vunpack.i.h.bf16 %v3147_v18  ;;  %v3148_v5 = vunpack.i.l.bf16 %v3147_v18 }
 0x64c   :  { %2921 = vmatmul.msk.f32.gmra.mxu2 %vm176_vm1, %v3570_v23  ;;  %963 = vmatpush.msrb.mxu1 %v3143_v35  ;;  %v3753_v35 = vld [vmem:[#allocation7 + $0x160] ss:$0 sm:$0xff] }
 0x64d   :  { %1064 = vmatpush.msrb.mxu0 %v3148_v5 }
 0x64e   :  { %964 = vmatpush.msrb.mxu1 %v3144_v32 }
 0x64f   :  { %1065 = vmatpush.msrb.mxu0 %v3149_v2 }
 0x650   :  { %2923 = vmatmul.msk.f32.gmra.mxu3 %vm176_vm1, %v3570_v23 }
 0x651   :  { %1066 = vmatpush.msrb.mxu0 %v3153_v33  ;;  %v1313_v33 = vld [vmem:[#allocation7 + $0x148] sm:$0xff] }
 0x653   :  { %1067 = vmatpush.msrb.mxu0 %v3154_v34 }
 0x654   :  { %2924 = vmatmul.msk.f32.vlgmr.msrb.gmra.mxu0 %vm176_vm1, %v3564_v22 }
 0x65c   :  { %2925 = vmatmul.msk.f32.gmra.mxu0 %vm176_vm1, %v3570_v23 }
 0x6bf   :  { %v905_v9 = vpop.f32.mrf.mxu2 }
 0x6c0   :  { %2918 = vmatmul.msk.f32.vlgmr.msrb.gmra.mxu1 %vm176_vm1, %v905_v9 }
 0x6c1   :  { %v928_v10 = vpop.f32.mrf.mxu0 }
 0x6c7   :  { %v995_v11 = vpop.f32.mrf.mxu2 }
 0x6c8   :  { %2919 = vmatmul.msk.f32.gmra.mxu1 %vm176_vm1, %v928_v10 }
 0x6cb   :  { %v1034_v12 = vpop.f32.mrf.mxu3 }
 0x6cc   :  { %2926 = vmatpush.xpose.msk.msra.mxu1 %vm176_vm1, %v1034_v12 }
 0x6cf   :  { %v998_v14 = vpop.f32.mrf.mxu2 }
 0x6d0   :  { %2927 = vmatmul.msk.f32.vlgmr.msra.gmra.mxu1 %vm176_vm1, %v995_v11 }
 0x6d1   :  { %v1069_v46 = vpop.f32.mrf.mxu0 }
 0x6d2   :  { %1169 = vmatpush.msrb.mxu3 %v1069_v46 }
 0x6d3   :  { %v1037_v13 = vpop.f32.mrf.mxu3 }
 0x6d4   :  { %2928 = vmatpush.xpose.msk.msrb.mxu2 %vm176_vm1, %v1037_v13 }
 0x6d7   :  { %2929 = vmatmul.msk.f32.vlgmr.msrb.gmra.mxu2 %vm176_vm1, %v998_v14 }
 0x6d9   :  { %v1072_v47 = vpop.f32.mrf.mxu0 }
 0x6da   :  { %1192 = vmatpush.msra.mxu0 %v1072_v47 }
 0x73d   :  { %v966_v16 = vpop.f32.mrf.mxu1 }
 0x73e   :  { %v3725_v17 = vadd.f32 %v966_v16, %v703_v15 }
 0x745   :  { %v969_v24 = vpop.f32.mrf.mxu1 }
 0x746   :  { %v3729_v25 = vadd.f32 %v969_v24, %v706_v19  ;;  %v1307_v19 = vld [vmem:[#allocation7 + $0x118] sm:$0xff]  ;;  %v1306_v24 = vld [vmem:[#allocation7 + $0x110] sm:$0xff] }
 0x747   :  { %1335 = vmatpush.msra.mxu2 %v1307_v19 }
 0x749   :  { %1336 = vmatpush.msra.mxu2 %v1306_v24  ;;  %v1438_v24 = vld [vmem:[#allocation7 + $0x168] sm:$0xff] }
 0x74d   :  { %v1098_v26 = vpop.f32.mrf.mxu1 }
 0x74e   :  { %v1127_v27 = vmul.f32 0.17677669, %v1098_v26  ;;  %v1304_v26 = vld [vmem:[#allocation7 + $0x100] sm:$0xff] }
 0x750   :  { %v1129_v28 = vsel %vm334_vm2, %v1127_v27, -inf }
 0x751   :  { %1130 = vmax.xlane.f32.xlu0 %v1129_v28 }
 0x75a   :  { %v1124_v20 = vpop.f32.mrf.mxu2 }
 0x75b   :  { %v1128_v29 = vmul.f32 0.17677669, %v1124_v20 }
 0x75d   :  { %v1132_v30 = vsel %vm334_vm2, %v1128_v29, -inf }
 0x75e   :  { %1133 = vmax.xlane.f32.xlu2 %v1132_v30  ;;  %v1314_v30 = vld [vmem:[#allocation7 + $0x150] sm:$0xff] }
 0x765   :  { %3156 = vrot.lane.b32.xlu0 %v3688_v37, %s3444_s5 }
 0x7c4   :  { %v1131_v21 = vpop.xlane.xlu0 %1130 }
 0x7c5   :  { %v1135_v36 = vsub.f32 %v1127_v27, %v1131_v21 }
 0x7c7   :  { %v1137_v38 = vmul.f32 1.442695, %v1135_v36  ;;  %v1312_v36 = vld [vmem:[#allocation7 + $0x140] sm:$0xff] }
 0x7c9   :  { %3314 = vpow2.f32 %v1137_v38 }
 0x7cf   :  { %v3315_v39 = vpop.eup %3314 }
 0x7d0   :  { %v1141_v40 = vsel %vm334_vm2, %v3315_v39, 0.0 }
 0x7d1   :  { %v1134_v41 = vpop.xlane.xlu2 %1133  ;;  %1142 = vadd.xlane.f32.xlu1 %v1141_v40  ;;  %v1311_v40 = vld [vmem:[#allocation7 + $0x138] sm:$0xff] }
 0x7d2   :  { %v1136_v42 = vsub.f32 %v1128_v29, %v1134_v41  ;;  %v1315_v29 = vld [vmem:[#allocation7 + $0x158] sm:$0xff] }
 0x7d3   :  { %1367 = vmatpush.msra.mxu3 %v1315_v29 }
 0x7d4   :  { %v1139_v43 = vmul.f32 1.442695, %v1136_v42 }
 0x7d5   :  { %1368 = vmatpush.msra.mxu3 %v1314_v30 }
 0x7d6   :  { %3316 = vpow2.f32 %v1139_v43 }
 0x7d7   :  { %v3157_v55 = vpop.permute.xlu0 %3156  ;;  %1369 = vmatpush.msra.mxu3 %v1313_v33 }
 0x7d8   :  { %v3159_v57 = vunpack.i.h.bf16 %v3157_v55  ;;  %v3158_v37 = vunpack.i.l.bf16 %v3157_v55 }
 0x7d9   :  { %1370 = vmatpush.msra.mxu3 %v1312_v36 }
 0x7da   :  { %1227 = vmatpush.msrb.mxu1 %v3158_v37 }
 0x7db   :  { %1371 = vmatpush.msra.mxu3 %v1311_v40 }
 0x7dc   :  { %v3317_v44 = vpop.eup %3316  ;;  %1228 = vmatpush.msrb.mxu1 %v3159_v57 }
 0x7dd   :  { %v1144_v45 = vsel %vm334_vm2, %v3317_v44, 0.0 }
 0x7de   :  { %1145 = vadd.xlane.f32.xlu2 %v1144_v45 }
 0x7ea   :  { %3161 = vrot.lane.b32.xlu1 %v3694_v50, %s3444_s5 }
 0x7f2   :  { %1299 = vrot.lane.b32.xlu1 %v3753_v35, %s3442_s0 }
 0x844   :  { %v1143_v48 = vpop.xlane.xlu1 %1142 }
 0x845   :  { %3318 = vrcp.f32 %v1143_v48 }
 0x84b   :  { %v3319_v49 = vpop.eup %3318 }
 0x84c   :  { %v1149_v51 = vmul.f32 %v3319_v49, %v3315_v39 }
 0x84e   :  { %2930 = vmatmul.msk.f32.vlgmr.msrb.gmra.mxu3 %vm334_vm2, %v1149_v51 }
 0x851   :  { %v1146_v52 = vpop.xlane.xlu2 %1145 }
 0x852   :  { %3320 = vrcp.f32 %v1146_v52 }
 0x853   :  { %3322 = vrcp.f32 %v3445_v6  ;;  %v1440_v6 = vld [vmem:[#allocation7 + $0x178] sm:$0xff] }
 0x858   :  { %v3321_v53 = vpop.eup %3320 }
 0x859   :  { %v1150_v54 = vmul.f32 %v3321_v53, %v3317_v44  ;;  %v3323_v7 = vpop.eup %3322 }
 0x85a   :  { %v1251_v32 = vmul.f32 32.0, %v3323_v7  ;;  %vm1255_vm3 = vweird.f32 %v3323_v7 }
 0x85b   :  { %2931 = vmatmul.msk.f32.vlgmr.msra.gmra.mxu0 %vm334_vm2, %v1150_v54 }
 0x85c   :  { %v3162_v58 = vpop.permute.xlu1 %3161  ;;  %v1252_v9 = vsub.f32 1.0, %v1251_v32 }
 0x85d   :  { %v3164_v50 = vunpack.i.h.bf16 %v3162_v58  ;;  %v3163_v59 = vunpack.i.l.bf16 %v3162_v58 }
 0x85f   :  { %1229 = vmatpush.msrb.mxu1 %v3163_v59 }
 0x861   :  { %1230 = vmatpush.msrb.mxu1 %v3164_v50 }
 0x864   :  { %v1300_v53 = vpop.permute.xlu1 %1299 }
 0x8d1   :  { %v1171_v60 = vpop.f32.mrf.mxu3 }
 0x8d2   :  { %2932 = vmatmul.msk.f32.vlgmr.msrb.gmra.mxu1 %vm176_vm1, %v1171_v60 }
 0x8d8   :  { %v1194_v61 = vpop.f32.mrf.mxu0 }
 0x8da   :  { %2933 = vmatmul.msk.f32.gmra.mxu1 %vm176_vm1, %v1194_v61  ;;  %v1310_v61 = vld [vmem:[#allocation7 + $0x130] sm:$0xff] }
 0x8db   :  { %1372 = vmatpush.msra.mxu3 %v1310_v61 }
 0x94f   :  { %v1232_v62 = vpop.f32.mrf.mxu1 }
 0x950   :  { %v1238_v63 = vadd.f32 %v1232_v62, %v3725_v17  ;;  %v1309_v62 = vld [vmem:[#allocation7 + $0x128] sm:$0xff] }
 0x951   :  { %1373 = vmatpush.msra.mxu3 %v1309_v62 }
 0x952   :  { %v1242_v0 = vadd.f32 %v1238_v63, %v3564_v22  ;;  %v1253_v22 = vmul.f32 %v3323_v7, %v1252_v9  ;;  %v1308_v63 = vld [vmem:[#allocation7 + $0x120] sm:$0xff] }
 0x953   :  { %1374 = vmatpush.msra.mxu3 %v1308_v63 }
 0x954   :  { %v1244_v1 = vsel %vm176_vm1, %v1242_v0, 0.0  ;;  %v1254_v10 = vadd.f32 %v3323_v7, %v1253_v22 }
 0x955   :  { %1245 = vadd.xlane.f32.xlu2 %v1244_v1 }
 0x956   :  { %v3757_v11 = vsel %vm1255_vm3, %v3323_v7, %v1254_v10  ;;  %v1441_v7 = vld [vmem:[#allocation7 + $0x180] sm:$0xff] }
 0x957   :  { %v1235_v3 = vpop.f32.mrf.mxu1  ;;  %v3772_v32 = vpack.i.bf16 %v1440_v6, %v1441_v7  ;;  %1460 = vmatpush.msrb.mxu0 %v1441_v7 }
 0x958   :  { %v1239_v8 = vadd.f32 %v1235_v3, %v3729_v25  ;;  %v1305_v25 = vld [vmem:[#allocation7 + $0x108] sm:$0xff] }
 0x959   :  { %1337 = vmatpush.msra.mxu2 %v1305_v25  ;;  %1461 = vmatpush.msrb.mxu0 %v1440_v6 }
 0x95a   :  { %v1243_v56 = vadd.f32 %v1239_v8, %v3570_v23 }
 0x95b   :  { %1338 = vmatpush.msra.mxu2 %v1304_v26 }
 0x95c   :  { %v1247_v4 = vsel %vm176_vm1, %v1243_v56, 0.0 }
 0x95d   :  { %1248 = vadd.xlane.f32.xlu2 %v1247_v4 }
 0x9c8   :  { %v1246_v12 = vpop.xlane.xlu2 %1245 }
 0x9c9   :  { %v1257_v23 = vmul.f32 %v3757_v11, %v1246_v12 }
 0x9cb   :  { %v1259_v13 = vsub.f32 %v1242_v0, %v1257_v23 }
 0x9cd   :  { %v1261_v14 = vmul.f32 %v1259_v13, %v1259_v13 }
 0x9cf   :  { %v1263_v15 = vsel %vm176_vm1, %v1261_v14, 0.0 }
 0x9d0   :  { %1264 = vadd.xlane.f32.xlu0 %v1263_v15  ;;  %v1249_v16 = vpop.xlane.xlu2 %1248 }
 0x9d1   :  { %v1258_v17 = vmul.f32 %v3757_v11, %v1249_v16 }
 0x9d3   :  { %v1260_v18 = vsub.f32 %v1243_v56, %v1258_v17 }
 0x9d5   :  { %v1262_v2 = vmul.f32 %v1260_v18, %v1260_v18 }
 0x9d7   :  { %v1266_v5 = vsel %vm176_vm1, %v1262_v2, 0.0 }
 0x9d8   :  { %1267 = vadd.xlane.f32.xlu2 %v1266_v5  ;;  %v1439_v5 = vld [vmem:[#allocation7 + $0x170] sm:$0xff] }
 0x9d9   :  { %1462 = vmatpush.msrb.mxu0 %v1439_v5 }
 0x9db   :  { %1463 = vmatpush.msrb.mxu0 %v1438_v24 }
 0x9e4   :  { %3166 = vrot.lane.b32.xlu0 %v3772_v32, %s3442_s0 }
 0x9f0   :  { %1349 = vrot.lane.b32.xlu2 %v3286_v31, %s3443_s4 }
 0xa43   :  { %v1265_v27 = vpop.xlane.xlu0 %1264 }
 0xa44   :  { %v1269_v28 = vmul.f32 %v1265_v27, %v3757_v11 }
 0xa46   :  { %v1271_v20 = vadd.f32 1e-06, %v1269_v28 }
 0xa48   :  { %3324 = vrsqrt.f32 %v1271_v20  ;;  %vm1279_vm5 = vweird.f32 %v1271_v20 }
 0xa4b   :  { %v1268_v34 = vpop.xlane.xlu2 %1267 }
 0xa4c   :  { %v1270_v21 = vmul.f32 %v1268_v34, %v3757_v11 }
 0xa4e   :  { %v3325_v38 = vpop.eup %3324  ;;  %v1272_v39 = vadd.f32 1e-06, %v1270_v21 }
 0xa4f   :  { %v1274_v41 = vmul.f32 %v3325_v38, %v1271_v20  ;;  %vm1280_vm4 = vweird.f32 %v3325_v38  ;;  %v3791_v20 = vpack.i.bf16 %v1438_v24, %v1439_v5 }
 0xa50   :  { %3326 = vrsqrt.f32 %v1272_v39  ;;  %vm1281_vm6 = vmor %vm1279_vm5, %vm1280_vm4  ;;  %vm1289_vm8 = vweird.f32 %v1272_v39 }
 0xa51   :  { %v1275_v42 = vmul.f32 %v3325_v38, %v1274_v41 }
 0xa53   :  { %v1276_v43 = vmul.f32 0.5, %v1275_v42  ;;  %v1350_v9 = vpop.permute.xlu2 %1349 }
 0xa55   :  { %v1277_v44 = vsub.f32 1.5, %v1276_v43 }
 0xa56   :  { %v3327_v45 = vpop.eup %3326  ;;  %v3167_v29 = vpop.permute.xlu0 %3166 }
 0xa57   :  { %v1278_v46 = vmul.f32 %v3325_v38, %v1277_v44  ;;  %v1284_v47 = vmul.f32 %v3327_v45, %v1272_v39  ;;  %vm1290_vm7 = vweird.f32 %v3327_v45  ;;  %v3168_v33 = vunpack.i.l.bf16 %v3167_v29 }
 0xa58   :  { %vm1291_vm9 = vmor %vm1289_vm8, %vm1290_vm7 }
 0xa59   :  { %v1285_v48 = vmul.f32 %v3327_v45, %v1284_v47  ;;  %v1282_v49 = vsel %vm1281_vm6, %v3325_v38, %v1278_v46  ;;  %1499 = vmatpush.msra.mxu1 %v3168_v33 }
 0xa5a   :  { %v1293_v51 = vmul.f32 %v1282_v49, %v1259_v13 }
 0xa5b   :  { %v1286_v52 = vmul.f32 0.5, %v1285_v48 }
 0xa5c   :  { %v1296_v54 = vmul.f32 %v3753_v35, %v1293_v51 }
 0xa5d   :  { %v1287_v55 = vsub.f32 1.5, %v1286_v52 }
 0xa5e   :  { %v1302_v57 = vadd.f32 %v1300_v53, %v1296_v54  ;;  %v1669_v54 = vld [vmem:[#allocation7 + $0x198] sm:$0xff] }
 0xa5f   :  { %v1288_v37 = vmul.f32 %v3327_v45, %v1287_v55 }
 0xa60   :  { %2934 = vmatmul.msk.f32.vlgmr.msra.gmra.mxu2 %vm176_vm1, %v1302_v57 }
 0xa61   :  { %v1292_v58 = vsel %vm1291_vm9, %v3327_v45, %v1288_v37  ;;  %v1668_v37 = vld [vmem:[#allocation7 + $0x190] sm:$0xff] }
 0xa62   :  { %v1294_v50 = vmul.f32 %v1292_v58, %v1260_v18  ;;  %v1667_v58 = vld [vmem:[#allocation7 + $0x188] sm:$0xff] }
 0xa64   :  { %v1297_v59 = vmul.f32 %v3753_v35, %v1294_v50 }
 0xa66   :  { %v1303_v60 = vadd.f32 %v1300_v53, %v1297_v59  ;;  %v1670_v53 = vld [vmem:[#allocation7 + $0x1a0] sm:$0xff]  ;;  %v3806_v59 = vpack.i.bf16 %v1667_v58, %v1668_v37 }
 0xa68   :  { %2935 = vmatmul.msk.f32.gmra.mxu2 %vm176_vm1, %v1303_v60 }
 0xae3   :  { %v1340_v0 = vpop.f32.mrf.mxu2 }
 0xae4   :  { %v1341_v1 = vadd.f32 %v3286_v31, %v1340_v0 }
 0xae6   :  { %v1346_v3 = vmax.f32 %v1341_v1, 0.0 }
 0xae8   :  { %2936 = vmatmul.msk.f32.vlgmr.msra.gmra.mxu3 %vm1352_vm10, %v1346_v3 }
 0xaeb   :  { %v1343_v8 = vpop.f32.mrf.mxu2 }
 0xaec   :  { %v1344_v56 = vadd.f32 %v3286_v31, %v1343_v8  ;;  %v3169_v31 = vunpack.i.h.bf16 %v3167_v29 }
 0xaee   :  { %v1347_v4 = vmax.f32 %v1344_v56, 0.0  ;;  %1500 = vmatpush.msra.mxu1 %v3169_v31 }
 0xaf0   :  { %2937 = vmatmul.msk.f32.gmra.mxu3 %vm1352_vm10, %v1347_v4 }
 0xb6b   :  { %v1376_v22 = vpop.f32.mrf.mxu3 }
 0xb6c   :  { %v1377_v10 = vadd.f32 %v1376_v22, %v1350_v9 }
 0xb6e   :  { %v1382_v12 = vadd.f32 %v1377_v10, %v1302_v57  ;;  %v3804_v57 = vpack.i.bf16 %v1669_v54, %v1670_v53 }
 0xb70   :  { %v1384_v23 = vsel %vm176_vm1, %v1382_v12, 0.0 }
 0xb71   :  { %1385 = vadd.xlane.f32.xlu1 %v1384_v23 }
 0xb73   :  { %v1379_v13 = vpop.f32.mrf.mxu3 }
 0xb74   :  { %v1380_v14 = vadd.f32 %v1379_v13, %v1350_v9 }
 0xb76   :  { %v1383_v15 = vadd.f32 %v1380_v14, %v1303_v60 }
 0xb78   :  { %v1387_v16 = vsel %vm176_vm1, %v1383_v15, 0.0 }
 0xb79   :  { %1388 = vadd.xlane.f32.xlu2 %v1387_v16 }
 0xb8a   :  { %1428 = vrot.lane.b32.xlu1 %v3753_v35, %s3443_s4 }
 0xb91   :  { %3171 = vrot.lane.b32.xlu2 %v3791_v20, %s3442_s0 }
 0xb92   :  { %3176 = vrot.lane.b32.xlu1 %v3772_v32, %s3443_s4 }
 0xb9a   :  { %3186 = vrot.lane.b32.xlu1 %v3804_v57, %s3442_s0 }
 0xbe4   :  { %v1386_v17 = vpop.xlane.xlu1 %1385 }
 0xbe5   :  { %v1390_v18 = vmul.f32 %v1386_v17, %v3757_v11 }
 0xbe7   :  { %v3781_v2 = vsub.f32 %v1382_v12, %v1390_v18 }
 0xbe9   :  { %v1394_v19 = vmul.f32 %v3781_v2, %v3781_v2 }
 0xbeb   :  { %v1396_v25 = vsel %vm176_vm1, %v1394_v19, 0.0 }
 0xbec   :  { %v1389_v26 = vpop.xlane.xlu2 %1388  ;;  %1397 = vadd.xlane.f32.xlu0 %v1396_v25 }
 0xbed   :  { %v1391_v27 = vmul.f32 %v1389_v26, %v3757_v11 }
 0xbef   :  { %v3789_v28 = vsub.f32 %v1383_v15, %v1391_v27 }
 0xbf1   :  { %v1395_v30 = vmul.f32 %v3789_v28, %v3789_v28 }
 0xbf3   :  { %v1399_v34 = vsel %vm176_vm1, %v1395_v30, 0.0 }
 0xbf4   :  { %1400 = vadd.xlane.f32.xlu0 %v1399_v34  ;;  %v3172_v21 = vpop.permute.xlu2 %3171 }
 0xbf5   :  { %v3173_v36 = vunpack.i.l.bf16 %v3172_v21  ;;  %v3174_v39 = vunpack.i.h.bf16 %v3172_v21 }
 0xbf7   :  { %1501 = vmatpush.msra.mxu1 %v3173_v36 }
 0xbf9   :  { %1502 = vmatpush.msra.mxu1 %v3174_v39 }
 0xbfc   :  { %v1429_v38 = vpop.permute.xlu1 %1428 }
 0xc04   :  { %v3177_v40 = vpop.permute.xlu1 %3176 }
 0xc05   :  { %v3178_v42 = vunpack.i.l.bf16 %v3177_v40  ;;  %v3179_v44 = vunpack.i.h.bf16 %v3177_v40 }
 0xc07   :  { %1534 = vmatpush.msrb.mxu2 %v3178_v42 }
 0xc08   :  { %1433 = vrot.lane.b32.xlu0 %v3753_v35, %s3444_s5 }
 0xc09   :  { %1535 = vmatpush.msrb.mxu2 %v3179_v44 }
 0xc0c   :  { %v3187_v16 = vpop.permute.xlu1 %3186 }
 0xc0d   :  { %v3188_v17 = vunpack.i.l.bf16 %v3187_v16  ;;  %v3189_v5 = vunpack.i.h.bf16 %v3187_v16 }
 0xc10   :  { %3181 = vrot.lane.b32.xlu0 %v3791_v20, %s3443_s4 }
 0xc18   :  { %3191 = vrot.lane.b32.xlu0 %v3806_v59, %s3442_s0 }
 0xc5f   :  { %v1398_v41 = vpop.xlane.xlu0 %1397 }
 0xc60   :  { %v1402_v43 = vmul.f32 %v1398_v41, %v3757_v11 }
 0xc62   :  { %v1404_v45 = vadd.f32 1e-06, %v1402_v43 }
 0xc64   :  { %3328 = vrsqrt.f32 %v1404_v45  ;;  %vm1412_vm12 = vweird.f32 %v1404_v45 }
 0xc67   :  { %v1401_v35 = vpop.xlane.xlu0 %1400 }
 0xc68   :  { %v1403_v46 = vmul.f32 %v1401_v35, %v3757_v11 }
 0xc6a   :  { %v3329_v47 = vpop.eup %3328  ;;  %v1405_v48 = vadd.f32 1e-06, %v1403_v46  ;;  %v1974_v46 = vld [vmem:[#allocation7 + $0x1b8] sm:$0xff] }
 0xc6b   :  { %v1407_v49 = vmul.f32 %v3329_v47, %v1404_v45  ;;  %vm1413_vm11 = vweird.f32 %v3329_v47 }
 0xc6c   :  { %3330 = vrsqrt.f32 %v1405_v48  ;;  %vm1414_vm13 = vmor %vm1412_vm12, %vm1413_vm11  ;;  %vm1422_vm15 = vweird.f32 %v1405_v48 }
 0xc6d   :  { %v1408_v51 = vmul.f32 %v3329_v47, %v1407_v49 }
 0xc6f   :  { %v1409_v52 = vmul.f32 0.5, %v1408_v51 }
 0xc71   :  { %v1410_v55 = vsub.f32 1.5, %v1409_v52 }
 0xc72   :  { %v3331_v50 = vpop.eup %3330 }
 0xc73   :  { %v1417_v60 = vmul.f32 %v3331_v50, %v1405_v48  ;;  %v1411_v61 = vmul.f32 %v3329_v47, %v1410_v55  ;;  %vm1423_vm14 = vweird.f32 %v3331_v50 }
 0xc74   :  { %vm1424_vm0 = vmor %vm1422_vm15, %vm1423_vm14  ;;  %vm2695_vm14 = vcmask 130048  }
 0xc75   :  { %v1418_v62 = vmul.f32 %v3331_v50, %v1417_v60  ;;  %v1415_v63 = vsel %vm1414_vm13, %v3329_v47, %v1411_v61  ;;  %v1975_v47 = vld [vmem:[#allocation7 + $0x1c0] sm:$0xff] }
 0xc76   :  { %v1426_v0 = vmul.f32 %v1415_v63, %v3781_v2  ;;  %v3851_v48 = vpack.i.bf16 %v1974_v46, %v1975_v47 }
 0xc77   :  { %v1419_v1 = vmul.f32 0.5, %v1418_v62 }
 0xc78   :  { %v1431_v3 = vmul.f32 %v1429_v38, %v1426_v0 }
 0xc79   :  { %v1420_v8 = vsub.f32 1.5, %v1419_v1 }
 0xc7a   :  { %v1434_v56 = vpop.permute.xlu0 %1433 }
 0xc7b   :  { %v1421_v4 = vmul.f32 %v3331_v50, %v1420_v8  ;;  %v3813_v6 = vadd.f32 %v1434_v56, %v1431_v3 }
 0xc7d   :  { %v1425_v7 = vsel %vm1424_vm0, %v3331_v50, %v1421_v4  ;;  %2938 = vmatmul.msk.f32.vlgmr.msrb.gmra.mxu0 %vm176_vm1, %v3813_v6  ;;  %2940 = vmatmul.msk.f32.vlgmr.msra.gmra.mxu1 %vm176_vm1, %v3813_v6 }
 0xc7e   :  { %v1427_v9 = vmul.f32 %v1425_v7, %v3789_v28 }
 0xc80   :  { %v1432_v22 = vmul.f32 %v1429_v38, %v1427_v9 }
 0xc82   :  { %v3820_v10 = vadd.f32 %v1434_v56, %v1432_v22  ;;  %v3182_v12 = vpop.permute.xlu0 %3181 }
 0xc83   :  { %v3183_v23 = vunpack.i.l.bf16 %v3182_v12  ;;  %v3184_v13 = vunpack.i.h.bf16 %v3182_v12 }
 0xc85   :  { %2939 = vmatmul.msk.f32.gmra.mxu0 %vm176_vm1, %v3820_v10  ;;  %2941 = vmatmul.msk.f32.gmra.mxu1 %vm176_vm1, %v3820_v10 }
 0xc86   :  { %1536 = vmatpush.msrb.mxu2 %v3183_v23 }
 0xc88   :  { %1537 = vmatpush.msrb.mxu2 %v3184_v13 }
 0xc89   :  { %2942 = vmatmul.msk.f32.vlgmr.msrb.gmra.mxu2 %vm176_vm1, %v3813_v6 }
 0xc8a   :  { %1683 = vmatpush.msra.mxu2 %v1670_v53  ;;  %v3192_v2 = vpop.permute.xlu0 %3191 }
 0xc8b   :  { %v3193_v24 = vunpack.i.l.bf16 %v3192_v2  ;;  %v3194_v25 = vunpack.i.h.bf16 %v3192_v2 }
 0xc8c   :  { %1684 = vmatpush.msra.mxu2 %v1669_v54 }
 0xc8e   :  { %1685 = vmatpush.msra.mxu2 %v1668_v37 }
 0xc90   :  { %1686 = vmatpush.msra.mxu2 %v1667_v58 }
 0xc91   :  { %2943 = vmatmul.msk.f32.gmra.mxu2 %vm176_vm1, %v3820_v10 }
 0xc99   :  { %2950 = vmatmul.msk.f32.vlgmr.msra.gmra.mxu2 %vm176_vm1, %v3813_v6 }
 0xca1   :  { %2951 = vmatmul.msk.f32.gmra.mxu2 %vm176_vm1, %v3820_v10 }
 0xcfa   :  { %v1504_v14 = vpop.f32.mrf.mxu1  ;;  %v1465_v15 = vpop.f32.mrf.mxu0 }
 0xcfb   :  { %2944 = vmatpush.xpose.msk.msra.mxu0 %vm176_vm1, %v1504_v14 }
 0xcfe   :  { %2945 = vmatmul.msk.f32.vlgmr.msra.gmra.mxu0 %vm176_vm1, %v1465_v15 }
 0xd02   :  { %v1507_v18 = vpop.f32.mrf.mxu1  ;;  %v1468_v19 = vpop.f32.mrf.mxu0 }
 0xd03   :  { %2946 = vmatpush.xpose.msk.msrb.mxu3 %vm176_vm1, %v1507_v18 }
 0xd06   :  { %2947 = vmatmul.msk.f32.vlgmr.msrb.gmra.mxu3 %vm176_vm1, %v1468_v19  ;;  %v1973_v19 = vld [vmem:[#allocation7 + $0x1b0] sm:$0xff] }
 0xd07   :  { %1722 = vmatpush.msra.mxu3 %v3188_v17 }
 0xd09   :  { %1723 = vmatpush.msra.mxu3 %v3189_v5 }
 0xd0b   :  { %1724 = vmatpush.msra.mxu3 %v3193_v24  ;;  %v1972_v24 = vld [vmem:[#allocation7 + $0x1a8] sm:$0xff] }
 0xd0c   :  { %v1539_v26 = vpop.f32.mrf.mxu2 }
 0xd0d   :  { %1725 = vmatpush.msra.mxu3 %v3194_v25  ;;  %1639 = vmatpush.msrb.mxu0 %v1539_v26 }
 0xd0e   :  { %2952 = vmatmul.msk.f32.vlgmr.msra.gmra.mxu3 %vm176_vm1, %v3813_v6 }
 0xd14   :  { %v1542_v27 = vpop.f32.mrf.mxu2 }
 0xd15   :  { %1662 = vmatpush.msrb.mxu1 %v1542_v27 }
 0xd16   :  { %2953 = vmatmul.msk.f32.gmra.mxu3 %vm176_vm1, %v3820_v10 }
 0xd1c   :  { %v1688_v62 = vpop.f32.mrf.mxu2 }
 0xd7b   :  { %v1568_v28 = vpop.f32.mrf.mxu0 }
 0xd7c   :  { %v1597_v29 = vmul.f32 0.17677669, %v1568_v28 }
 0xd7e   :  { %v1599_v30 = vsel %vm334_vm2, %v1597_v29, -inf }
 0xd7f   :  { %1600 = vmax.xlane.f32.xlu0 %v1599_v30 }
 0xd89   :  { %v1594_v31 = vpop.f32.mrf.mxu3 }
 0xd8a   :  { %v1598_v33 = vmul.f32 0.17677669, %v1594_v31 }
 0xd8c   :  { %v1602_v34 = vsel %vm334_vm2, %v1598_v33, -inf }
 0xd8d   :  { %1603 = vmax.xlane.f32.xlu1 %v1602_v34 }
 0xd91   :  { %v1727_v21 = vpop.f32.mrf.mxu3 }
 0xd92   :  { %2956 = vmatpush.xpose.msk.msra.mxu1 %vm176_vm1, %v1727_v21 }
 0xd93   :  { %3201 = vrot.lane.b32.xlu0 %v3806_v59, %s3443_s4 }
 0xd99   :  { %v1730_v61 = vpop.f32.mrf.mxu3 }
 0xda6   :  { %3196 = vrot.lane.b32.xlu1 %v3804_v57, %s3443_s4 }
 0xdae   :  { %3206 = vrot.lane.b32.xlu1 %v3851_v48, %s3442_s0 }
 0xdb6   :  { %3216 = vrot.lane.b32.xlu1 %v3772_v32, %s3444_s5 }
 0xdbe   :  { %3221 = vrot.lane.b32.xlu1 %v3791_v20, %s3444_s5  ;;  %v1691_v20 = vpop.f32.mrf.mxu2 }
 0xdc6   :  { %3226 = vrot.lane.b32.xlu1 %v3804_v57, %s3444_s5 }
 0xdce   :  { %3236 = vrot.lane.b32.xlu1 %v3851_v48, %s3443_s4 }
 0xdf2   :  { %v1601_v36 = vpop.xlane.xlu0 %1600 }
 0xdf3   :  { %v1605_v40 = vsub.f32 %v1597_v29, %v1601_v36  ;;  %v3874_v36 = vpack.i.bf16 %v1972_v24, %v1973_v19 }
 0xdf5   :  { %v1607_v42 = vmul.f32 1.442695, %v1605_v40 }
 0xe00   :  { %v1604_v38 = vpop.xlane.xlu1 %1603 }
 0xe01   :  { %v1606_v39 = vsub.f32 %v1598_v33, %v1604_v38 }
 0xe03   :  { %v1609_v41 = vmul.f32 1.442695, %v1606_v39 }
 0xe05   :  { %3332 = vpow2.f32 %v1609_v41  ;;  %v3202_v53 = vpop.permute.xlu0 %3201 }
 0xe06   :  { %3334 = vpow2.f32 %v1607_v42  ;;  %v3203_v54 = vunpack.i.l.bf16 %v3202_v53  ;;  %v3204_v55 = vunpack.i.h.bf16 %v3202_v53 }
 0xe0b   :  { %v3333_v43 = vpop.eup %3332 }
 0xe0c   :  { %v1614_v44 = vsel %vm334_vm2, %v3333_v43, 0.0  ;;  %v3335_v45 = vpop.eup %3334 }
 0xe0d   :  { %1615 = vadd.xlane.f32.xlu2 %v1614_v44  ;;  %v1611_v35 = vsel %vm334_vm2, %v3335_v45, 0.0 }
 0xe15   :  { %1612 = vadd.xlane.f32.xlu2 %v1611_v35 }
 0xe18   :  { %v3197_v49 = vpop.permute.xlu1 %3196 }
 0xe19   :  { %v3199_v51 = vunpack.i.h.bf16 %v3197_v49  ;;  %v3198_v52 = vunpack.i.l.bf16 %v3197_v49 }
 0xe1b   :  { %1757 = vmatpush.msra.mxu0 %v3198_v52 }
 0xe1d   :  { %1758 = vmatpush.msra.mxu0 %v3199_v51 }
 0xe1f   :  { %1759 = vmatpush.msra.mxu0 %v3203_v54 }
 0xe20   :  { %v3207_v0 = vpop.permute.xlu1 %3206 }
 0xe21   :  { %1760 = vmatpush.msra.mxu0 %v3204_v55  ;;  %v3208_v16 = vunpack.i.l.bf16 %v3207_v0  ;;  %v3209_v18 = vunpack.i.h.bf16 %v3207_v0 }
 0xe28   :  { %v3217_v1 = vpop.permute.xlu1 %3216 }
 0xe29   :  { %v3219_v3 = vunpack.i.h.bf16 %v3217_v1  ;;  %v3218_v8 = vunpack.i.l.bf16 %v3217_v1 }
 0xe30   :  { %v3222_v56 = vpop.permute.xlu1 %3221 }
 0xe31   :  { %v3224_v4 = vunpack.i.h.bf16 %v3222_v56  ;;  %v3223_v7 = vunpack.i.l.bf16 %v3222_v56 }
 0xe80   :  { %v1616_v37 = vpop.xlane.xlu2 %1615 }
 0xe81   :  { %3336 = vrcp.f32 %v1616_v37 }
 0xe87   :  { %v3337_v58 = vpop.eup %3336 }
 0xe88   :  { %v1620_v50 = vmul.f32 %v3337_v58, %v3333_v43  ;;  %v1613_v60 = vpop.xlane.xlu2 %1612 }
 0xe89   :  { %3338 = vrcp.f32 %v1613_v60 }
 0xe8a   :  { %2949 = vmatmul.msk.f32.vlgmr.msrb.gmra.mxu1 %vm334_vm2, %v1620_v50 }
 0xe8b   :  { %2958 = vmatpush.xpose.msk.msrb.mxu1 %vm176_vm1, %v1730_v61 }
 0xe8f   :  { %v3339_v32 = vpop.eup %3338 }
 0xe90   :  { %v1619_v63 = vmul.f32 %v3339_v32, %v3335_v45 }
 0xe92   :  { %2948 = vmatmul.msk.f32.vlgmr.msrb.gmra.mxu0 %vm334_vm2, %v1619_v63  ;;  %2957 = vmatmul.msk.f32.vlgmr.msra.gmra.mxu1 %vm176_vm1, %v1688_v62 }
 0xe93   :  { %1961 = vmatpush.msra.mxu1 %v3218_v8 }
 0xe95   :  { %1962 = vmatpush.msra.mxu1 %v3219_v3 }
 0xe97   :  { %1963 = vmatpush.msra.mxu1 %v3223_v7 }
 0xe99   :  { %1964 = vmatpush.msra.mxu1 %v3224_v4 }
 0xe9a   :  { %2954 = vmatmul.msk.f32.vlgmr.msra.gmra.mxu0 %vm176_vm1, %v3813_v6  ;;  %2959 = vmatmul.msk.f32.vlgmr.msrb.gmra.mxu1 %vm176_vm1, %v1691_v20 }
 0xea2   :  { %2955 = vmatmul.msk.f32.gmra.mxu0 %vm176_vm1, %v3820_v10 }
 0xf07   :  { %v1664_v9 = vpop.f32.mrf.mxu1 }
 0xf0f   :  { %v1641_v22 = vpop.f32.mrf.mxu0  ;;  %v1791_v12 = vpop.f32.mrf.mxu1 }
 0xf10   :  { %2964 = vmatmul.msk.f32.vlgmr.msra.gmra.mxu1 %vm176_vm1, %v1641_v22  ;;  %v1820_v17 = vmul.f32 0.17677669, %v1791_v12  ;;  %v2241_v22 = vld [vmem:[#allocation7 + $0x1e0] sm:$0xff]  ;;  %v2240_v12 = vld [vmem:[#allocation7 + $0x1d8] sm:$0xff] }
 0xf12   :  { %v1822_v5 = vsel %vm334_vm2, %v1820_v17, -inf }
 0xf17   :  { %v1762_v23 = vpop.f32.mrf.mxu0  ;;  %v1817_v13 = vpop.f32.mrf.mxu1 }
 0xf18   :  { %v1821_v14 = vmul.f32 0.17677669, %v1817_v13  ;;  %1862 = vmatpush.msrb.mxu2 %v1762_v23  ;;  %2965 = vmatmul.msk.f32.gmra.mxu1 %vm176_vm1, %v1664_v9 }
 0xf1a   :  { %1988 = vmatpush.msra.mxu2 %v1975_v47  ;;  %v1825_v15 = vsel %vm334_vm2, %v1821_v14, -inf }
 0xf1b   :  { %1826 = vmax.xlane.f32.xlu2 %v1825_v15 }
 0xf1c   :  { %1989 = vmatpush.msra.mxu2 %v1974_v46 }
 0xf1e   :  { %1990 = vmatpush.msra.mxu2 %v1973_v19 }
 0xf1f   :  { %v1765_v2 = vpop.f32.mrf.mxu0 }
 0xf20   :  { %1885 = vmatpush.msrb.mxu3 %v1765_v2  ;;  %1991 = vmatpush.msra.mxu2 %v1972_v24 }
 0xf22   :  { %2027 = vmatpush.msra.mxu3 %v3208_v16  ;;  %v3914_v16 = vpack.i.bf16 %v2240_v12, %v2241_v22 }
 0xf23   :  { %1823 = vmax.xlane.f32.xlu2 %v1822_v5 }
 0xf24   :  { %2028 = vmatpush.msra.mxu3 %v3209_v18  ;;  %v2238_v18 = vld [vmem:[#allocation7 + $0x1c8] sm:$0xff] }
 0xf8d   :  { %v3906_v20 = vpop.f32.mrf.mxu1 }
 0xf8e   :  { %v1827_v25 = vpop.xlane.xlu2 %1826 }
 0xf8f   :  { %v1829_v26 = vsub.f32 %v1821_v14, %v1827_v25 }
 0xf91   :  { %v1832_v27 = vmul.f32 1.442695, %v1829_v26 }
 0xf93   :  { %3340 = vpow2.f32 %v1832_v27 }
 0xf95   :  { %v1969_v0 = vpop.f32.mrf.mxu1 }
 0xf96   :  { %v1824_v28 = vpop.xlane.xlu2 %1823 }
 0xf97   :  { %v1828_v29 = vsub.f32 %v1820_v17, %v1824_v28  ;;  %v2239_v17 = vld [vmem:[#allocation7 + $0x1d0] sm:$0xff] }
 0xf99   :  { %v3341_v30 = vpop.eup %3340  ;;  %v1830_v31 = vmul.f32 1.442695, %v1828_v29 }
 0xf9a   :  { %v1837_v33 = vsel %vm334_vm2, %v3341_v30, 0.0 }
 0xf9b   :  { %3342 = vpow2.f32 %v1830_v31  ;;  %1838 = vadd.xlane.f32.xlu0 %v1837_v33 }
 0xfa1   :  { %v3343_v34 = vpop.eup %3342 }
 0xfa2   :  { %v1834_v21 = vsel %vm334_vm2, %v3343_v34, 0.0 }
 0xfa3   :  { %1835 = vadd.xlane.f32.xlu2 %v1834_v21  ;;  %v3922_v21 = vpack.i.bf16 %v2238_v18, %v2239_v17 }
 0xfbb   :  { %3211 = vrot.lane.b32.xlu2 %v3874_v36, %s3442_s0 }
 0xfc3   :  { %3231 = vrot.lane.b32.xlu2 %v3806_v59, %s3444_s5  ;;  %v3227_v59 = vpop.permute.xlu1 %3226 }
 0xfc4   :  { %v3229_v35 = vunpack.i.h.bf16 %v3227_v59  ;;  %v3228_v46 = vunpack.i.l.bf16 %v3227_v59 }
 0xfc6   :  { %1920 = vmatpush.msrb.mxu0 %v3228_v46 }
 0xfc8   :  { %1921 = vmatpush.msrb.mxu0 %v3229_v35 }
 0xfcb   :  { %3241 = vrot.lane.b32.xlu2 %v3874_v36, %s3443_s4  ;;  %v3237_v52 = vpop.permute.xlu1 %3236 }
 0xfcc   :  { %v3239_v53 = vunpack.i.h.bf16 %v3237_v52  ;;  %v3238_v54 = vunpack.i.l.bf16 %v3237_v52 }
0x100e   :  { %v1839_v38 = vpop.xlane.xlu0 %1838 }
0x100f   :  { %3344 = vrcp.f32 %v1839_v38 }
0x1015   :  { %v3345_v39 = vpop.eup %3344 }
0x1016   :  { %v1843_v40 = vmul.f32 %v3345_v39, %v3341_v30  ;;  %v1836_v41 = vpop.xlane.xlu2 %1835 }
0x1017   :  { %3346 = vrcp.f32 %v1836_v41 }
0x1018   :  { %2961 = vmatmul.msk.f32.vlgmr.msrb.gmra.mxu3 %vm334_vm2, %v1843_v40 }
0x101d   :  { %v3347_v42 = vpop.eup %3346 }
0x101e   :  { %v1842_v43 = vmul.f32 %v3347_v42, %v3343_v34  ;;  %v3212_v57 = vpop.permute.xlu2 %3211 }
0x101f   :  { %v3214_v44 = vunpack.i.h.bf16 %v3212_v57  ;;  %v3213_v45 = vunpack.i.l.bf16 %v3212_v57 }
0x1020   :  { %2960 = vmatmul.msk.f32.vlgmr.msrb.gmra.mxu2 %vm334_vm2, %v1842_v43 }
0x1021   :  { %2029 = vmatpush.msra.mxu3 %v3213_v45 }
0x1023   :  { %2030 = vmatpush.msra.mxu3 %v3214_v44 }
0x1024   :  { %2968 = vmatmul.msk.f32.vlgmr.msra.gmra.mxu3 %vm176_vm1, %v3813_v6 }
0x1026   :  { %v3232_v47 = vpop.permute.xlu2 %3231 }
0x1027   :  { %v3233_v49 = vunpack.i.l.bf16 %v3232_v47  ;;  %v3234_v51 = vunpack.i.h.bf16 %v3232_v47 }
0x1028   :  { %2966 = vmatmul.msk.f32.vlgmr.msra.gmra.mxu2 %vm176_vm1, %v3813_v6 }
0x1029   :  { %1922 = vmatpush.msrb.mxu0 %v3233_v49 }
0x102b   :  { %1923 = vmatpush.msrb.mxu0 %v3234_v51 }
0x102c   :  { %2969 = vmatmul.msk.f32.gmra.mxu3 %vm176_vm1, %v3820_v10 }
0x102d   :  { %2062 = vmatpush.msra.mxu0 %v3238_v54 }
0x102e   :  { %v3242_v55 = vpop.permute.xlu2 %3241 }
0x102f   :  { %v3244_v37 = vunpack.i.h.bf16 %v3242_v55  ;;  %v3243_v58 = vunpack.i.l.bf16 %v3242_v55  ;;  %2063 = vmatpush.msra.mxu0 %v3239_v53 }
0x1030   :  { %2967 = vmatmul.msk.f32.gmra.mxu2 %vm176_vm1, %v3820_v10 }
0x1031   :  { %2064 = vmatpush.msra.mxu0 %v3243_v58 }
0x1033   :  { %2065 = vmatpush.msra.mxu0 %v3244_v37 }
0x109b   :  { %v1887_v50 = vpop.f32.mrf.mxu3 }
0x10a3   :  { %v1864_v60 = vpop.f32.mrf.mxu2 }
0x10a4   :  { %2962 = vmatmul.msk.f32.vlgmr.msrb.gmra.mxu0 %vm176_vm1, %v1864_v60 }
0x10a7   :  { %v2032_v61 = vpop.f32.mrf.mxu3 }
0x10a8   :  { %2972 = vmatpush.xpose.msk.msrb.mxu1 %vm176_vm1, %v2032_v61 }
0x10ab   :  { %v1993_v32 = vpop.f32.mrf.mxu2 }
0x10ac   :  { %2963 = vmatmul.msk.f32.gmra.mxu0 %vm176_vm1, %v1887_v50  ;;  %2973 = vmatmul.msk.f32.vlgmr.msrb.gmra.mxu1 %vm176_vm1, %v1993_v32 }
0x10af   :  { %v2035_v62 = vpop.f32.mrf.mxu3 }
0x10b0   :  { %2974 = vmatpush.xpose.msk.msrb.mxu2 %vm176_vm1, %v2035_v62 }
0x10b3   :  { %v1996_v63 = vpop.f32.mrf.mxu2 }
0x10b4   :  { %2970 = vmatmul.msk.f32.vlgmr.msra.gmra.mxu0 %vm176_vm1, %v3813_v6  ;;  %2975 = vmatmul.msk.f32.vlgmr.msrb.gmra.mxu2 %vm176_vm1, %v1996_v63 }
0x10bc   :  { %2971 = vmatmul.msk.f32.gmra.mxu0 %vm176_vm1, %v3820_v10 }
0x1121   :  { %v3908_v1 = vpop.f32.mrf.mxu0 }
0x1129   :  { %v1928_v3 = vpop.f32.mrf.mxu0  ;;  %v2096_v8 = vpop.f32.mrf.mxu1 }
0x112a   :  { %v3910_v56 = vadd.f32 %v1969_v0, %v1928_v3  ;;  %v2125_v4 = vmul.f32 0.17677669, %v2096_v8  ;;  %v1967_v0 = vadd.f32 %v3906_v20, %v3908_v1 }
0x112c   :  { %v2127_v7 = vsel %vm334_vm2, %v2125_v4, -inf }
0x112d   :  { %2128 = vmax.xlane.f32.xlu0 %v2127_v7 }
0x1131   :  { %v2067_v9 = vpop.f32.mrf.mxu0 }
0x1132   :  { %2167 = vmatpush.msrb.mxu3 %v2067_v9 }
0x1134   :  { %2254 = vmatpush.msra.mxu3 %v2241_v22 }
0x1136   :  { %2255 = vmatpush.msra.mxu3 %v2240_v12 }
0x1137   :  { %v2122_v23 = vpop.f32.mrf.mxu2 }
0x1138   :  { %v2126_v13 = vmul.f32 0.17677669, %v2122_v23  ;;  %2256 = vmatpush.msra.mxu3 %v2239_v17 }
0x1139   :  { %v2070_v14 = vpop.f32.mrf.mxu0 }
0x113a   :  { %2190 = vmatpush.msra.mxu1 %v2070_v14  ;;  %v2130_v15 = vsel %vm334_vm2, %v2126_v13, -inf  ;;  %2257 = vmatpush.msra.mxu3 %v2238_v18 }
0x113b   :  { %2131 = vmax.xlane.f32.xlu1 %v2130_v15 }
0x1141   :  { %3246 = vrot.lane.b32.xlu0 %v3914_v16, %s3442_s0 }
0x1154   :  { %3256 = vrot.lane.b32.xlu1 %v3851_v48, %s3444_s5 }
0x11a0   :  { %v2129_v2 = vpop.xlane.xlu0 %2128 }
0x11a1   :  { %v2133_v5 = vsub.f32 %v2125_v4, %v2129_v2 }
0x11a3   :  { %v2135_v19 = vmul.f32 1.442695, %v2133_v5 }
0x11a5   :  { %3348 = vpow2.f32 %v2135_v19 }
0x11ab   :  { %v3349_v24 = vpop.eup %3348 }
0x11ac   :  { %v2139_v25 = vsel %vm334_vm2, %v3349_v24, 0.0 }
0x11ad   :  { %2140 = vadd.xlane.f32.xlu2 %v2139_v25 }
0x11ae   :  { %v2132_v26 = vpop.xlane.xlu1 %2131 }
0x11af   :  { %v2134_v27 = vsub.f32 %v2126_v13, %v2132_v26 }
0x11b1   :  { %v2137_v28 = vmul.f32 1.442695, %v2134_v27 }
0x11b3   :  { %3350 = vpow2.f32 %v2137_v28  ;;  %v3247_v31 = vpop.permute.xlu0 %3246 }
0x11b4   :  { %v3249_v33 = vunpack.i.h.bf16 %v3247_v31  ;;  %v3248_v34 = vunpack.i.l.bf16 %v3247_v31 }
0x11b6   :  { %2293 = vmatpush.msrb.mxu0 %v3248_v34 }
0x11b8   :  { %2294 = vmatpush.msrb.mxu0 %v3249_v33 }
0x11b9   :  { %v3351_v29 = vpop.eup %3350 }
0x11ba   :  { %v2142_v30 = vsel %vm334_vm2, %v3351_v29, 0.0 }
0x11bb   :  { %2143 = vadd.xlane.f32.xlu0 %v2142_v30 }
0x11c5   :  { %3266 = vrot.lane.b32.xlu2 %v3914_v16, %s3443_s4 }
0x11c6   :  { %v3257_v51 = vpop.permute.xlu1 %3256 }
0x11c7   :  { %v3259_v52 = vunpack.i.h.bf16 %v3257_v51  ;;  %v3258_v53 = vunpack.i.l.bf16 %v3257_v51 }
0x11c9   :  { %2225 = vmatpush.msra.mxu2 %v3258_v53 }
0x11cb   :  { %2226 = vmatpush.msra.mxu2 %v3259_v52 }
0x11cf   :  { %3251 = vrot.lane.b32.xlu0 %v3922_v21, %s3442_s0 }
0x11d7   :  { %3261 = vrot.lane.b32.xlu0 %v3874_v36, %s3444_s5 }
0x11df   :  { %3271 = vrot.lane.b32.xlu0 %v3922_v21, %s3443_s4 }
0x1220   :  { %v2141_v38 = vpop.xlane.xlu2 %2140 }
0x1221   :  { %3352 = vrcp.f32 %v2141_v38 }
0x1227   :  { %v3353_v39 = vpop.eup %3352 }
0x1228   :  { %v2147_v40 = vmul.f32 %v3353_v39, %v3349_v24  ;;  %v3267_v41 = vpop.permute.xlu2 %3266 }
0x1229   :  { %v3269_v42 = vunpack.i.h.bf16 %v3267_v41  ;;  %v3268_v43 = vunpack.i.l.bf16 %v3267_v41 }
0x122a   :  { %2976 = vmatmul.msk.f32.vlgmr.msrb.gmra.mxu3 %vm334_vm2, %v2147_v40 }
0x122b   :  { %2328 = vmatpush.msrb.mxu1 %v3268_v43 }
0x122d   :  { %2329 = vmatpush.msrb.mxu1 %v3269_v42 }
0x122e   :  { %v2144_v57 = vpop.xlane.xlu0 %2143 }
0x122f   :  { %3354 = vrcp.f32 %v2144_v57 }
0x1232   :  { %2980 = vmatmul.msk.f32.vlgmr.msra.gmra.mxu3 %vm176_vm1, %v3813_v6 }
0x1235   :  { %v3355_v36 = vpop.eup %3354 }
0x1236   :  { %v2148_v44 = vmul.f32 %v3355_v36, %v3351_v29 }
0x1238   :  { %2977 = vmatmul.msk.f32.vlgmr.msra.gmra.mxu1 %vm334_vm2, %v2148_v44 }
0x123a   :  { %2981 = vmatmul.msk.f32.gmra.mxu3 %vm176_vm1, %v3820_v10 }
0x1241   :  { %v3252_v48 = vpop.permute.xlu0 %3251 }
0x1242   :  { %v3253_v45 = vunpack.i.l.bf16 %v3252_v48  ;;  %v3254_v59 = vunpack.i.h.bf16 %v3252_v48 }
0x1244   :  { %2295 = vmatpush.msrb.mxu0 %v3253_v45 }
0x1246   :  { %2296 = vmatpush.msrb.mxu0 %v3254_v59  ;;  %v3971_v59 = vld [vmem:[#allocation7 + $0x248] ss:$0 sm:$0xff] }
0x1247   :  { %2982 = vmatmul.msk.f32.vlgmr.msrb.gmra.mxu0 %vm176_vm1, %v3813_v6 }
0x1249   :  { %v3262_v35 = vpop.permute.xlu0 %3261 }
0x124a   :  { %v3263_v54 = vunpack.i.l.bf16 %v3262_v35  ;;  %v3264_v55 = vunpack.i.h.bf16 %v3262_v35 }
0x124c   :  { %2227 = vmatpush.msra.mxu2 %v3263_v54 }
0x124e   :  { %2228 = vmatpush.msra.mxu2 %v3264_v55  ;;  %v2564_v55 = vld [vmem:[#allocation7 + $0x200] sm:$0xff] }
0x124f   :  { %2983 = vmatmul.msk.f32.gmra.mxu0 %vm176_vm1, %v3820_v10 }
0x1251   :  { %v3272_v46 = vpop.permute.xlu0 %3271 }
0x1252   :  { %v3274_v47 = vunpack.i.h.bf16 %v3272_v46  ;;  %v3273_v49 = vunpack.i.l.bf16 %v3272_v46 }
0x1254   :  { %2330 = vmatpush.msrb.mxu1 %v3273_v49 }
0x1256   :  { %2331 = vmatpush.msrb.mxu1 %v3274_v47 }
0x1257   :  { %2984 = vmatmul.msk.f32.vlgmr.msrb.gmra.mxu1 %vm176_vm1, %v3813_v6 }
0x125f   :  { %2985 = vmatmul.msk.f32.gmra.mxu1 %vm176_vm1, %v3820_v10 }
0x12ad   :  { %v2169_v37 = vpop.f32.mrf.mxu3 }
0x12ae   :  { %2978 = vmatmul.msk.f32.vlgmr.msra.gmra.mxu2 %vm176_vm1, %v2169_v37  ;;  %v2563_v37 = vld [vmem:[#allocation7 + $0x1f8] sm:$0xff] }
0x12b5   :  { %v2192_v58 = vpop.f32.mrf.mxu1  ;;  %v2259_v60 = vpop.f32.mrf.mxu3 }
0x12b6   :  { %2979 = vmatmul.msk.f32.gmra.mxu2 %vm176_vm1, %v2192_v58  ;;  %v2562_v58 = vld [vmem:[#allocation7 + $0x1f0] sm:$0xff] }
0x12bd   :  { %v2262_v32 = vpop.f32.mrf.mxu3 }
0x12c4   :  { %v2298_v50 = vpop.f32.mrf.mxu0 }
0x12c5   :  { %2986 = vmatpush.xpose.msk.msrb.mxu2 %vm176_vm1, %v2298_v50  ;;  %v2561_v50 = vld [vmem:[#allocation7 + $0x1e8] sm:$0xff] }
0x12c8   :  { %2987 = vmatmul.msk.f32.vlgmr.msrb.gmra.mxu2 %vm176_vm1, %v2259_v60 }
0x12cc   :  { %v2301_v61 = vpop.f32.mrf.mxu0 }
0x12cd   :  { %2988 = vmatpush.xpose.msk.msrb.mxu3 %vm176_vm1, %v2301_v61 }
0x12d0   :  { %2989 = vmatmul.msk.f32.vlgmr.msrb.gmra.mxu3 %vm176_vm1, %v2262_v32 }
0x12d1   :  { %2592 = vmatpush.msra.mxu3 %v2564_v55 }
0x12d3   :  { %2593 = vmatpush.msra.mxu3 %v2563_v37 }
0x12d4   :  { %v2333_v62 = vpop.f32.mrf.mxu1 }
0x12d5   :  { %2433 = vmatpush.msra.mxu0 %v2333_v62  ;;  %2594 = vmatpush.msra.mxu3 %v2562_v58  ;;  %v2572_v62 = vld [vmem:[#allocation7 + $0x240] sm:$0xff] }
0x12d7   :  { %2595 = vmatpush.msra.mxu3 %v2561_v50  ;;  %2623 = vmatpush.msrb.mxu0 %v2572_v62 }
0x12dc   :  { %v2336_v63 = vpop.f32.mrf.mxu1 }
0x12dd   :  { %2456 = vmatpush.msra.mxu1 %v2336_v63  ;;  %v2571_v63 = vld [vmem:[#allocation7 + $0x238] sm:$0xff] }
0x12de   :  { %2624 = vmatpush.msrb.mxu0 %v2571_v63 }
0x1331   :  { %v2230_v3 = vpop.f32.mrf.mxu2 }
0x1332   :  { %v2236_v8 = vadd.f32 %v2230_v3, %v1967_v0  ;;  %v3288_v0 = vld [vmem:[#allocation7 + $0x249] ss:$0 sm:$0xff]  ;;  %v2570_v3 = vld [vmem:[#allocation7 + $0x230] sm:$0xff] }
0x1333   :  { %2625 = vmatpush.msrb.mxu0 %v2570_v3 }
0x1339   :  { %v2233_v4 = vpop.f32.mrf.mxu2 }
0x133a   :  { %v2237_v7 = vadd.f32 %v2233_v4, %v3910_v56 }
0x134b   :  { %v2362_v9 = vpop.f32.mrf.mxu2 }
0x134c   :  { %v2391_v22 = vmul.f32 0.17677669, %v2362_v9 }
0x134e   :  { %v2393_v12 = vsel %vm334_vm2, %v2391_v22, -inf }
0x134f   :  { %2394 = vmax.xlane.f32.xlu0 %v2393_v12  ;;  %v2568_v12 = vld [vmem:[#allocation7 + $0x220] sm:$0xff] }
0x1353   :  { %v2388_v23 = vpop.f32.mrf.mxu3 }
0x1354   :  { %v2392_v13 = vmul.f32 0.17677669, %v2388_v23 }
0x1356   :  { %v2396_v14 = vsel %vm334_vm2, %v2392_v13, -inf }
0x1357   :  { %2397 = vmax.xlane.f32.xlu1 %v2396_v14 }
0x1370   :  { %3281 = vrot.lane.b32.xlu1 %v3922_v21, %s3444_s5 }
0x1378   :  { %2556 = vrot.lane.b32.xlu1 %v3971_v59, %s3442_s0  ;;  %s3446_s0 = smov [#allocation8]  }
0x1379   :  { %s2754_s6 = sshll.u32 %s3446_s0, 4  ;;  %s2755_s6 = int_to_ptr.vmem [resolvable:$true] %s2754_s6 }
0x13c2   :  { %v2395_v15 = vpop.xlane.xlu0 %2394 }
0x13c3   :  { %v2399_v17 = vsub.f32 %v2391_v22, %v2395_v15 }
0x13c5   :  { %v2401_v18 = vmul.f32 1.442695, %v2399_v17 }
0x13c7   :  { %3356 = vpow2.f32 %v2401_v18 }
0x13ca   :  { %v2398_v20 = vpop.xlane.xlu1 %2397 }
0x13cb   :  { %v2400_v1 = vsub.f32 %v2392_v13, %v2398_v20 }
0x13cd   :  { %v3357_v2 = vpop.eup %3356  ;;  %v2403_v5 = vmul.f32 1.442695, %v2400_v1 }
0x13ce   :  { %v2405_v56 = vsel %vm334_vm2, %v3357_v2, 0.0 }
0x13cf   :  { %3358 = vpow2.f32 %v2403_v5  ;;  %2406 = vadd.xlane.f32.xlu2 %v2405_v56 }
0x13d5   :  { %v3359_v19 = vpop.eup %3358 }
0x13d6   :  { %v2408_v24 = vsel %vm334_vm2, %v3359_v19, 0.0 }
0x13d7   :  { %2409 = vadd.xlane.f32.xlu0 %v2408_v24 }
0x13eb   :  { %3276 = vrot.lane.b32.xlu0 %v3914_v16, %s3444_s5  ;;  %v3282_v16 = vpop.permute.xlu1 %3281 }
0x13ec   :  { %v3284_v38 = vunpack.i.h.bf16 %v3282_v16  ;;  %v3283_v39 = vunpack.i.l.bf16 %v3282_v16  ;;  %v2565_v16 = vld [vmem:[#allocation7 + $0x208] sm:$0xff] }
0x1442   :  { %v2407_v25 = vpop.xlane.xlu2 %2406 }
0x1443   :  { %3360 = vrcp.f32 %v2407_v25 }
0x1449   :  { %v3361_v26 = vpop.eup %3360 }
0x144a   :  { %v2413_v27 = vmul.f32 %v3361_v26, %v3357_v2  ;;  %v2410_v28 = vpop.xlane.xlu0 %2409 }
0x144b   :  { %3362 = vrcp.f32 %v2410_v28 }
0x144c   :  { %2990 = vmatmul.msk.f32.vlgmr.msra.gmra.mxu0 %vm334_vm2, %v2413_v27 }
0x1451   :  { %v3363_v29 = vpop.eup %3362 }
0x1452   :  { %v2414_v30 = vmul.f32 %v3363_v29, %v3359_v19  ;;  %v2557_v19 = vpop.permute.xlu1 %2556 }
0x1454   :  { %2991 = vmatmul.msk.f32.vlgmr.msra.gmra.mxu1 %vm334_vm2, %v2414_v30 }
0x145d   :  { %v3277_v31 = vpop.permute.xlu0 %3276 }
0x145e   :  { %v3279_v33 = vunpack.i.h.bf16 %v3277_v31  ;;  %v3278_v34 = vunpack.i.l.bf16 %v3277_v31 }
0x1460   :  { %2491 = vmatpush.msra.mxu2 %v3278_v34  ;;  %v2566_v34 = vld [vmem:[#allocation7 + $0x210] sm:$0xff] }
0x1462   :  { %2492 = vmatpush.msra.mxu2 %v3279_v33  ;;  %v2567_v33 = vld [vmem:[#allocation7 + $0x218] sm:$0xff] }
0x1464   :  { %2493 = vmatpush.msra.mxu2 %v3283_v39 }
0x1466   :  { %2494 = vmatpush.msra.mxu2 %v3284_v38 }
0x14c9   :  { %v2435_v21 = vpop.f32.mrf.mxu0 }
0x14ca   :  { %2992 = vmatmul.msk.f32.vlgmr.msra.gmra.mxu2 %vm176_vm1, %v2435_v21 }
0x14d1   :  { %v2458_v40 = vpop.f32.mrf.mxu1 }
0x14d2   :  { %2993 = vmatmul.msk.f32.gmra.mxu2 %vm176_vm1, %v2458_v40 }
0x154d   :  { %v2496_v41 = vpop.f32.mrf.mxu2 }
0x154e   :  { %v2502_v42 = vadd.f32 %v2496_v41, %v2236_v8 }
0x1550   :  { %v2506_v43 = vadd.f32 %v2502_v42, %v3813_v6 }
0x1552   :  { %v2508_v57 = vsel %vm176_vm1, %v2506_v43, 0.0 }
0x1553   :  { %2509 = vadd.xlane.f32.xlu2 %v2508_v57 }
0x1555   :  { %v2499_v36 = vpop.f32.mrf.mxu2 }
0x1556   :  { %v2503_v44 = vadd.f32 %v2499_v36, %v2237_v7  ;;  %v2569_v7 = vld [vmem:[#allocation7 + $0x228] sm:$0xff] }
0x1557   :  { %2626 = vmatpush.msrb.mxu0 %v2569_v7 }
0x1558   :  { %v2507_v48 = vadd.f32 %v2503_v44, %v3820_v10 }
0x1559   :  { %2627 = vmatpush.msrb.mxu0 %v2568_v12 }
0x155a   :  { %v2511_v45 = vsel %vm176_vm1, %v2507_v48, 0.0 }
0x155b   :  { %2512 = vadd.xlane.f32.xlu2 %v2511_v45  ;;  %2628 = vmatpush.msrb.mxu0 %v2567_v33 }
0x155d   :  { %2629 = vmatpush.msrb.mxu0 %v2566_v34 }
0x155f   :  { %2630 = vmatpush.msrb.mxu0 %v2565_v16 }
0x15c6   :  { %v2510_v35 = vpop.xlane.xlu2 %2509 }
0x15c7   :  { %v2514_v46 = vmul.f32 %v2510_v35, %v3757_v11 }
0x15c9   :  { %v2516_v47 = vsub.f32 %v2506_v43, %v2514_v46 }
0x15cb   :  { %v2518_v6 = vmul.f32 %v2516_v47, %v2516_v47 }
0x15cd   :  { %v2520_v49 = vsel %vm176_vm1, %v2518_v6, 0.0 }
0x15ce   :  { %2521 = vadd.xlane.f32.xlu2 %v2520_v49  ;;  %v2513_v51 = vpop.xlane.xlu2 %2512 }
0x15cf   :  { %v2515_v52 = vmul.f32 %v2513_v51, %v3757_v11 }
0x15d1   :  { %v2517_v10 = vsub.f32 %v2507_v48, %v2515_v52 }
0x15d3   :  { %v2519_v53 = vmul.f32 %v2517_v10, %v2517_v10 }
0x15d5   :  { %v2523_v54 = vsel %vm176_vm1, %v2519_v53, 0.0 }
0x15d6   :  { %2524 = vadd.xlane.f32.xlu0 %v2523_v54 }
0x15e6   :  { %2606 = vrot.lane.b32.xlu2 %v3288_v0, %s3443_s4 }
0x1641   :  { %v2522_v60 = vpop.xlane.xlu2 %2521 }
0x1642   :  { %v2526_v61 = vmul.f32 %v2522_v60, %v3757_v11 }
0x1644   :  { %v2528_v32 = vadd.f32 1e-06, %v2526_v61 }
0x1646   :  { %3364 = vrsqrt.f32 %v2528_v32  ;;  %vm2536_vm3 = vweird.f32 %v2528_v32 }
0x1649   :  { %v2525_v8 = vpop.xlane.xlu0 %2524  ;;  %v2607_v43 = vpop.permute.xlu2 %2606 }
0x164a   :  { %v2527_v4 = vmul.f32 %v2525_v8, %v3757_v11 }
0x164c   :  { %v3365_v9 = vpop.eup %3364  ;;  %v2529_v22 = vadd.f32 1e-06, %v2527_v4 }
0x164d   :  { %v2531_v23 = vmul.f32 %v3365_v9, %v2528_v32  ;;  %vm2537_vm2 = vweird.f32 %v3365_v9 }
0x164e   :  { %3366 = vrsqrt.f32 %v2529_v22  ;;  %vm2538_vm4 = vmor %vm2536_vm3, %vm2537_vm2  ;;  %vm2546_vm6 = vweird.f32 %v2529_v22 }
0x164f   :  { %v2532_v13 = vmul.f32 %v3365_v9, %v2531_v23 }
0x1651   :  { %v2533_v14 = vmul.f32 0.5, %v2532_v13 }
0x1653   :  { %v2534_v15 = vsub.f32 1.5, %v2533_v14 }
0x1654   :  { %v3367_v17 = vpop.eup %3366 }
0x1655   :  { %v2535_v18 = vmul.f32 %v3365_v9, %v2534_v15  ;;  %v2541_v20 = vmul.f32 %v3367_v17, %v2529_v22  ;;  %vm2547_vm5 = vweird.f32 %v3367_v17 }
0x1656   :  { %vm2548_vm7 = vmor %vm2546_vm6, %vm2547_vm5 }
0x1657   :  { %v2542_v1 = vmul.f32 %v3367_v17, %v2541_v20  ;;  %v2539_v2 = vsel %vm2538_vm4, %v3365_v9, %v2535_v18 }
0x1658   :  { %v2550_v5 = vmul.f32 %v2539_v2, %v2516_v47 }
0x1659   :  { %v2543_v56 = vmul.f32 0.5, %v2542_v1 }
0x165a   :  { %v2553_v24 = vmul.f32 %v3971_v59, %v2550_v5 }
0x165b   :  { %v2544_v25 = vsub.f32 1.5, %v2543_v56 }
0x165c   :  { %v2559_v26 = vadd.f32 %v2557_v19, %v2553_v24  ;;  %v2694_v24 = vld [vmem:[#allocation7 + $0x278] sm:$0xff] }
0x165d   :  { %v2545_v27 = vmul.f32 %v3367_v17, %v2544_v25  ;;  %v2722_v25 = vld [vmem:[#allocation7 + $0x268] sm:$0xff] }
0x165e   :  { %2994 = vmatmul.msk.f32.vlgmr.msra.gmra.mxu3 %vm176_vm1, %v2559_v26 }
0x165f   :  { %v2549_v28 = vsel %vm2548_vm7, %v3367_v17, %v2545_v27  ;;  %v2720_v27 = vld [vmem:[#allocation7 + $0x258] sm:$0xff] }
0x1660   :  { %v2551_v29 = vmul.f32 %v2549_v28, %v2517_v10  ;;  %v2719_v28 = vld [vmem:[#allocation7 + $0x250] sm:$0xff] }
0x1662   :  { %v2554_v30 = vmul.f32 %v3971_v59, %v2551_v29 }
0x1664   :  { %v2560_v31 = vadd.f32 %v2557_v19, %v2554_v30  ;;  %v3289_v30 = vld [vmem:[#allocation7 + $0x270] ss:$0 sm:$0xff] }
0x1666   :  { %2995 = vmatmul.msk.f32.gmra.mxu3 %vm176_vm1, %v2560_v31 }
0x16e1   :  { %v2597_v38 = vpop.f32.mrf.mxu3 }
0x16e2   :  { %v2598_v39 = vadd.f32 %v3288_v0, %v2597_v38 }
0x16e4   :  { %v2603_v21 = vmax.f32 %v2598_v39, 0.0 }
0x16e6   :  { %2996 = vmatmul.msk.f32.vlgmr.msrb.gmra.mxu0 %vm1352_vm10, %v2603_v21 }
0x16e9   :  { %v2600_v40 = vpop.f32.mrf.mxu3 }
0x16ea   :  { %v2601_v41 = vadd.f32 %v3288_v0, %v2600_v40 }
0x16ec   :  { %v2604_v42 = vmax.f32 %v2601_v41, 0.0 }
0x16ee   :  { %2997 = vmatmul.msk.f32.gmra.mxu0 %vm1352_vm10, %v2604_v42 }
0x1763   :  { %v2632_v57 = vpop.f32.mrf.mxu0 }
0x1764   :  { %v2633_v36 = vadd.f32 %v2632_v57, %v2607_v43 }
0x1766   :  { %v2638_v44 = vadd.f32 %v2633_v36, %v2559_v26  ;;  %v2721_v26 = vld [vmem:[#allocation7 + $0x260] sm:$0xff] }
0x1768   :  { %v2640_v48 = vsel %vm176_vm1, %v2638_v44, 0.0 }
0x1769   :  { %2641 = vadd.xlane.f32.xlu2 %v2640_v48 }
0x176b   :  { %v2635_v45 = vpop.f32.mrf.mxu0 }
0x176c   :  { %v2636_v35 = vadd.f32 %v2635_v45, %v2607_v43 }
0x176e   :  { %v2639_v46 = vadd.f32 %v2636_v35, %v2560_v31 }
0x1770   :  { %v2643_v47 = vsel %vm176_vm1, %v2639_v46, 0.0 }
0x1771   :  { %2644 = vadd.xlane.f32.xlu1 %v2643_v47 }
0x178a   :  { %2684 = vrot.lane.b32.xlu1 %v3971_v59, %s3443_s4 }
0x17dc   :  { %v2642_v6 = vpop.xlane.xlu2 %2641 }
0x17dd   :  { %v2646_v49 = vmul.f32 %v2642_v6, %v3757_v11 }
0x17df   :  { %v2648_v51 = vsub.f32 %v2638_v44, %v2646_v49 }
0x17e1   :  { %v2650_v52 = vmul.f32 %v2648_v51, %v2648_v51 }
0x17e3   :  { %v2652_v10 = vsel %vm176_vm1, %v2650_v52, 0.0 }
0x17e4   :  { %v2645_v53 = vpop.xlane.xlu1 %2644  ;;  %2653 = vadd.xlane.f32.xlu0 %v2652_v10 }
0x17e5   :  { %v2647_v54 = vmul.f32 %v2645_v53, %v3757_v11 }
0x17e7   :  { %v2649_v55 = vsub.f32 %v2639_v46, %v2647_v54 }
0x17e9   :  { %v2651_v37 = vmul.f32 %v2649_v55, %v2649_v55 }
0x17eb   :  { %v2655_v58 = vsel %vm176_vm1, %v2651_v37, 0.0 }
0x17ec   :  { %2656 = vadd.xlane.f32.xlu0 %v2655_v58 }
0x17fc   :  { %v2685_v17 = vpop.permute.xlu1 %2684 }
0x1800   :  { %2689 = vrot.lane.b32.xlu0 %v3971_v59, %s3444_s5 }
0x1857   :  { %v2654_v50 = vpop.xlane.xlu0 %2653 }
0x1858   :  { %v2658_v60 = vmul.f32 %v2654_v50, %v3757_v11 }
0x185a   :  { %v2660_v61 = vadd.f32 1e-06, %v2658_v60 }
0x185c   :  { %3368 = vrsqrt.f32 %v2660_v61  ;;  %vm2668_vm9 = vweird.f32 %v2660_v61 }
0x185f   :  { %v2657_v32 = vpop.xlane.xlu0 %2656 }
0x1860   :  { %v2659_v62 = vmul.f32 %v2657_v32, %v3757_v11 }
0x1862   :  { %v3369_v63 = vpop.eup %3368  ;;  %v2661_v0 = vadd.f32 1e-06, %v2659_v62 }
0x1863   :  { %v2663_v3 = vmul.f32 %v3369_v63, %v2660_v61  ;;  %vm2669_vm8 = vweird.f32 %v3369_v63 }
0x1864   :  { %3370 = vrsqrt.f32 %v2661_v0  ;;  %vm2670_vm10 = vmor %vm2668_vm9, %vm2669_vm8  ;;  %vm2678_vm12 = vweird.f32 %v2661_v0 }
0x1865   :  { %v2664_v8 = vmul.f32 %v3369_v63, %v2663_v3 }
0x1867   :  { %v2665_v4 = vmul.f32 0.5, %v2664_v8 }
0x1869   :  { %v2666_v7 = vsub.f32 1.5, %v2665_v4 }
0x186a   :  { %v3371_v9 = vpop.eup %3370 }
0x186b   :  { %v2673_v22 = vmul.f32 %v3371_v9, %v2661_v0  ;;  %v2667_v23 = vmul.f32 %v3369_v63, %v2666_v7  ;;  %vm2679_vm11 = vweird.f32 %v3371_v9 }
0x186c   :  { %vm2680_vm13 = vmor %vm2678_vm12, %vm2679_vm11 }
0x186d   :  { %v2674_v12 = vmul.f32 %v3371_v9, %v2673_v22  ;;  %v2671_v14 = vsel %vm2670_vm10, %v3369_v63, %v2667_v23 }
0x186e   :  { %v2682_v15 = vmul.f32 %v2671_v14, %v2648_v51 }
0x186f   :  { %v2675_v59 = vmul.f32 0.5, %v2674_v12 }
0x1870   :  { %v2687_v1 = vmul.f32 %v2685_v17, %v2682_v15 }
0x1871   :  { %v2676_v13 = vsub.f32 1.5, %v2675_v59 }
0x1872   :  { %v2690_v5 = vpop.permute.xlu0 %2689 }
0x1873   :  { %v2677_v11 = vmul.f32 %v3371_v9, %v2676_v13  ;;  %v2692_v19 = vadd.f32 %v2690_v5, %v2687_v1 }
0x1875   :  { %v2681_v18 = vsel %vm2680_vm13, %v3371_v9, %v2677_v11 }
0x1876   :  { %v2683_v20 = vmul.f32 %v2681_v18, %v2649_v55 }
0x1878   :  { %v2688_v2 = vmul.f32 %v2685_v17, %v2683_v20 }
0x187a   :  { %v2693_v56 = vadd.f32 %v2690_v5, %v2688_v2 }
0x187c   :  { %2713 = vmatpush.msrb.mxu1 %v2693_v56 }
0x187e   :  { %2714 = vmatpush.msrb.mxu1 %v2692_v19 }
0x187f   :  { %2998 = vmatmul.msk.f32.vlgmr.msrb.gmra.mxu1 %vm2695_vm14, %v2694_v24 }
0x1880   :  { %2740 = vmatpush.msra.mxu1 %v2722_v25 }
0x1882   :  { %2741 = vmatpush.msra.mxu1 %v2721_v26 }
0x1884   :  { %2742 = vmatpush.msra.mxu1 %v2720_v27 }
0x1886   :  { %2743 = vmatpush.msra.mxu1 %v2719_v28 }
0x18fc   :  { %v2716_v29 = vpop.f32.mrf.mxu1 }
0x18fd   :  { %2999 = vmatmul.msk.f32.vlgmr.msra.gmra.mxu1 %vm176_vm1, %v2716_v29 }
0x197a   :  { %v2745_v31 = vpop.f32.mrf.mxu1 }
0x197b   :  { %v2746_v33 = vadd.f32 %v3289_v30, %v2745_v31 }
0x197d   :  { %2748 = vst [vmem:[#allocation8] sm:$0xff] %v2746_v33 }
0x197e   :  { %2759 = dma.vmem_to_hbm [thread:$0]  %s2755_s6, 128, %s2757_s9, [#allocation5]  }
0x197f   :  { %3436 = dma.done.wait [#allocation5], 128  }
0x1980   :  { %3437 = vsyncadd [#allocation5], 4294967168 }
0x1981   :  { %2764 = vsyncpa [#allocation4], 1 }
0x1982   :  { %2765 = vsyncpa [#allocation5], 1 }
0x1983   :  { %2766 = vsyncpa [#allocation6], 1 }

</bundles_post_ra>
